<compile_context>
chip_gen: v7x
topology: tpu7x:2x2x1
jax: 0.10.0
libtpu: 0.0.40
codegen_flags: <defaults>
</compile_context>

<pallas_src>
import functools

import jax
import jax.numpy as jnp
import numpy as np
from jax.experimental import pallas as pl
from jax.experimental.pallas import tpu as pltpu

LANE = 128        # lane width (last dim)
TIME_ALIGN = 16   # time padding; 16 keeps bf16 activation blocks on native (16,128) tiles


def _round_up(n, m):
    return ((n + m - 1) // m) * m


def _cdiv(a, b):
    return -(-a // b)


def _pad2(a, rows, cols, dtype=None):
    a = jnp.pad(a, ((0, rows - a.shape[0]), (0, cols - a.shape[1])))
    return a if dtype is None else a.astype(dtype)


def _nbytes(a):
    return int(np.prod(a.shape)) * np.dtype(a.dtype).itemsize


# ------------------------------ fused kernel ------------------------------- #

def _fused_tcn_kernel(dilations, t_real, t_pad,
                      x_ref, m_ref, w_in_ref, b_in_ref,
                      wd_ref, bd_ref, wp_ref, bp_ref,
                      w_out_ref, b_out_ref, o_ref):
    """One block of b_blk batch elements, folded to rows = b_blk * t_pad.

    x_ref : (rows, Cin)  bf16 activations (lane dims 128-padded)
    m_ref : (rows, 1)    f32 sequence mask (zero on time-padding rows)
    wd_ref: (L, H, 3H)   bf16 [W0|W1|W2] per layer   bd_ref: (L, 1, H) f32
    wp_ref: (L, H, H)    bf16 1x1 conv per layer     bp_ref: (L, 1, H) f32
    """
    rows = x_ref.shape[0]
    h_dim = w_in_ref.shape[1]

    row_idx = jax.lax.broadcasted_iota(jnp.int32, (rows, 1), 0)
    local_t = row_idx % t_pad            # time index within each folded batch element
    m = m_ref[...]                       # (rows, 1) f32

    # ---- input 1x1 conv (bf16 MXU operands, f32 accumulate) ----
    h = jnp.dot(x_ref[...], w_in_ref[...],
                preferred_element_type=jnp.float32) + b_in_ref[...]
    # Padded time rows must be exactly zero so the dilated taps see Conv1d
    # zero-padding semantics and roll leakage across elements stays masked.
    h = jnp.where(local_t < t_real, h, 0.0)

    # hoist the (rows,1)->(rows,H) mask broadcast out of the layer loop
    mask_h = jnp.broadcast_to(m, (rows, h_dim))

    # ---- dilated residual layers (static loop; dilation static per layer) ----
    for l, d in enumerate(dilations):
        # one wide (rows,H)@(H,3H) matmul against [W0|W1|W2] instead of 3 narrow ones
        r = jnp.dot(h.astype(jnp.bfloat16), wd_ref[l],
                    preferred_element_type=jnp.float32)                 # (rows, 3H) f32
        r1 = r[:, h_dim:2 * h_dim]                                      # center tap
        if d < t_pad:
            r0 = pltpu.roll(r[:, :h_dim], d % rows, 0)                  # r0[t-d]
            r2 = pltpu.roll(r[:, 2 * h_dim:], (rows - d) % rows, 0)     # r2[t+d]
            conv = (jnp.where(local_t >= d, r0, 0.0)
                    + r1
                    + jnp.where(local_t < t_pad - d, r2, 0.0)
                    + bd_ref[l])
        else:
            # dilation >= padded sequence length: both side taps hit zero padding
            conv = r1 + bd_ref[l]
        conv = jnp.maximum(conv, 0.0)                                   # ReLU (f32)
        out = jnp.dot(conv.astype(jnp.bfloat16), wp_ref[l],
                      preferred_element_type=jnp.float32) + bp_ref[l]
        # dropout == identity (eval mode)
        h = (h + out) * mask_h

    # ---- output 1x1 conv ----
    y = jnp.dot(h.astype(jnp.bfloat16), w_out_ref[...],
                preferred_element_type=jnp.float32) + b_out_ref[...]
    o_ref[...] = (y * m).astype(o_ref.dtype)


# --------------------------------- wrapper ---------------------------------- #

def single_stage_tcn_forward(params, x, m=None):
    """x: (B, T, in_dim), m: optional (B, T, 1).  Returns (B, T, out_dim)."""
    B, T, in_dim = x.shape
    H = params["w_in"].shape[1]
    out_dim = params["w_out"].shape[1]
    layers = params["layers"]
    L = len(layers)
    dilations = tuple(int(l["dilation"]) for l in layers)

    out_dtype = x.dtype
    cin_p = _round_up(in_dim, LANE)
    h_p = _round_up(H, LANE)
    cout_p = _round_up(out_dim, LANE)
    t_p = _round_up(T, TIME_ALIGN)

    # ---- batch folding: several sequences share one MXU M dimension ----
    b_blk = max(1, min(B, _cdiv(256, t_p)))
    if B >= 2:
        b_blk = min(b_blk, _cdiv(B, 2))   # keep >=2 grid steps so v7x megacore splits
    n_blk = _cdiv(B, b_blk)
    b_pad = n_blk * b_blk
    rows = b_blk * t_p

    # ---- pad activations / mask; fold (batch, time) -> rows; bf16 activations ----
    x_pad = jnp.pad(x, ((0, b_pad - B), (0, t_p - T), (0, cin_p - in_dim)))
    x_pad = x_pad.reshape(b_pad * t_p, cin_p).astype(jnp.bfloat16)
    m_full = (jnp.ones((B, T, 1), jnp.float32) if m is None
              else m[..., :1].astype(jnp.float32))
    m_pad = jnp.pad(m_full, ((0, b_pad - B), (0, t_p - T), (0, 0)))
    m_pad = m_pad.reshape(b_pad * t_p, 1)

    # ---- pad + stack weights once (bf16 MXU operands, f32 biases) ----
    bf16 = jnp.bfloat16
    w_in = _pad2(params["w_in"], cin_p, h_p, bf16)
    b_in = _pad2(params["b_in"], 1, h_p)
    wd = jnp.stack([jnp.concatenate([_pad2(l["w0"], h_p, h_p, bf16),
                                     _pad2(l["w1"], h_p, h_p, bf16),
                                     _pad2(l["w2"], h_p, h_p, bf16)], axis=1)
                    for l in layers])                                   # (L, H, 3H)
    bd = jnp.stack([_pad2(l["bd"], 1, h_p) for l in layers])            # (L, 1, H)
    wp = jnp.stack([_pad2(l["wp"], h_p, h_p, bf16) for l in layers])    # (L, H, H)
    bp = jnp.stack([_pad2(l["bp"], 1, h_p) for l in layers])            # (L, 1, H)
    w_out = _pad2(params["w_out"], h_p, cout_p, bf16)
    b_out = _pad2(params["b_out"], 1, cout_p)

    kernel = functools.partial(_fused_tcn_kernel, dilations, T, t_p)

    # ---- VMEM budget & cost estimate ----
    weight_bytes = sum(_nbytes(a) for a in (w_in, b_in, wd, bd, wp, bp, w_out, b_out))
    out_isz = np.dtype(out_dtype).itemsize
    io_bytes = 2 * rows * (cin_p * 2 + 4 + cout_p * out_isz)   # double-buffered x, m, y
    live_bytes = 10 * rows * h_p * 4                           # h, r(3H), conv, out, mask, temps
    needed = 2 * weight_bytes + io_bytes + live_bytes
    try:
        vmem_cap = int(getattr(pltpu.get_tpu_info(), "vmem_capacity_bytes", 64 << 20))
    except Exception:
        vmem_cap = 64 << 20                                    # conservative (v7x per-TC)
    vmem_limit = int(min(max(2 * needed, 32 << 20), int(0.85 * vmem_cap)))

    flops = 2 * b_pad * t_p * (cin_p * h_p + L * (3 * h_p * h_p + h_p * h_p)
                               + h_p * cout_p)
    bytes_accessed = (b_pad * t_p * (cin_p * 2 + 4 + cout_p * out_isz) + weight_bytes)
    cost = pl.CostEstimate(flops=int(flops), transcendentals=0,
                           bytes_accessed=int(bytes_accessed))

    def _wspec(shape, single):
        idx = (lambda g: (0, 0)) if len(shape) == 2 else (lambda g: (0, 0, 0))
        if single:
            # constant index_map across the grid -> one buffer is enough
            return pl.BlockSpec(shape, idx, pipeline_mode=pl.Buffered(1))
        return pl.BlockSpec(shape, idx)

    def _run(single_buffer_weights):
        call = pl.pallas_call(
            kernel,
            out_shape=jax.ShapeDtypeStruct((b_pad * t_p, cout_p), out_dtype),
            grid=(n_blk,),
            in_specs=[
                pl.BlockSpec((rows, cin_p), lambda g: (g, 0)),          # x (bf16)
                pl.BlockSpec((rows, 1), lambda g: (g, 0)),              # mask (f32)
                _wspec((cin_p, h_p), single_buffer_weights),            # w_in
                _wspec((1, h_p), single_buffer_weights),                # b_in
                _wspec((L, h_p, 3 * h_p), single_buffer_weights),       # [W0|W1|W2]
                _wspec((L, 1, h_p), single_buffer_weights),             # bd
                _wspec((L, h_p, h_p), single_buffer_weights),           # wp
                _wspec((L, 1, h_p), single_buffer_weights),             # bp
                _wspec((h_p, cout_p), single_buffer_weights),           # w_out
                _wspec((1, cout_p), single_buffer_weights),             # b_out
            ],
            out_specs=pl.BlockSpec((rows, cout_p), lambda g: (g, 0)),
            compiler_params=pltpu.CompilerParams(
                dimension_semantics=("parallel",),      # v7x: 2 TCs split the batch blocks
                vmem_limit_bytes=vmem_limit),
            cost_estimate=cost,
        )
        return call(x_pad, m_pad, w_in, b_in, wd, bd, wp, bp, w_out, b_out)

    try:
        y_flat = _run(True)
    except Exception:
        # TODO(synk): this jax version rejected pl.Buffered(1) single-buffered weights;
        # fall back to default double-buffering (costs VMEM only, same numerics).
        y_flat = _run(False)

    y = y_flat.reshape(b_pad, t_p, cout_p)
    return y[:B, :T, :out_dim]


# ------------------------- Deterministic params ----------------------------- #

def init_params(key, in_dim, hidden_dim, out_dim, num_layers, dilate):
    keys = jax.random.split(key, 2 + 4 * num_layers)
    k = iter(keys)
    scale = 0.1
    params = {
        "w_in": scale * jax.random.normal(next(k), (in_dim, hidden_dim), jnp.float32),
        "b_in": scale * jax.random.normal(next(k), (1, hidden_dim), jnp.float32),
        "layers": [],
    }
    for i in range(num_layers):
        d = 2 ** i if dilate else 1
        w3 = scale * jax.random.normal(next(k), (3, hidden_dim, hidden_dim), jnp.float32)
        bd = scale * jax.random.normal(next(k), (1, hidden_dim), jnp.float32)
        wp = scale * jax.random.normal(next(k), (hidden_dim, hidden_dim), jnp.float32)
        bp = scale * jax.random.normal(next(k), (1, hidden_dim), jnp.float32)
        params["layers"].append({
            "dilation": d,
            "w0": w3[0], "w1": w3[1], "w2": w3[2],
            "bd": bd, "wp": wp, "bp": bp,
        })
    kw, kb = jax.random.split(keys[-1])
    params["w_out"] = scale * jax.random.normal(kw, (hidden_dim, out_dim), jnp.float32)
    params["b_out"] = scale * jax.random.normal(kb, (1, out_dim), jnp.float32)
    return params


# --------------------------- Pure-JAX references ---------------------------- #

def ref_forward(params, x, m=None, matmul_dtype=None):
    """f32 reference; matmul_dtype=bf16 emulates the kernel's MXU operand casts."""
    def mm(a, b):
        if matmul_dtype is not None:
            a = a.astype(matmul_dtype)
            b = b.astype(matmul_dtype)
        return jnp.dot(a, b, preferred_element_type=jnp.float32)

    B, T, _ = x.shape
    mask = jnp.ones((B, T, 1), jnp.float32) if m is None else m.astype(jnp.float32)
    h = mm(x, params["w_in"]) + params["b_in"]
    for layer in params["layers"]:
        d = layer["dilation"]
        xp = jnp.pad(h, ((0, 0), (d, d), (0, 0)))
        conv = (mm(xp[:, 0:T], layer["w0"])
                + mm(xp[:, d:d + T], layer["w1"])
                + mm(xp[:, 2 * d:2 * d + T], layer["w2"])
                + layer["bd"])
        conv = jnp.maximum(conv, 0.0)
        out = mm(conv, layer["wp"]) + layer["bp"]
        h = (h + out) * mask
    return (mm(h, params["w_out"]) + params["b_out"]) * mask


# --------------------------------- Main ------------------------------------- #

if __name__ == "__main__":
    B, T = 2, 16
    in_dim, hidden_dim, out_dim = 8, 32, 6
    num_layers, dilate = 3, True

    root = jax.random.PRNGKey(0)
    kx, km, kp = jax.random.split(root, 3)

    x = jax.random.normal(kx, (B, T, in_dim), jnp.float32)
    # mask as the PyTorch forward expects (before its internal permute): (B, T, 1)
    m = (jax.random.uniform(km, (B, T, 1)) > 0.2).astype(jnp.float32)

    params = init_params(kp, in_dim, hidden_dim, out_dim, num_layers, dilate)

    y = jax.block_until_ready(single_stage_tcn_forward(params, x, m))

    # tight check vs a reference applying the same bf16-operand matmuls
    y_bf16_ref = ref_forward(params, x, m, matmul_dtype=jnp.bfloat16)
    np.testing.assert_allclose(np.asarray(y), np.asarray(y_bf16_ref), rtol=2e-3, atol=2e-3)

    # loose check vs the pure-f32 PyTorch-equivalent reference (bf16 MXU rounding)
    y_f32_ref = ref_forward(params, x, m)
    np.testing.assert_allclose(np.asarray(y), np.asarray(y_f32_ref), rtol=5e-2, atol=5e-2)

    assert y.shape == (B, T, out_dim)
    print("KERNEL_OK")
</pallas_src>

<mosaic_0001>
module attributes {stable_mosaic.version = 11 : i64} {
  func.func @_fused_tcn_kernel(%arg0: i32, %arg1: memref<16x128xbf16, #tpu.memory_space<vmem>>, %arg2: memref<16x1xf32, #tpu.memory_space<vmem>>, %arg3: memref<128x128xbf16, #tpu.memory_space<vmem>>, %arg4: memref<1x128xf32, #tpu.memory_space<vmem>>, %arg5: memref<3x128x384xbf16, #tpu.memory_space<vmem>>, %arg6: memref<3x1x128xf32, #tpu.memory_space<vmem>>, %arg7: memref<3x128x128xbf16, #tpu.memory_space<vmem>>, %arg8: memref<3x1x128xf32, #tpu.memory_space<vmem>>, %arg9: memref<128x128xbf16, #tpu.memory_space<vmem>>, %arg10: memref<1x128xf32, #tpu.memory_space<vmem>>, %arg11: memref<16x128xf32, #tpu.memory_space<vmem>>) attributes {dimension_semantics = [#tpu.dimension_semantics<parallel>], iteration_bounds = array<i64: 2>, scalar_prefetch = 0 : i64, scratch_operands = 0 : i64, tpu.core_type = #tpu.core_type<tc>, window_params = [{transform_indices = @transform_0, window_bounds = array<i64: 16, 128>}, {transform_indices = @transform_1, window_bounds = array<i64: 16, 1>}, {pipeline_mode = #tpu.pipeline_mode<synchronous>, transform_indices = @transform_2, window_bounds = array<i64: 128, 128>}, {pipeline_mode = #tpu.pipeline_mode<synchronous>, transform_indices = @transform_3, window_bounds = array<i64: 1, 128>}, {pipeline_mode = #tpu.pipeline_mode<synchronous>, transform_indices = @transform_4, window_bounds = array<i64: 3, 128, 384>}, {pipeline_mode = #tpu.pipeline_mode<synchronous>, transform_indices = @transform_5, window_bounds = array<i64: 3, 1, 128>}, {pipeline_mode = #tpu.pipeline_mode<synchronous>, transform_indices = @transform_6, window_bounds = array<i64: 3, 128, 128>}, {pipeline_mode = #tpu.pipeline_mode<synchronous>, transform_indices = @transform_7, window_bounds = array<i64: 3, 1, 128>}, {pipeline_mode = #tpu.pipeline_mode<synchronous>, transform_indices = @transform_8, window_bounds = array<i64: 128, 128>}, {pipeline_mode = #tpu.pipeline_mode<synchronous>, transform_indices = @transform_9, window_bounds = array<i64: 1, 128>}, {transform_indices = @transform_10, window_bounds = array<i64: 16, 128>}]} {
    %0 = tpu.iota {dimensions = array<i32: 0>} : vector<16x1xi32>
    %c16_i32 = arith.constant 16 : i32
    %c0_i32 = arith.constant 0 : i32
    %1 = arith.cmpi eq, %c16_i32, %c0_i32 : i32
    %c1_i32 = arith.constant 1 : i32
    %2 = arith.select %1, %c1_i32, %c16_i32 : i32
    %3 = vector.broadcast %2 : i32 to vector<16x1xi32>
    %4 = arith.remsi %0, %3 : vector<16x1xi32>
    %c0_i32_0 = arith.constant 0 : i32
    %5 = vector.broadcast %c0_i32_0 : i32 to vector<16x1xi32>
    %6 = arith.cmpi ne, %4, %5 : vector<16x1xi32>
    %c0_i32_1 = arith.constant 0 : i32
    %7 = vector.broadcast %c0_i32_1 : i32 to vector<16x1xi32>
    %8 = arith.cmpi slt, %4, %7 : vector<16x1xi32>
    %c0_i32_2 = arith.constant 0 : i32
    %9 = arith.cmpi slt, %2, %c0_i32_2 : i32
    %10 = vector.broadcast %9 : i1 to vector<16x1xi1>
    %11 = vector.broadcast %10 : vector<16x1xi1> to vector<16x1xi1>
    %12 = arith.xori %8, %11 : vector<16x1xi1>
    %13 = arith.andi %12, %6 : vector<16x1xi1>
    %14 = vector.broadcast %2 : i32 to vector<16x1xi32>
    %15 = arith.addi %4, %14 : vector<16x1xi32>
    %16 = arith.select %13, %15, %4 : vector<16x1xi1>, vector<16x1xi32>
    %c0 = arith.constant 0 : index
    %c0_3 = arith.constant 0 : index
    %17 = vector.load %arg2[%c0, %c0_3] : memref<16x1xf32, #tpu.memory_space<vmem>>, vector<16x1xf32>
    %c0_4 = arith.constant 0 : index
    %c0_5 = arith.constant 0 : index
    %18 = vector.load %arg1[%c0_4, %c0_5] : memref<16x128xbf16, #tpu.memory_space<vmem>>, vector<16x128xbf16>
    %c0_6 = arith.constant 0 : index
    %c0_7 = arith.constant 0 : index
    %19 = vector.load %arg3[%c0_6, %c0_7] : memref<128x128xbf16, #tpu.memory_space<vmem>>, vector<128x128xbf16>
    %cst = arith.constant dense<0.000000e+00> : vector<16x128xf32>
    %20 = tpu.matmul %18, %19, %cst {dimension_numbers = #tpu.dot_dimension_numbers<[1], [0], [0], [1], [0, 0, 1, 1], [], []>} : vector<16x128xbf16>, vector<128x128xbf16>, vector<16x128xf32> -> vector<16x128xf32>
    %c0_8 = arith.constant 0 : index
    %c0_9 = arith.constant 0 : index
    %21 = vector.load %arg4[%c0_8, %c0_9] : memref<1x128xf32, #tpu.memory_space<vmem>>, vector<1x128xf32>
    %22 = vector.broadcast %21 : vector<1x128xf32> to vector<16x128xf32>
    %23 = arith.addf %20, %22 : vector<16x128xf32>
    %c16_i32_10 = arith.constant 16 : i32
    %24 = vector.broadcast %c16_i32_10 : i32 to vector<16x1xi32>
    %25 = arith.cmpi slt, %16, %24 : vector<16x1xi32>
    %cst_11 = arith.constant 0.000000e+00 : f32
    %26 = vector.shape_cast %25 : vector<16x1xi1> to vector<16x1xi1>
    %27 = vector.broadcast %26 : vector<16x1xi1> to vector<16x128xi1>
    %28 = vector.broadcast %cst_11 : f32 to vector<16x128xf32>
    %29 = arith.select %27, %23, %28 : vector<16x128xi1>, vector<16x128xf32>
    %30 = vector.shape_cast %17 : vector<16x1xf32> to vector<16x1xf32>
    %31 = vector.broadcast %30 : vector<16x1xf32> to vector<16x128xf32>
    %32 = arith.truncf %29 : vector<16x128xf32> to vector<16x128xbf16>
    %c0_12 = arith.constant 0 : index
    %c0_13 = arith.constant 0 : index
    %c0_14 = arith.constant 0 : index
    %33 = vector.load %arg5[%c0_12, %c0_13, %c0_14] : memref<3x128x384xbf16, #tpu.memory_space<vmem>>, vector<1x128x384xbf16>
    %34 = vector.shape_cast %33 : vector<1x128x384xbf16> to vector<128x384xbf16>
    %cst_15 = arith.constant dense<0.000000e+00> : vector<16x384xf32>
    %35 = tpu.matmul %32, %34, %cst_15 {dimension_numbers = #tpu.dot_dimension_numbers<[1], [0], [0], [1], [0, 0, 1, 1], [], []>} : vector<16x128xbf16>, vector<128x384xbf16>, vector<16x384xf32> -> vector<16x384xf32>
    %36 = vector.extract_strided_slice %35 {offsets = [0, 128], sizes = [16, 128], strides = [1, 1]} : vector<16x384xf32> to vector<16x128xf32>
    %37 = vector.extract_strided_slice %35 {offsets = [0, 0], sizes = [16, 128], strides = [1, 1]} : vector<16x384xf32> to vector<16x128xf32>
    %c1_i32_16 = arith.constant 1 : i32
    %38 = tpu.dynamic_rotate %37 by %c1_i32_16 dim 0 : vector<16x128xf32>, i32 -> vector<16x128xf32>
    %39 = vector.extract_strided_slice %35 {offsets = [0, 256], sizes = [16, 128], strides = [1, 1]} : vector<16x384xf32> to vector<16x128xf32>
    %c15_i32 = arith.constant 15 : i32
    %40 = tpu.dynamic_rotate %39 by %c15_i32 dim 0 : vector<16x128xf32>, i32 -> vector<16x128xf32>
    %c1_i32_17 = arith.constant 1 : i32
    %41 = vector.broadcast %c1_i32_17 : i32 to vector<16x1xi32>
    %42 = arith.cmpi sge, %16, %41 : vector<16x1xi32>
    %cst_18 = arith.constant 0.000000e+00 : f32
    %43 = vector.shape_cast %42 : vector<16x1xi1> to vector<16x1xi1>
    %44 = vector.broadcast %43 : vector<16x1xi1> to vector<16x128xi1>
    %45 = vector.broadcast %cst_18 : f32 to vector<16x128xf32>
    %46 = arith.select %44, %38, %45 : vector<16x128xi1>, vector<16x128xf32>
    %47 = arith.addf %46, %36 : vector<16x128xf32>
    %c15_i32_19 = arith.constant 15 : i32
    %48 = vector.broadcast %c15_i32_19 : i32 to vector<16x1xi32>
    %49 = arith.cmpi slt, %16, %48 : vector<16x1xi32>
    %cst_20 = arith.constant 0.000000e+00 : f32
    %50 = vector.shape_cast %49 : vector<16x1xi1> to vector<16x1xi1>
    %51 = vector.broadcast %50 : vector<16x1xi1> to vector<16x128xi1>
    %52 = vector.broadcast %cst_20 : f32 to vector<16x128xf32>
    %53 = arith.select %51, %40, %52 : vector<16x128xi1>, vector<16x128xf32>
    %54 = arith.addf %47, %53 : vector<16x128xf32>
    %c0_21 = arith.constant 0 : index
    %c0_22 = arith.constant 0 : index
    %c0_23 = arith.constant 0 : index
    %55 = vector.load %arg6[%c0_21, %c0_22, %c0_23] : memref<3x1x128xf32, #tpu.memory_space<vmem>>, vector<1x1x128xf32>
    %56 = vector.shape_cast %55 : vector<1x1x128xf32> to vector<1x128xf32>
    %57 = vector.broadcast %56 : vector<1x128xf32> to vector<16x128xf32>
    %58 = arith.addf %54, %57 : vector<16x128xf32>
    %cst_24 = arith.constant 0.000000e+00 : f32
    %59 = vector.broadcast %cst_24 : f32 to vector<16x128xf32>
    %60 = arith.maximumf %58, %59 : vector<16x128xf32>
    %61 = arith.truncf %60 : vector<16x128xf32> to vector<16x128xbf16>
    %c0_25 = arith.constant 0 : index
    %c0_26 = arith.constant 0 : index
    %c0_27 = arith.constant 0 : index
    %62 = vector.load %arg7[%c0_25, %c0_26, %c0_27] : memref<3x128x128xbf16, #tpu.memory_space<vmem>>, vector<1x128x128xbf16>
    %63 = vector.shape_cast %62 : vector<1x128x128xbf16> to vector<128x128xbf16>
    %cst_28 = arith.constant dense<0.000000e+00> : vector<16x128xf32>
    %64 = tpu.matmul %61, %63, %cst_28 {dimension_numbers = #tpu.dot_dimension_numbers<[1], [0], [0], [1], [0, 0, 1, 1], [], []>} : vector<16x128xbf16>, vector<128x128xbf16>, vector<16x128xf32> -> vector<16x128xf32>
    %c0_29 = arith.constant 0 : index
    %c0_30 = arith.constant 0 : index
    %c0_31 = arith.constant 0 : index
    %65 = vector.load %arg8[%c0_29, %c0_30, %c0_31] : memref<3x1x128xf32, #tpu.memory_space<vmem>>, vector<1x1x128xf32>
    %66 = vector.shape_cast %65 : vector<1x1x128xf32> to vector<1x128xf32>
    %67 = vector.broadcast %66 : vector<1x128xf32> to vector<16x128xf32>
    %68 = arith.addf %64, %67 : vector<16x128xf32>
    %69 = arith.addf %29, %68 : vector<16x128xf32>
    %70 = arith.mulf %69, %31 : vector<16x128xf32>
    %71 = arith.truncf %70 : vector<16x128xf32> to vector<16x128xbf16>
    %c1 = arith.constant 1 : index
    %c0_32 = arith.constant 0 : index
    %c0_33 = arith.constant 0 : index
    %72 = vector.load %arg5[%c1, %c0_32, %c0_33] : memref<3x128x384xbf16, #tpu.memory_space<vmem>>, vector<1x128x384xbf16>
    %73 = vector.shape_cast %72 : vector<1x128x384xbf16> to vector<128x384xbf16>
    %cst_34 = arith.constant dense<0.000000e+00> : vector<16x384xf32>
    %74 = tpu.matmul %71, %73, %cst_34 {dimension_numbers = #tpu.dot_dimension_numbers<[1], [0], [0], [1], [0, 0, 1, 1], [], []>} : vector<16x128xbf16>, vector<128x384xbf16>, vector<16x384xf32> -> vector<16x384xf32>
    %75 = vector.extract_strided_slice %74 {offsets = [0, 128], sizes = [16, 128], strides = [1, 1]} : vector<16x384xf32> to vector<16x128xf32>
    %76 = vector.extract_strided_slice %74 {offsets = [0, 0], sizes = [16, 128], strides = [1, 1]} : vector<16x384xf32> to vector<16x128xf32>
    %c2_i32 = arith.constant 2 : i32
    %77 = tpu.dynamic_rotate %76 by %c2_i32 dim 0 : vector<16x128xf32>, i32 -> vector<16x128xf32>
    %78 = vector.extract_strided_slice %74 {offsets = [0, 256], sizes = [16, 128], strides = [1, 1]} : vector<16x384xf32> to vector<16x128xf32>
    %c14_i32 = arith.constant 14 : i32
    %79 = tpu.dynamic_rotate %78 by %c14_i32 dim 0 : vector<16x128xf32>, i32 -> vector<16x128xf32>
    %c2_i32_35 = arith.constant 2 : i32
    %80 = vector.broadcast %c2_i32_35 : i32 to vector<16x1xi32>
    %81 = arith.cmpi sge, %16, %80 : vector<16x1xi32>
    %cst_36 = arith.constant 0.000000e+00 : f32
    %82 = vector.shape_cast %81 : vector<16x1xi1> to vector<16x1xi1>
    %83 = vector.broadcast %82 : vector<16x1xi1> to vector<16x128xi1>
    %84 = vector.broadcast %cst_36 : f32 to vector<16x128xf32>
    %85 = arith.select %83, %77, %84 : vector<16x128xi1>, vector<16x128xf32>
    %86 = arith.addf %85, %75 : vector<16x128xf32>
    %c14_i32_37 = arith.constant 14 : i32
    %87 = vector.broadcast %c14_i32_37 : i32 to vector<16x1xi32>
    %88 = arith.cmpi slt, %16, %87 : vector<16x1xi32>
    %cst_38 = arith.constant 0.000000e+00 : f32
    %89 = vector.shape_cast %88 : vector<16x1xi1> to vector<16x1xi1>
    %90 = vector.broadcast %89 : vector<16x1xi1> to vector<16x128xi1>
    %91 = vector.broadcast %cst_38 : f32 to vector<16x128xf32>
    %92 = arith.select %90, %79, %91 : vector<16x128xi1>, vector<16x128xf32>
    %93 = arith.addf %86, %92 : vector<16x128xf32>
    %c1_39 = arith.constant 1 : index
    %c0_40 = arith.constant 0 : index
    %c0_41 = arith.constant 0 : index
    %94 = vector.load %arg6[%c1_39, %c0_40, %c0_41] : memref<3x1x128xf32, #tpu.memory_space<vmem>>, vector<1x1x128xf32>
    %95 = vector.shape_cast %94 : vector<1x1x128xf32> to vector<1x128xf32>
    %96 = vector.broadcast %95 : vector<1x128xf32> to vector<16x128xf32>
    %97 = arith.addf %93, %96 : vector<16x128xf32>
    %cst_42 = arith.constant 0.000000e+00 : f32
    %98 = vector.broadcast %cst_42 : f32 to vector<16x128xf32>
    %99 = arith.maximumf %97, %98 : vector<16x128xf32>
    %100 = arith.truncf %99 : vector<16x128xf32> to vector<16x128xbf16>
    %c1_43 = arith.constant 1 : index
    %c0_44 = arith.constant 0 : index
    %c0_45 = arith.constant 0 : index
    %101 = vector.load %arg7[%c1_43, %c0_44, %c0_45] : memref<3x128x128xbf16, #tpu.memory_space<vmem>>, vector<1x128x128xbf16>
    %102 = vector.shape_cast %101 : vector<1x128x128xbf16> to vector<128x128xbf16>
    %cst_46 = arith.constant dense<0.000000e+00> : vector<16x128xf32>
    %103 = tpu.matmul %100, %102, %cst_46 {dimension_numbers = #tpu.dot_dimension_numbers<[1], [0], [0], [1], [0, 0, 1, 1], [], []>} : vector<16x128xbf16>, vector<128x128xbf16>, vector<16x128xf32> -> vector<16x128xf32>
    %c1_47 = arith.constant 1 : index
    %c0_48 = arith.constant 0 : index
    %c0_49 = arith.constant 0 : index
    %104 = vector.load %arg8[%c1_47, %c0_48, %c0_49] : memref<3x1x128xf32, #tpu.memory_space<vmem>>, vector<1x1x128xf32>
    %105 = vector.shape_cast %104 : vector<1x1x128xf32> to vector<1x128xf32>
    %106 = vector.broadcast %105 : vector<1x128xf32> to vector<16x128xf32>
    %107 = arith.addf %103, %106 : vector<16x128xf32>
    %108 = arith.addf %70, %107 : vector<16x128xf32>
    %109 = arith.mulf %108, %31 : vector<16x128xf32>
    %110 = arith.truncf %109 : vector<16x128xf32> to vector<16x128xbf16>
    %c2 = arith.constant 2 : index
    %c0_50 = arith.constant 0 : index
    %c0_51 = arith.constant 0 : index
    %111 = vector.load %arg5[%c2, %c0_50, %c0_51] : memref<3x128x384xbf16, #tpu.memory_space<vmem>>, vector<1x128x384xbf16>
    %112 = vector.shape_cast %111 : vector<1x128x384xbf16> to vector<128x384xbf16>
    %cst_52 = arith.constant dense<0.000000e+00> : vector<16x384xf32>
    %113 = tpu.matmul %110, %112, %cst_52 {dimension_numbers = #tpu.dot_dimension_numbers<[1], [0], [0], [1], [0, 0, 1, 1], [], []>} : vector<16x128xbf16>, vector<128x384xbf16>, vector<16x384xf32> -> vector<16x384xf32>
    %114 = vector.extract_strided_slice %113 {offsets = [0, 128], sizes = [16, 128], strides = [1, 1]} : vector<16x384xf32> to vector<16x128xf32>
    %115 = vector.extract_strided_slice %113 {offsets = [0, 0], sizes = [16, 128], strides = [1, 1]} : vector<16x384xf32> to vector<16x128xf32>
    %c4_i32 = arith.constant 4 : i32
    %116 = tpu.dynamic_rotate %115 by %c4_i32 dim 0 : vector<16x128xf32>, i32 -> vector<16x128xf32>
    %117 = vector.extract_strided_slice %113 {offsets = [0, 256], sizes = [16, 128], strides = [1, 1]} : vector<16x384xf32> to vector<16x128xf32>
    %c12_i32 = arith.constant 12 : i32
    %118 = tpu.dynamic_rotate %117 by %c12_i32 dim 0 : vector<16x128xf32>, i32 -> vector<16x128xf32>
    %c4_i32_53 = arith.constant 4 : i32
    %119 = vector.broadcast %c4_i32_53 : i32 to vector<16x1xi32>
    %120 = arith.cmpi sge, %16, %119 : vector<16x1xi32>
    %cst_54 = arith.constant 0.000000e+00 : f32
    %121 = vector.shape_cast %120 : vector<16x1xi1> to vector<16x1xi1>
    %122 = vector.broadcast %121 : vector<16x1xi1> to vector<16x128xi1>
    %123 = vector.broadcast %cst_54 : f32 to vector<16x128xf32>
    %124 = arith.select %122, %116, %123 : vector<16x128xi1>, vector<16x128xf32>
    %125 = arith.addf %124, %114 : vector<16x128xf32>
    %c12_i32_55 = arith.constant 12 : i32
    %126 = vector.broadcast %c12_i32_55 : i32 to vector<16x1xi32>
    %127 = arith.cmpi slt, %16, %126 : vector<16x1xi32>
    %cst_56 = arith.constant 0.000000e+00 : f32
    %128 = vector.shape_cast %127 : vector<16x1xi1> to vector<16x1xi1>
    %129 = vector.broadcast %128 : vector<16x1xi1> to vector<16x128xi1>
    %130 = vector.broadcast %cst_56 : f32 to vector<16x128xf32>
    %131 = arith.select %129, %118, %130 : vector<16x128xi1>, vector<16x128xf32>
    %132 = arith.addf %125, %131 : vector<16x128xf32>
    %c2_57 = arith.constant 2 : index
    %c0_58 = arith.constant 0 : index
    %c0_59 = arith.constant 0 : index
    %133 = vector.load %arg6[%c2_57, %c0_58, %c0_59] : memref<3x1x128xf32, #tpu.memory_space<vmem>>, vector<1x1x128xf32>
    %134 = vector.shape_cast %133 : vector<1x1x128xf32> to vector<1x128xf32>
    %135 = vector.broadcast %134 : vector<1x128xf32> to vector<16x128xf32>
    %136 = arith.addf %132, %135 : vector<16x128xf32>
    %cst_60 = arith.constant 0.000000e+00 : f32
    %137 = vector.broadcast %cst_60 : f32 to vector<16x128xf32>
    %138 = arith.maximumf %136, %137 : vector<16x128xf32>
    %139 = arith.truncf %138 : vector<16x128xf32> to vector<16x128xbf16>
    %c2_61 = arith.constant 2 : index
    %c0_62 = arith.constant 0 : index
    %c0_63 = arith.constant 0 : index
    %140 = vector.load %arg7[%c2_61, %c0_62, %c0_63] : memref<3x128x128xbf16, #tpu.memory_space<vmem>>, vector<1x128x128xbf16>
    %141 = vector.shape_cast %140 : vector<1x128x128xbf16> to vector<128x128xbf16>
    %cst_64 = arith.constant dense<0.000000e+00> : vector<16x128xf32>
    %142 = tpu.matmul %139, %141, %cst_64 {dimension_numbers = #tpu.dot_dimension_numbers<[1], [0], [0], [1], [0, 0, 1, 1], [], []>} : vector<16x128xbf16>, vector<128x128xbf16>, vector<16x128xf32> -> vector<16x128xf32>
    %c2_65 = arith.constant 2 : index
    %c0_66 = arith.constant 0 : index
    %c0_67 = arith.constant 0 : index
    %143 = vector.load %arg8[%c2_65, %c0_66, %c0_67] : memref<3x1x128xf32, #tpu.memory_space<vmem>>, vector<1x1x128xf32>
    %144 = vector.shape_cast %143 : vector<1x1x128xf32> to vector<1x128xf32>
    %145 = vector.broadcast %144 : vector<1x128xf32> to vector<16x128xf32>
    %146 = arith.addf %142, %145 : vector<16x128xf32>
    %147 = arith.addf %109, %146 : vector<16x128xf32>
    %148 = arith.mulf %147, %31 : vector<16x128xf32>
    %149 = arith.truncf %148 : vector<16x128xf32> to vector<16x128xbf16>
    %c0_68 = arith.constant 0 : index
    %c0_69 = arith.constant 0 : index
    %150 = vector.load %arg9[%c0_68, %c0_69] : memref<128x128xbf16, #tpu.memory_space<vmem>>, vector<128x128xbf16>
    %cst_70 = arith.constant dense<0.000000e+00> : vector<16x128xf32>
    %151 = tpu.matmul %149, %150, %cst_70 {dimension_numbers = #tpu.dot_dimension_numbers<[1], [0], [0], [1], [0, 0, 1, 1], [], []>} : vector<16x128xbf16>, vector<128x128xbf16>, vector<16x128xf32> -> vector<16x128xf32>
    %c0_71 = arith.constant 0 : index
    %c0_72 = arith.constant 0 : index
    %152 = vector.load %arg10[%c0_71, %c0_72] : memref<1x128xf32, #tpu.memory_space<vmem>>, vector<1x128xf32>
    %153 = vector.broadcast %152 : vector<1x128xf32> to vector<16x128xf32>
    %154 = arith.addf %151, %153 : vector<16x128xf32>
    %155 = vector.broadcast %17 : vector<16x1xf32> to vector<16x128xf32>
    %156 = arith.mulf %154, %155 : vector<16x128xf32>
    %c0_73 = arith.constant 0 : index
    %c0_74 = arith.constant 0 : index
    %157 = vector.load %arg11[%c0_73, %c0_74] : memref<16x128xf32, #tpu.memory_space<vmem>>, vector<16x128xf32>
    tpu.vector_store %arg11[%c0_73, %c0_74], %156 {strides = array<i32>} : memref<16x128xf32, #tpu.memory_space<vmem>>, vector<16x128xf32>,
    return
  }
  func.func @transform_0(%arg0: i32) -> (i32, i32) {
    %c0_i32 = arith.constant 0 : i32
    %c0_i32_0 = arith.constant 0 : i32
    return %arg0, %c0_i32 : i32, i32
  }
  func.func @transform_1(%arg0: i32) -> (i32, i32) {
    %c0_i32 = arith.constant 0 : i32
    %c0_i32_0 = arith.constant 0 : i32
    return %arg0, %c0_i32 : i32, i32
  }
  func.func @transform_2(%arg0: i32) -> (i32, i32) {
    %c0_i32 = arith.constant 0 : i32
    %c0_i32_0 = arith.constant 0 : i32
    %c0_i32_1 = arith.constant 0 : i32
    return %c0_i32, %c0_i32_0 : i32, i32
  }
  func.func @transform_3(%arg0: i32) -> (i32, i32) {
    %c0_i32 = arith.constant 0 : i32
    %c0_i32_0 = arith.constant 0 : i32
    %c0_i32_1 = arith.constant 0 : i32
    return %c0_i32, %c0_i32_0 : i32, i32
  }
  func.func @transform_4(%arg0: i32) -> (i32, i32, i32) {
    %c0_i32 = arith.constant 0 : i32
    %c0_i32_0 = arith.constant 0 : i32
    %c0_i32_1 = arith.constant 0 : i32
    %c0_i32_2 = arith.constant 0 : i32
    return %c0_i32, %c0_i32_0, %c0_i32_1 : i32, i32, i32
  }
  func.func @transform_5(%arg0: i32) -> (i32, i32, i32) {
    %c0_i32 = arith.constant 0 : i32
    %c0_i32_0 = arith.constant 0 : i32
    %c0_i32_1 = arith.constant 0 : i32
    %c0_i32_2 = arith.constant 0 : i32
    return %c0_i32, %c0_i32_0, %c0_i32_1 : i32, i32, i32
  }
  func.func @transform_6(%arg0: i32) -> (i32, i32, i32) {
    %c0_i32 = arith.constant 0 : i32
    %c0_i32_0 = arith.constant 0 : i32
    %c0_i32_1 = arith.constant 0 : i32
    %c0_i32_2 = arith.constant 0 : i32
    return %c0_i32, %c0_i32_0, %c0_i32_1 : i32, i32, i32
  }
  func.func @transform_7(%arg0: i32) -> (i32, i32, i32) {
    %c0_i32 = arith.constant 0 : i32
    %c0_i32_0 = arith.constant 0 : i32
    %c0_i32_1 = arith.constant 0 : i32
    %c0_i32_2 = arith.constant 0 : i32
    return %c0_i32, %c0_i32_0, %c0_i32_1 : i32, i32, i32
  }
  func.func @transform_8(%arg0: i32) -> (i32, i32) {
    %c0_i32 = arith.constant 0 : i32
    %c0_i32_0 = arith.constant 0 : i32
    %c0_i32_1 = arith.constant 0 : i32
    return %c0_i32, %c0_i32_0 : i32, i32
  }
  func.func @transform_9(%arg0: i32) -> (i32, i32) {
    %c0_i32 = arith.constant 0 : i32
    %c0_i32_0 = arith.constant 0 : i32
    %c0_i32_1 = arith.constant 0 : i32
    return %c0_i32, %c0_i32_0 : i32, i32
  }
  func.func @transform_10(%arg0: i32) -> (i32, i32) {
    %c0_i32 = arith.constant 0 : i32
    %c0_i32_0 = arith.constant 0 : i32
    return %arg0, %c0_i32 : i32, i32
  }
}

module attributes {stable_mosaic.version = 11 : i64} {
  func.func @_fused_tcn_kernel(%arg0: i32, %arg1: memref<16x128xbf16, #tpu.memory_space<vmem>>, %arg2: memref<16x1xf32, #tpu.memory_space<vmem>>, %arg3: memref<128x128xbf16, #tpu.memory_space<vmem>>, %arg4: memref<1x128xf32, #tpu.memory_space<vmem>>, %arg5: memref<3x128x384xbf16, #tpu.memory_space<vmem>>, %arg6: memref<3x1x128xf32, #tpu.memory_space<vmem>>, %arg7: memref<3x128x128xbf16, #tpu.memory_space<vmem>>, %arg8: memref<3x1x128xf32, #tpu.memory_space<vmem>>, %arg9: memref<128x128xbf16, #tpu.memory_space<vmem>>, %arg10: memref<1x128xf32, #tpu.memory_space<vmem>>, %arg11: memref<16x128xf32, #tpu.memory_space<vmem>>) attributes {dimension_semantics = [#tpu.dimension_semantics<parallel>], iteration_bounds = array<i64: 2>, scalar_prefetch = 0 : i64, scratch_operands = 0 : i64, tpu.core_type = #tpu.core_type<tc>, window_params = [{transform_indices = @transform_0, window_bounds = array<i64: 16, 128>}, {transform_indices = @transform_1, window_bounds = array<i64: 16, 1>}, {pipeline_mode = #tpu.pipeline_mode<synchronous>, transform_indices = @transform_2, window_bounds = array<i64: 128, 128>}, {pipeline_mode = #tpu.pipeline_mode<synchronous>, transform_indices = @transform_3, window_bounds = array<i64: 1, 128>}, {pipeline_mode = #tpu.pipeline_mode<synchronous>, transform_indices = @transform_4, window_bounds = array<i64: 3, 128, 384>}, {pipeline_mode = #tpu.pipeline_mode<synchronous>, transform_indices = @transform_5, window_bounds = array<i64: 3, 1, 128>}, {pipeline_mode = #tpu.pipeline_mode<synchronous>, transform_indices = @transform_6, window_bounds = array<i64: 3, 128, 128>}, {pipeline_mode = #tpu.pipeline_mode<synchronous>, transform_indices = @transform_7, window_bounds = array<i64: 3, 1, 128>}, {pipeline_mode = #tpu.pipeline_mode<synchronous>, transform_indices = @transform_8, window_bounds = array<i64: 128, 128>}, {pipeline_mode = #tpu.pipeline_mode<synchronous>, transform_indices = @transform_9, window_bounds = array<i64: 1, 128>}, {transform_indices = @transform_10, window_bounds = array<i64: 16, 128>}]} {
    %0 = tpu.iota {dimensions = array<i32: 0>} : vector<16x1xi32>
    %c16_i32 = arith.constant 16 : i32
    %c0_i32 = arith.constant 0 : i32
    %1 = arith.cmpi eq, %c16_i32, %c0_i32 : i32
    %c1_i32 = arith.constant 1 : i32
    %2 = arith.select %1, %c1_i32, %c16_i32 : i32
    %3 = vector.broadcast %2 : i32 to vector<16x1xi32>
    %4 = arith.remsi %0, %3 : vector<16x1xi32>
    %c0_i32_0 = arith.constant 0 : i32
    %5 = vector.broadcast %c0_i32_0 : i32 to vector<16x1xi32>
    %6 = arith.cmpi ne, %4, %5 : vector<16x1xi32>
    %c0_i32_1 = arith.constant 0 : i32
    %7 = vector.broadcast %c0_i32_1 : i32 to vector<16x1xi32>
    %8 = arith.cmpi slt, %4, %7 : vector<16x1xi32>
    %c0_i32_2 = arith.constant 0 : i32
    %9 = arith.cmpi slt, %2, %c0_i32_2 : i32
    %10 = vector.broadcast %9 : i1 to vector<16x1xi1>
    %11 = vector.broadcast %10 : vector<16x1xi1> to vector<16x1xi1>
    %12 = arith.xori %8, %11 : vector<16x1xi1>
    %13 = arith.andi %12, %6 : vector<16x1xi1>
    %14 = vector.broadcast %2 : i32 to vector<16x1xi32>
    %15 = arith.addi %4, %14 : vector<16x1xi32>
    %16 = arith.select %13, %15, %4 : vector<16x1xi1>, vector<16x1xi32>
    %c0 = arith.constant 0 : index
    %c0_3 = arith.constant 0 : index
    %17 = vector.load %arg2[%c0, %c0_3] : memref<16x1xf32, #tpu.memory_space<vmem>>, vector<16x1xf32>
    %c0_4 = arith.constant 0 : index
    %c0_5 = arith.constant 0 : index
    %18 = vector.load %arg1[%c0_4, %c0_5] : memref<16x128xbf16, #tpu.memory_space<vmem>>, vector<16x128xbf16>
    %c0_6 = arith.constant 0 : index
    %c0_7 = arith.constant 0 : index
    %19 = vector.load %arg3[%c0_6, %c0_7] : memref<128x128xbf16, #tpu.memory_space<vmem>>, vector<128x128xbf16>
    %cst = arith.constant dense<0.000000e+00> : vector<16x128xf32>
    %20 = tpu.matmul %18, %19, %cst {dimension_numbers = #tpu.dot_dimension_numbers<[1], [0], [0], [1], [0, 0, 1, 1], [], []>} : vector<16x128xbf16>, vector<128x128xbf16>, vector<16x128xf32> -> vector<16x128xf32>
    %c0_8 = arith.constant 0 : index
    %c0_9 = arith.constant 0 : index
    %21 = vector.load %arg4[%c0_8, %c0_9] : memref<1x128xf32, #tpu.memory_space<vmem>>, vector<1x128xf32>
    %22 = vector.broadcast %21 : vector<1x128xf32> to vector<16x128xf32>
    %23 = arith.addf %20, %22 : vector<16x128xf32>
    %c16_i32_10 = arith.constant 16 : i32
    %24 = vector.broadcast %c16_i32_10 : i32 to vector<16x1xi32>
    %25 = arith.cmpi slt, %16, %24 : vector<16x1xi32>
    %cst_11 = arith.constant 0.000000e+00 : f32
    %26 = vector.shape_cast %25 : vector<16x1xi1> to vector<16x1xi1>
    %27 = vector.broadcast %26 : vector<16x1xi1> to vector<16x128xi1>
    %28 = vector.broadcast %cst_11 : f32 to vector<16x128xf32>
    %29 = arith.select %27, %23, %28 : vector<16x128xi1>, vector<16x128xf32>
    %30 = vector.shape_cast %17 : vector<16x1xf32> to vector<16x1xf32>
    %31 = vector.broadcast %30 : vector<16x1xf32> to vector<16x128xf32>
    %32 = arith.truncf %29 : vector<16x128xf32> to vector<16x128xbf16>
    %c0_12 = arith.constant 0 : index
    %c0_13 = arith.constant 0 : index
    %c0_14 = arith.constant 0 : index
    %33 = vector.load %arg5[%c0_12, %c0_13, %c0_14] : memref<3x128x384xbf16, #tpu.memory_space<vmem>>, vector<1x128x384xbf16>
    %34 = vector.shape_cast %33 : vector<1x128x384xbf16> to vector<128x384xbf16>
    %cst_15 = arith.constant dense<0.000000e+00> : vector<16x384xf32>
    %35 = tpu.matmul %32, %34, %cst_15 {dimension_numbers = #tpu.dot_dimension_numbers<[1], [0], [0], [1], [0, 0, 1, 1], [], []>} : vector<16x128xbf16>, vector<128x384xbf16>, vector<16x384xf32> -> vector<16x384xf32>
    %36 = vector.extract_strided_slice %35 {offsets = [0, 128], sizes = [16, 128], strides = [1, 1]} : vector<16x384xf32> to vector<16x128xf32>
    %37 = vector.extract_strided_slice %35 {offsets = [0, 0], sizes = [16, 128], strides = [1, 1]} : vector<16x384xf32> to vector<16x128xf32>
    %c1_i32_16 = arith.constant 1 : i32
    %38 = tpu.dynamic_rotate %37 by %c1_i32_16 dim 0 : vector<16x128xf32>, i32 -> vector<16x128xf32>
    %39 = vector.extract_strided_slice %35 {offsets = [0, 256], sizes = [16, 128], strides = [1, 1]} : vector<16x384xf32> to vector<16x128xf32>
    %c15_i32 = arith.constant 15 : i32
    %40 = tpu.dynamic_rotate %39 by %c15_i32 dim 0 : vector<16x128xf32>, i32 -> vector<16x128xf32>
    %c1_i32_17 = arith.constant 1 : i32
    %41 = vector.broadcast %c1_i32_17 : i32 to vector<16x1xi32>
    %42 = arith.cmpi sge, %16, %41 : vector<16x1xi32>
    %cst_18 = arith.constant 0.000000e+00 : f32
    %43 = vector.shape_cast %42 : vector<16x1xi1> to vector<16x1xi1>
    %44 = vector.broadcast %43 : vector<16x1xi1> to vector<16x128xi1>
    %45 = vector.broadcast %cst_18 : f32 to vector<16x128xf32>
    %46 = arith.select %44, %38, %45 : vector<16x128xi1>, vector<16x128xf32>
    %47 = arith.addf %46, %36 : vector<16x128xf32>
    %c15_i32_19 = arith.constant 15 : i32
    %48 = vector.broadcast %c15_i32_19 : i32 to vector<16x1xi32>
    %49 = arith.cmpi slt, %16, %48 : vector<16x1xi32>
    %cst_20 = arith.constant 0.000000e+00 : f32
    %50 = vector.shape_cast %49 : vector<16x1xi1> to vector<16x1xi1>
    %51 = vector.broadcast %50 : vector<16x1xi1> to vector<16x128xi1>
    %52 = vector.broadcast %cst_20 : f32 to vector<16x128xf32>
    %53 = arith.select %51, %40, %52 : vector<16x128xi1>, vector<16x128xf32>
    %54 = arith.addf %47, %53 : vector<16x128xf32>
    %c0_21 = arith.constant 0 : index
    %c0_22 = arith.constant 0 : index
    %c0_23 = arith.constant 0 : index
    %55 = vector.load %arg6[%c0_21, %c0_22, %c0_23] : memref<3x1x128xf32, #tpu.memory_space<vmem>>, vector<1x1x128xf32>
    %56 = vector.shape_cast %55 : vector<1x1x128xf32> to vector<1x128xf32>
    %57 = vector.broadcast %56 : vector<1x128xf32> to vector<16x128xf32>
    %58 = arith.addf %54, %57 : vector<16x128xf32>
    %cst_24 = arith.constant 0.000000e+00 : f32
    %59 = vector.broadcast %cst_24 : f32 to vector<16x128xf32>
    %60 = arith.maximumf %58, %59 : vector<16x128xf32>
    %61 = arith.truncf %60 : vector<16x128xf32> to vector<16x128xbf16>
    %c0_25 = arith.constant 0 : index
    %c0_26 = arith.constant 0 : index
    %c0_27 = arith.constant 0 : index
    %62 = vector.load %arg7[%c0_25, %c0_26, %c0_27] : memref<3x128x128xbf16, #tpu.memory_space<vmem>>, vector<1x128x128xbf16>
    %63 = vector.shape_cast %62 : vector<1x128x128xbf16> to vector<128x128xbf16>
    %cst_28 = arith.constant dense<0.000000e+00> : vector<16x128xf32>
    %64 = tpu.matmul %61, %63, %cst_28 {dimension_numbers = #tpu.dot_dimension_numbers<[1], [0], [0], [1], [0, 0, 1, 1], [], []>} : vector<16x128xbf16>, vector<128x128xbf16>, vector<16x128xf32> -> vector<16x128xf32>
    %c0_29 = arith.constant 0 : index
    %c0_30 = arith.constant 0 : index
    %c0_31 = arith.constant 0 : index
    %65 = vector.load %arg8[%c0_29, %c0_30, %c0_31] : memref<3x1x128xf32, #tpu.memory_space<vmem>>, vector<1x1x128xf32>
    %66 = vector.shape_cast %65 : vector<1x1x128xf32> to vector<1x128xf32>
    %67 = vector.broadcast %66 : vector<1x128xf32> to vector<16x128xf32>
    %68 = arith.addf %64, %67 : vector<16x128xf32>
    %69 = arith.addf %29, %68 : vector<16x128xf32>
    %70 = arith.mulf %69, %31 : vector<16x128xf32>
    %71 = arith.truncf %70 : vector<16x128xf32> to vector<16x128xbf16>
    %c1 = arith.constant 1 : index
    %c0_32 = arith.constant 0 : index
    %c0_33 = arith.constant 0 : index
    %72 = vector.load %arg5[%c1, %c0_32, %c0_33] : memref<3x128x384xbf16, #tpu.memory_space<vmem>>, vector<1x128x384xbf16>
    %73 = vector.shape_cast %72 : vector<1x128x384xbf16> to vector<128x384xbf16>
    %cst_34 = arith.constant dense<0.000000e+00> : vector<16x384xf32>
    %74 = tpu.matmul %71, %73, %cst_34 {dimension_numbers = #tpu.dot_dimension_numbers<[1], [0], [0], [1], [0, 0, 1, 1], [], []>} : vector<16x128xbf16>, vector<128x384xbf16>, vector<16x384xf32> -> vector<16x384xf32>
    %75 = vector.extract_strided_slice %74 {offsets = [0, 128], sizes = [16, 128], strides = [1, 1]} : vector<16x384xf32> to vector<16x128xf32>
    %76 = vector.extract_strided_slice %74 {offsets = [0, 0], sizes = [16, 128], strides = [1, 1]} : vector<16x384xf32> to vector<16x128xf32>
    %c2_i32 = arith.constant 2 : i32
    %77 = tpu.dynamic_rotate %76 by %c2_i32 dim 0 : vector<16x128xf32>, i32 -> vector<16x128xf32>
    %78 = vector.extract_strided_slice %74 {offsets = [0, 256], sizes = [16, 128], strides = [1, 1]} : vector<16x384xf32> to vector<16x128xf32>
    %c14_i32 = arith.constant 14 : i32
    %79 = tpu.dynamic_rotate %78 by %c14_i32 dim 0 : vector<16x128xf32>, i32 -> vector<16x128xf32>
    %c2_i32_35 = arith.constant 2 : i32
    %80 = vector.broadcast %c2_i32_35 : i32 to vector<16x1xi32>
    %81 = arith.cmpi sge, %16, %80 : vector<16x1xi32>
    %cst_36 = arith.constant 0.000000e+00 : f32
    %82 = vector.shape_cast %81 : vector<16x1xi1> to vector<16x1xi1>
    %83 = vector.broadcast %82 : vector<16x1xi1> to vector<16x128xi1>
    %84 = vector.broadcast %cst_36 : f32 to vector<16x128xf32>
    %85 = arith.select %83, %77, %84 : vector<16x128xi1>, vector<16x128xf32>
    %86 = arith.addf %85, %75 : vector<16x128xf32>
    %c14_i32_37 = arith.constant 14 : i32
    %87 = vector.broadcast %c14_i32_37 : i32 to vector<16x1xi32>
    %88 = arith.cmpi slt, %16, %87 : vector<16x1xi32>
    %cst_38 = arith.constant 0.000000e+00 : f32
    %89 = vector.shape_cast %88 : vector<16x1xi1> to vector<16x1xi1>
    %90 = vector.broadcast %89 : vector<16x1xi1> to vector<16x128xi1>
    %91 = vector.broadcast %cst_38 : f32 to vector<16x128xf32>
    %92 = arith.select %90, %79, %91 : vector<16x128xi1>, vector<16x128xf32>
    %93 = arith.addf %86, %92 : vector<16x128xf32>
    %c1_39 = arith.constant 1 : index
    %c0_40 = arith.constant 0 : index
    %c0_41 = arith.constant 0 : index
    %94 = vector.load %arg6[%c1_39, %c0_40, %c0_41] : memref<3x1x128xf32, #tpu.memory_space<vmem>>, vector<1x1x128xf32>
    %95 = vector.shape_cast %94 : vector<1x1x128xf32> to vector<1x128xf32>
    %96 = vector.broadcast %95 : vector<1x128xf32> to vector<16x128xf32>
    %97 = arith.addf %93, %96 : vector<16x128xf32>
    %cst_42 = arith.constant 0.000000e+00 : f32
    %98 = vector.broadcast %cst_42 : f32 to vector<16x128xf32>
    %99 = arith.maximumf %97, %98 : vector<16x128xf32>
    %100 = arith.truncf %99 : vector<16x128xf32> to vector<16x128xbf16>
    %c1_43 = arith.constant 1 : index
    %c0_44 = arith.constant 0 : index
    %c0_45 = arith.constant 0 : index
    %101 = vector.load %arg7[%c1_43, %c0_44, %c0_45] : memref<3x128x128xbf16, #tpu.memory_space<vmem>>, vector<1x128x128xbf16>
    %102 = vector.shape_cast %101 : vector<1x128x128xbf16> to vector<128x128xbf16>
    %cst_46 = arith.constant dense<0.000000e+00> : vector<16x128xf32>
    %103 = tpu.matmul %100, %102, %cst_46 {dimension_numbers = #tpu.dot_dimension_numbers<[1], [0], [0], [1], [0, 0, 1, 1], [], []>} : vector<16x128xbf16>, vector<128x128xbf16>, vector<16x128xf32> -> vector<16x128xf32>
    %c1_47 = arith.constant 1 : index
    %c0_48 = arith.constant 0 : index
    %c0_49 = arith.constant 0 : index
    %104 = vector.load %arg8[%c1_47, %c0_48, %c0_49] : memref<3x1x128xf32, #tpu.memory_space<vmem>>, vector<1x1x128xf32>
    %105 = vector.shape_cast %104 : vector<1x1x128xf32> to vector<1x128xf32>
    %106 = vector.broadcast %105 : vector<1x128xf32> to vector<16x128xf32>
    %107 = arith.addf %103, %106 : vector<16x128xf32>
    %108 = arith.addf %70, %107 : vector<16x128xf32>
    %109 = arith.mulf %108, %31 : vector<16x128xf32>
    %110 = arith.truncf %109 : vector<16x128xf32> to vector<16x128xbf16>
    %c2 = arith.constant 2 : index
    %c0_50 = arith.constant 0 : index
    %c0_51 = arith.constant 0 : index
    %111 = vector.load %arg5[%c2, %c0_50, %c0_51] : memref<3x128x384xbf16, #tpu.memory_space<vmem>>, vector<1x128x384xbf16>
    %112 = vector.shape_cast %111 : vector<1x128x384xbf16> to vector<128x384xbf16>
    %cst_52 = arith.constant dense<0.000000e+00> : vector<16x384xf32>
    %113 = tpu.matmul %110, %112, %cst_52 {dimension_numbers = #tpu.dot_dimension_numbers<[1], [0], [0], [1], [0, 0, 1, 1], [], []>} : vector<16x128xbf16>, vector<128x384xbf16>, vector<16x384xf32> -> vector<16x384xf32>
    %114 = vector.extract_strided_slice %113 {offsets = [0, 128], sizes = [16, 128], strides = [1, 1]} : vector<16x384xf32> to vector<16x128xf32>
    %115 = vector.extract_strided_slice %113 {offsets = [0, 0], sizes = [16, 128], strides = [1, 1]} : vector<16x384xf32> to vector<16x128xf32>
    %c4_i32 = arith.constant 4 : i32
    %116 = tpu.dynamic_rotate %115 by %c4_i32 dim 0 : vector<16x128xf32>, i32 -> vector<16x128xf32>
    %117 = vector.extract_strided_slice %113 {offsets = [0, 256], sizes = [16, 128], strides = [1, 1]} : vector<16x384xf32> to vector<16x128xf32>
    %c12_i32 = arith.constant 12 : i32
    %118 = tpu.dynamic_rotate %117 by %c12_i32 dim 0 : vector<16x128xf32>, i32 -> vector<16x128xf32>
    %c4_i32_53 = arith.constant 4 : i32
    %119 = vector.broadcast %c4_i32_53 : i32 to vector<16x1xi32>
    %120 = arith.cmpi sge, %16, %119 : vector<16x1xi32>
    %cst_54 = arith.constant 0.000000e+00 : f32
    %121 = vector.shape_cast %120 : vector<16x1xi1> to vector<16x1xi1>
    %122 = vector.broadcast %121 : vector<16x1xi1> to vector<16x128xi1>
    %123 = vector.broadcast %cst_54 : f32 to vector<16x128xf32>
    %124 = arith.select %122, %116, %123 : vector<16x128xi1>, vector<16x128xf32>
    %125 = arith.addf %124, %114 : vector<16x128xf32>
    %c12_i32_55 = arith.constant 12 : i32
    %126 = vector.broadcast %c12_i32_55 : i32 to vector<16x1xi32>
    %127 = arith.cmpi slt, %16, %126 : vector<16x1xi32>
    %cst_56 = arith.constant 0.000000e+00 : f32
    %128 = vector.shape_cast %127 : vector<16x1xi1> to vector<16x1xi1>
    %129 = vector.broadcast %128 : vector<16x1xi1> to vector<16x128xi1>
    %130 = vector.broadcast %cst_56 : f32 to vector<16x128xf32>
    %131 = arith.select %129, %118, %130 : vector<16x128xi1>, vector<16x128xf32>
    %132 = arith.addf %125, %131 : vector<16x128xf32>
    %c2_57 = arith.constant 2 : index
    %c0_58 = arith.constant 0 : index
    %c0_59 = arith.constant 0 : index
    %133 = vector.load %arg6[%c2_57, %c0_58, %c0_59] : memref<3x1x128xf32, #tpu.memory_space<vmem>>, vector<1x1x128xf32>
    %134 = vector.shape_cast %133 : vector<1x1x128xf32> to vector<1x128xf32>
    %135 = vector.broadcast %134 : vector<1x128xf32> to vector<16x128xf32>
    %136 = arith.addf %132, %135 : vector<16x128xf32>
    %cst_60 = arith.constant 0.000000e+00 : f32
    %137 = vector.broadcast %cst_60 : f32 to vector<16x128xf32>
    %138 = arith.maximumf %136, %137 : vector<16x128xf32>
    %139 = arith.truncf %138 : vector<16x128xf32> to vector<16x128xbf16>
    %c2_61 = arith.constant 2 : index
    %c0_62 = arith.constant 0 : index
    %c0_63 = arith.constant 0 : index
    %140 = vector.load %arg7[%c2_61, %c0_62, %c0_63] : memref<3x128x128xbf16, #tpu.memory_space<vmem>>, vector<1x128x128xbf16>
    %141 = vector.shape_cast %140 : vector<1x128x128xbf16> to vector<128x128xbf16>
    %cst_64 = arith.constant dense<0.000000e+00> : vector<16x128xf32>
    %142 = tpu.matmul %139, %141, %cst_64 {dimension_numbers = #tpu.dot_dimension_numbers<[1], [0], [0], [1], [0, 0, 1, 1], [], []>} : vector<16x128xbf16>, vector<128x128xbf16>, vector<16x128xf32> -> vector<16x128xf32>
    %c2_65 = arith.constant 2 : index
    %c0_66 = arith.constant 0 : index
    %c0_67 = arith.constant 0 : index
    %143 = vector.load %arg8[%c2_65, %c0_66, %c0_67] : memref<3x1x128xf32, #tpu.memory_space<vmem>>, vector<1x1x128xf32>
    %144 = vector.shape_cast %143 : vector<1x1x128xf32> to vector<1x128xf32>
    %145 = vector.broadcast %144 : vector<1x128xf32> to vector<16x128xf32>
    %146 = arith.addf %142, %145 : vector<16x128xf32>
    %147 = arith.addf %109, %146 : vector<16x128xf32>
    %148 = arith.mulf %147, %31 : vector<16x128xf32>
    %149 = arith.truncf %148 : vector<16x128xf32> to vector<16x128xbf16>
    %c0_68 = arith.constant 0 : index
    %c0_69 = arith.constant 0 : index
    %150 = vector.load %arg9[%c0_68, %c0_69] : memref<128x128xbf16, #tpu.memory_space<vmem>>, vector<128x128xbf16>
    %cst_70 = arith.constant dense<0.000000e+00> : vector<16x128xf32>
    %151 = tpu.matmul %149, %150, %cst_70 {dimension_numbers = #tpu.dot_dimension_numbers<[1], [0], [0], [1], [0, 0, 1, 1], [], []>} : vector<16x128xbf16>, vector<128x128xbf16>, vector<16x128xf32> -> vector<16x128xf32>
    %c0_71 = arith.constant 0 : index
    %c0_72 = arith.constant 0 : index
    %152 = vector.load %arg10[%c0_71, %c0_72] : memref<1x128xf32, #tpu.memory_space<vmem>>, vector<1x128xf32>
    %153 = vector.broadcast %152 : vector<1x128xf32> to vector<16x128xf32>
    %154 = arith.addf %151, %153 : vector<16x128xf32>
    %155 = vector.broadcast %17 : vector<16x1xf32> to vector<16x128xf32>
    %156 = arith.mulf %154, %155 : vector<16x128xf32>
    %c0_73 = arith.constant 0 : index
    %c0_74 = arith.constant 0 : index
    %157 = vector.load %arg11[%c0_73, %c0_74] : memref<16x128xf32, #tpu.memory_space<vmem>>, vector<16x128xf32>
    tpu.vector_store %arg11[%c0_73, %c0_74], %156 {strides = array<i32>} : memref<16x128xf32, #tpu.memory_space<vmem>>, vector<16x128xf32>,
    return
  }
  func.func @transform_0(%arg0: i32) -> (i32, i32) {
    %c0_i32 = arith.constant 0 : i32
    %c0_i32_0 = arith.constant 0 : i32
    return %arg0, %c0_i32 : i32, i32
  }
  func.func @transform_1(%arg0: i32) -> (i32, i32) {
    %c0_i32 = arith.constant 0 : i32
    %c0_i32_0 = arith.constant 0 : i32
    return %arg0, %c0_i32 : i32, i32
  }
  func.func @transform_2(%arg0: i32) -> (i32, i32) {
    %c0_i32 = arith.constant 0 : i32
    %c0_i32_0 = arith.constant 0 : i32
    %c0_i32_1 = arith.constant 0 : i32
    return %c0_i32, %c0_i32_0 : i32, i32
  }
  func.func @transform_3(%arg0: i32) -> (i32, i32) {
    %c0_i32 = arith.constant 0 : i32
    %c0_i32_0 = arith.constant 0 : i32
    %c0_i32_1 = arith.constant 0 : i32
    return %c0_i32, %c0_i32_0 : i32, i32
  }
  func.func @transform_4(%arg0: i32) -> (i32, i32, i32) {
    %c0_i32 = arith.constant 0 : i32
    %c0_i32_0 = arith.constant 0 : i32
    %c0_i32_1 = arith.constant 0 : i32
    %c0_i32_2 = arith.constant 0 : i32
    return %c0_i32, %c0_i32_0, %c0_i32_1 : i32, i32, i32
  }
  func.func @transform_5(%arg0: i32) -> (i32, i32, i32) {
    %c0_i32 = arith.constant 0 : i32
    %c0_i32_0 = arith.constant 0 : i32
    %c0_i32_1 = arith.constant 0 : i32
    %c0_i32_2 = arith.constant 0 : i32
    return %c0_i32, %c0_i32_0, %c0_i32_1 : i32, i32, i32
  }
  func.func @transform_6(%arg0: i32) -> (i32, i32, i32) {
    %c0_i32 = arith.constant 0 : i32
    %c0_i32_0 = arith.constant 0 : i32
    %c0_i32_1 = arith.constant 0 : i32
    %c0_i32_2 = arith.constant 0 : i32
    return %c0_i32, %c0_i32_0, %c0_i32_1 : i32, i32, i32
  }
  func.func @transform_7(%arg0: i32) -> (i32, i32, i32) {
    %c0_i32 = arith.constant 0 : i32
    %c0_i32_0 = arith.constant 0 : i32
    %c0_i32_1 = arith.constant 0 : i32
    %c0_i32_2 = arith.constant 0 : i32
    return %c0_i32, %c0_i32_0, %c0_i32_1 : i32, i32, i32
  }
  func.func @transform_8(%arg0: i32) -> (i32, i32) {
    %c0_i32 = arith.constant 0 : i32
    %c0_i32_0 = arith.constant 0 : i32
    %c0_i32_1 = arith.constant 0 : i32
    return %c0_i32, %c0_i32_0 : i32, i32
  }
  func.func @transform_9(%arg0: i32) -> (i32, i32) {
    %c0_i32 = arith.constant 0 : i32
    %c0_i32_0 = arith.constant 0 : i32
    %c0_i32_1 = arith.constant 0 : i32
    return %c0_i32, %c0_i32_0 : i32, i32
  }
  func.func @transform_10(%arg0: i32) -> (i32, i32) {
    %c0_i32 = arith.constant 0 : i32
    %c0_i32_0 = arith.constant 0 : i32
    return %arg0, %c0_i32 : i32, i32
  }
}

</mosaic_0001>

<bundles_post_ra>
// kernel: tpu_custom_call.1
= control target key start
LH: loop header
LB: loop body
LE: loop exit
PB: predicated region body
PF: predicated region fallthrough
CT: control target
= control target key end

     0   :  { %s3339_s0 = inlined_call_operand.vmem [shape: bf16[32,128], index: 0, kind: input, shape index: {}]   ;;  %s3340_s1 = inlined_call_operand.vmem [shape: f32[32,1], index: 1, kind: input, shape index: {}]   ;;  %s3341_s2 = inlined_call_operand.hbm [shape: bf16[128,128], index: 2, kind: input, shape index: {}]   ;;  %s3342_s3 = inlined_call_operand.vmem [shape: f32[1,128], index: 3, kind: input, shape index: {}]   ;;  %s3343_s4 = inlined_call_operand.hbm [shape: bf16[3,128,384], index: 4, kind: input, shape index: {}]   ;;  %s3344_s5 = inlined_call_operand.vmem [shape: f32[3,1,128], index: 5, kind: input, shape index: {}]   ;;  %s3345_s6 = inlined_call_operand.hbm [shape: bf16[3,128,128], index: 6, kind: input, shape index: {}]   ;;  %s3346_s7 = inlined_call_operand.vmem [shape: f32[3,1,128], index: 7, kind: input, shape index: {}]   ;;  %s3347_s8 = inlined_call_operand.hbm [shape: bf16[128,128], index: 8, kind: input, shape index: {}]   ;;  %s3348_s9 = inlined_call_operand.vmem [shape: f32[1,128], index: 9, kind: input, shape index: {}]   ;;  %s3349_s10 = inlined_call_operand.hbm [shape: f32[32,128], index: 10, kind: output, shape index: {}]  }
   0x1   :  { %3358 = sst [smem:[#allocation20_spill]] %s3343_s4 }
   0x2   :  { %15 = vsyncpa [#allocation3], 0 }
   0x3   :  { %16 = vsyncpa [#allocation6], 0 }
   0x4   :  { %17 = vsyncpa [#allocation9], 0 }
   0x5   :  { %18 = vsyncpa [#allocation4], 0 }
   0x6   :  { %20 = vsyncpa [#allocation4 + $0x1], 0  ;;  %s2936_s13 = smov 0   ;;  %s2938_s14 = smov 0  }
   0x7   :  { %s2940_s15 = smov 0   ;;  %s2942_s16 = smov 0  }
   0x8 LB: > { %3359 = sst [smem:[#allocation15_spill]] %s2853_s13  ;;  %s2957_s17 = sadd.s32 4294967295, %s2865_s16   ;;  %s2865_s16 = sphi %s2942_s16, %s3381_s16   ;;  %s2861_s15 = sphi %s2940_s15, %s3383_s15   ;;  %s2857_s14 = sphi %s2938_s14, %s3385_s14   ;;  %s2853_s13 = sphi %s2936_s13, %s3384_s13  }
   0x9   : > { %3360 = sst [smem:[#allocation16_spill]] %s2861_s15  ;;  %s2072_s18 = sadd.s32 4294967294, %s2865_s16  }
   0xa   : > { %s2961_s19 = sadd.s32 1, %s2865_s16   ;;  %s253_s20 = sadd.s32 1, %s2861_s15 }
   0xb   : > { %3361 = sst [smem:[#allocation17_spill]] %s2961_s19  ;;  %s250_s21 = ssub.s32 %s2865_s16, %s2961_s19 }
   0xc   : > { %p263_p0 = scmp.ne.s32.totalorder %s2861_s15, %s2857_s14  ;;  %p251_p1 = scmp.eq.s32.totalorder %s250_s21, 0 }
   0xd   : > { %p264_p2 = scmp.eq.s32.totalorder %s2957_s17, 1  ;;  %p269_p3 = scmp.ne.s32.totalorder %s2857_s14, %s2853_s13 }
   0xe   : > { %p270_p4 = scmp.eq.s32.totalorder %s2072_s18, 1  ;;  %p2073_p7 = scmp.ge.s32.totalorder %s2865_s16, 1 }
   0xf   : > { %s2972_s22 = scalar_select %p251_p1, %s2861_s15, %s253_s20  }
  0x10   : > { %p2974_p5 = por %p264_p2, %p263_p0  ;;  %p2978_p6 = por %p270_p4, %p269_p3 }
  0x11   : > { %3362 = sst [smem:[#allocation18_spill]] %s2972_s22  ;;  %p277_p8 = scmp.lt.s32.totalorder %s2865_s16, 3 }
  0x12   : > { %s3363_s23 = scalar_select %p2974_p5, 1, 0 }
  0x13   : > { %s3364_s24 = scalar_select %p2978_p6, 1, 0 }
  0x14   : > { %p3350_p9 = scmp.eq.s32.totalorder %s2957_s17, 0  ;;  %p2985_p10 = pnand %p2073_p7, %p277_p8 }
  0x15   : > { %3365 = sst [smem:[#allocation19_spill]] %s3364_s24  ;;  %s2867_s26 = smov [#allocation5]  }
  0x16   : > { %s3366_s25 = scalar_select %p2985_p10, 1, 0 }
  0x17   : > { %s305_s27 = sshll.u32 %s2867_s26, 4  ;;  %p2470_p11 = pneg %p2985_p10  ;;  %s306_s27 = int_to_ptr.vmem [resolvable:$true] %s305_s27 }
  0x18   : > { %s2868_s29 = smov [#allocation2]   ;;  %s3368_s4 = sld [smem:[#allocation20_spill]] }
  0x19   : > { %p2993_p12 = pnand %p3350_p9, %p2470_p11  ;;  %s289_s30 = sshll.u32 %s2868_s29, 4  ;;  %s2997_s30 = int_to_ptr.vmem [resolvable:$true] %s289_s30 }
  0x1b   : > { %p3007_p0 = pneg %p2993_p12 }
  0x1e   : > { %s2679_s18 = scalar_lea.hbm %s3368_s4, 9216 }
  0x1f   : > { %p2680_p13 = scmp.ne.s32.totalorder %s3368_s4, %s2679_s18  ;;  %p2686_p3 = scmp.lt.u32.totalorder %s2679_s18, %s3368_s4 }
  0x21   : > { %p2682_p1 = pnand %p3007_p0, %p2680_p13 }
  0x23   : > { %p2683_p2 = pneg %p2682_p1 }
  0x25   : > { %p2688_p4 = pnand %p2686_p3, %p2683_p2 }
  0x27   : > { %2691 = shalt.err (!%p2688_p4)
}
  0x28   : > { %s2692_s11 = scalar_lea.vmem %s306_s27, 9216  ;;  %p2700_p9 = scmp.lt.s32.totalorder %s306_s27, %s306_s27 }
  0x29   : > { %p2693_p7 = scmp.ne.s32.totalorder %s306_s27, %s2692_s11  ;;  %p2701_p6 = scmp.lt.s32.totalorder %s2692_s11, %s2692_s11 }
  0x2b   : > { %p2695_p8 = pnand %p2693_p7, %p3007_p0  ;;  %p2702_p5 = por %p2701_p6, %p2700_p9 }
  0x2d   : > { %p2696_p11 = pneg %p2695_p8 }
  0x2f   : > { %p2703_p10 = pnand %p2702_p5, %p2696_p11 }
  0x31   : > { %2706 = shalt.err (!%p2703_p10)
}
  0x32   : > { %s2869_s12 = smov 192   ;;  %s2870_s20 = smov 12  }
  0x33   : > { %2476 = dma.hbm_to_vmem [thread:$0]  (!%p2993_p12), %s3368_s4, 9216, %s306_s27, [#allocation6], %s2869_s12, %s2869_s12, %s2870_s20  }
  0x34   : > { %s2707_s15 = scalar_lea.hbm %s3341_s2, 1024 }
  0x35   : > { %p2708_p13 = scmp.ne.s32.totalorder %s3341_s2, %s2707_s15  ;;  %p2714_p9 = scmp.lt.u32.totalorder %s2707_s15, %s3341_s2 }
  0x37   : > { %p2710_p5 = pnand %p2708_p13, %p3007_p0 }
  0x39   : > { %p2711_p6 = pneg %p2710_p5 }
  0x3b   : > { %p2716_p10 = pnand %p2714_p9, %p2711_p6 }
  0x3d   : > { %2719 = shalt.err (!%p2716_p10)
}
  0x3e   : > { %s2720_s27 = scalar_lea.vmem %s2997_s30, 1024  ;;  %p2728_p4 = scmp.lt.s32.totalorder %s2997_s30, %s2997_s30 }
  0x3f   : > { %p2721_p1 = scmp.ne.s32.totalorder %s2997_s30, %s2720_s27  ;;  %p2729_p7 = scmp.lt.s32.totalorder %s2720_s27, %s2720_s27 }
  0x41   : > { %p2723_p2 = pnand %p2721_p1, %p3007_p0  ;;  %p2730_p8 = por %p2729_p7, %p2728_p4 }
  0x43   : > { %p2724_p3 = pneg %p2723_p2 }
  0x45   : > { %p2731_p11 = pnand %p2730_p8, %p2724_p3 }
  0x47   : > { %2734 = shalt.err (!%p2731_p11)
}
  0x48   : > { %s2871_s19 = smov 64   ;;  %s2872_s13 = smov 4  }
  0x49   : > { %2473 = dma.hbm_to_vmem [thread:$0]  (!%p2993_p12), %s3341_s2, 1024, %s2997_s30, [#allocation3], %s2871_s19, %s2871_s19, %s2872_s13  }
  0x4a   : > { %s2873_s12 = smov [#allocation7]   ;;  %s2874_s22 = smov [#allocation8]  }
  0x4b   : > { %s321_s20 = sshll.u32 %s2873_s12, 4  ;;  %s337_s18 = sshll.u32 %s2874_s22, 4  ;;  %s322_s20 = int_to_ptr.vmem [resolvable:$true] %s321_s20  ;;  %s3049_s18 = int_to_ptr.vmem [resolvable:$true] %s337_s18 }
  0x4c   : > { %s2735_s11 = scalar_lea.hbm %s3345_s6, 3072 }
  0x4d   : > { %p2736_p13 = scmp.ne.s32.totalorder %s3345_s6, %s2735_s11  ;;  %p2742_p9 = scmp.lt.u32.totalorder %s2735_s11, %s3345_s6 }
  0x4f   : > { %p2738_p5 = pnand %p2736_p13, %p3007_p0 }
  0x51   : > { %p2739_p6 = pneg %p2738_p5 }
  0x53   : > { %p2744_p10 = pnand %p2742_p9, %p2739_p6 }
  0x55   : > { %2747 = shalt.err (!%p2744_p10)
}
  0x56   : > { %s2748_s24 = scalar_lea.vmem %s322_s20, 3072  ;;  %p2756_p4 = scmp.lt.s32.totalorder %s322_s20, %s322_s20 }
  0x57   : > { %p2749_p1 = scmp.ne.s32.totalorder %s322_s20, %s2748_s24  ;;  %p2757_p7 = scmp.lt.s32.totalorder %s2748_s24, %s2748_s24 }
  0x59   : > { %p2751_p2 = pnand %p2749_p1, %p3007_p0  ;;  %p2758_p8 = por %p2757_p7, %p2756_p4 }
  0x5b   : > { %p2752_p3 = pneg %p2751_p2 }
  0x5d   : > { %p2759_p11 = pnand %p2758_p8, %p2752_p3 }
  0x5f   : > { %2762 = shalt.err (!%p2759_p11)
}
  0x60   : > { %2479 = dma.hbm_to_vmem [thread:$0]  (!%p2993_p12), %s3345_s6, 3072, %s322_s20, [#allocation6], %s2871_s19, %s2871_s19, %s2872_s13  }
  0x61   : > { %s2763_s29 = scalar_lea.hbm %s3347_s8, 1024 }
  0x62   : > { %p2764_p13 = scmp.ne.s32.totalorder %s3347_s8, %s2763_s29  ;;  %p2770_p9 = scmp.lt.u32.totalorder %s2763_s29, %s3347_s8 }
  0x64   : > { %p2766_p5 = pnand %p2764_p13, %p3007_p0 }
  0x66   : > { %p2767_p6 = pneg %p2766_p5 }
  0x68   : > { %p2772_p10 = pnand %p2770_p9, %p2767_p6 }
  0x6a   : > { %2775 = shalt.err (!%p2772_p10)
}
  0x6b   : > { %s2776_s20 = scalar_lea.vmem %s3049_s18, 1024  ;;  %p2784_p4 = scmp.lt.s32.totalorder %s3049_s18, %s3049_s18 }
  0x6c   : > { %p2777_p1 = scmp.ne.s32.totalorder %s3049_s18, %s2776_s20  ;;  %p2785_p7 = scmp.lt.s32.totalorder %s2776_s20, %s2776_s20 }
  0x6e   : > { %p2779_p2 = pnand %p2777_p1, %p3007_p0  ;;  %p2786_p8 = por %p2785_p7, %p2784_p4 }
  0x70   : > { %p2780_p3 = pneg %p2779_p2 }
  0x72   : > { %p2787_p11 = pnand %p2786_p8, %p2780_p3 }
  0x74   : > { %2790 = shalt.err (!%p2787_p11)
}
  0x75   : > { %2482 = dma.hbm_to_vmem [thread:$0]  (!%p2993_p12), %s3347_s8, 1024, %s3049_s18, [#allocation9], %s2871_s19, %s2871_s19, %s2872_s13  }
  0x76   : > { %p3370_p13 = scmp.ne.s32.totalorder %s3366_s25, 0 }
  0x77   : > { %p3371_p0 = scmp.eq.s32.totalorder (!%p3370_p13), %s2957_s17, 0 }
  0x78   : > { %374 = sbr.rel (%p3370_p13) target bundleno = 1968 (0x7b0), region = 60 }
  0x7f   : > { %2836 = dma.done.wait (%p3371_p0), [#allocation3], 1024   ;;  %p3372_p5 = pmov %p3371_p0 }
  0x80   : > { %p3373_p6 = pmov %p3371_p0 }
  0x81   : > { %2838 = vsyncadd (%p3372_p5), [#allocation3], 4294966272 }
  0x82   : > { %2840 = dma.done.wait (%p3373_p6), [#allocation6], 12288   ;;  %p3374_p9 = pmov %p3371_p0 }
  0x83   : > { %p3375_p10 = pmov %p3371_p0 }
  0x84   : > { %2842 = vsyncadd (%p3374_p9), [#allocation6], 4294955008 }
  0x85   : > { %2844 = dma.done.wait (%p3375_p10), [#allocation9], 1024   ;;  %p3376_p12 = pmov %p3371_p0 }
  0x86   : > { %s2085_s25 = sshll.u32 %s2957_s17, 1  ;;  %v2875_v0 = vmov 0.0   ;;  %vm2876_vm0 = vmmov 0   ;;  %v2542_v1 = vld [vmem:[#allocation2] sm:$0xff]   ;;  %v2543_v2 = vld [vmem:[#allocation2 + $0x8] sm:$0xff]   ;;  %v2544_v3 = vld [vmem:[#allocation2 + $0x10] sm:$0xff]  }
  0x87   : > { %2846 = vsyncadd (%p3376_p12), [#allocation9], 4294966272  ;;  %2292 = vmatprep.subr.bf16.mxu0 %v2875_v0  ;;  %2308 = vmatprep.mubr.msk.bf16.mxu0 %vm2876_vm0, %v2875_v0  ;;  %p430_p1 = scmp.lt.s32.totalorder %s2085_s25, 3  ;;  %v2545_v4 = vld [vmem:[#allocation2 + $0x18] sm:$0xff]   ;;  %v2551_v5 = vld [vmem:[#allocation5 + $0x4] ss:$12 sps:$4 sm:$0xff]  }
  0x88   : > { %2293 = vmatpush3.bf16.msra.mxu0 %v2542_v1  ;;  %v2553_v6 = vld [vmem:[#allocation5] ss:$12 sps:$4 sm:$0xff]   ;;  %771 = vmatprep.subr.bf16.mxu1 %v2551_v5  ;;  %v2555_v7 = vld [vmem:[#allocation5 + $0x1c] ss:$12 sps:$4 sm:$0xff]   ;;  %v2557_v8 = vld [vmem:[#allocation5 + $0x18] ss:$12 sps:$4 sm:$0xff]  }
  0x89   : > { %s3387_s25 = smov (!%p430_p1, %s2085_s25), 3  ;;  %2294 = vmatprep.subr.bf16.mxu0 %v2875_v0  ;;  %772 = vmatpush1.bf16.msra.mxu1 %v2553_v6  ;;  %v2546_v9 = vld [vmem:[#allocation2 + $0x20] sm:$0xff]   ;;  %v2561_v11 = vld [vmem:[#allocation5 + $0x30] ss:$12 sps:$4 sm:$0xff]   ;;  %v2563_v12 = vld [vmem:[#allocation5 + $0x4c] ss:$12 sps:$4 sm:$0xff]  }
  0x8a   : > { %s2086_s28 = sshll.u32 %s3387_s25, 2  ;;  %773 = vmatprep.subr.bf16.mxu1 %v2555_v7  ;;  %v2559_v10 = vld [vmem:[#allocation5 + $0x34] ss:$12 sps:$4 sm:$0xff]   ;;  %v2547_v13 = vld [vmem:[#allocation2 + $0x28] sm:$0xff]   ;;  %v2567_v15 = vld [vmem:[#allocation5 + $0x64] ss:$12 sps:$4 sm:$0xff]  }
  0x8b   : > { %s3124_s13 = scalar_lea.vmem %s3339_s0, %s2086_s28  ;;  %v2565_v14 = vld [vmem:[#allocation5 + $0x48] ss:$12 sps:$4 sm:$0xff]   ;;  %v2569_v17 = vld [vmem:[#allocation5 + $0x60] ss:$12 sps:$4 sm:$0xff]   ;;  %v2549_v18 = vld [vmem:[#allocation2 + $0x38] sm:$0xff]   ;;  %v2877_v34 = vmov 0  }
  0x8c   : > { %2295 = vmatpush3.bf16.msra.mxu0 %v2543_v2  ;;  %v2548_v16 = vld [vmem:[#allocation2 + $0x30] sm:$0xff]   ;;  %v2571_v19 = vld [vmem:[#allocation5 + $0x7c] ss:$12 sps:$4 sm:$0xff]   ;;  %v2573_v20 = vld [vmem:[#allocation5 + $0x78] ss:$12 sps:$4 sm:$0xff]   ;;  %803 = vmatprep.mubr.bf16.mxu1 %v2877_v34  ;;  %s2088_s22 = sshll.u32 %s3387_s25, 3  ;;  %v443_v2 = vlaneseq }
  0x8d   : > { %2296 = vmatprep.subr.bf16.mxu0 %v2875_v0  ;;  %774 = vmatpush1.bf16.msra.mxu1 %v2557_v8  ;;  %v2550_v21 = vld [vmem:[%s3124_s13] sm:$0xff]   ;;  %v2554_v23 = vld [vmem:[#allocation5 + $0x8] ss:$12 sps:$4 sm:$0xff]   ;;  %v2566_v26 = vld [vmem:[#allocation5 + $0x50] ss:$12 sps:$4 sm:$0xff]   ;;  %s439_s11 = scalar_lea.vmem %s3340_s1, %s2088_s22  ;;  %s426_s12 = sand.u32 1, %s2857_s14  }
  0x8e   : > { %775 = vmatprep.subr.bf16.mxu1 %v2559_v10  ;;  %v2575_v22 = vld [vmem:[#allocation5 + $0x94] ss:$12 sps:$4 sm:$0xff]   ;;  %v2562_v25 = vld [vmem:[#allocation5 + $0x38] ss:$12 sps:$4 sm:$0xff]   ;;  %v2577_v29 = vld [vmem:[#allocation5 + $0x90] ss:$12 sps:$4 sm:$0xff]   ;;  %2541 = vset.pattern.permute.xlu0 %v2877_v34 }
  0x8f   : > { %v2558_v24 = vld [vmem:[#allocation5 + $0x20] ss:$12 sps:$4 sm:$0xff]   ;;  %v2570_v27 = vld [vmem:[#allocation5 + $0x68] ss:$12 sps:$4 sm:$0xff]   ;;  %v2578_v30 = vld [vmem:[#allocation5 + $0x98] ss:$12 sps:$4 sm:$0xff]  }
  0x90   : > { %2297 = vmatpush3.bf16.msra.mxu0 %v2544_v3  ;;  %v2574_v28 = vld [vmem:[#allocation5 + $0x80] ss:$12 sps:$4 sm:$0xff]   ;;  %v2581_v32 = vld [vmem:[#allocation5 + $0xa8] ss:$12 sps:$4 sm:$0xff]   ;;  %v2582_v33 = vld [vmem:[#allocation5 + $0xb0] ss:$12 sps:$4 sm:$0xff]  }
  0x91   : > { %2298 = vmatprep.subr.bf16.mxu0 %v2875_v0  ;;  %776 = vmatpush1.bf16.msra.mxu1 %v2561_v11  ;;  %v2579_v31 = vld [vmem:[#allocation5 + $0xac] ss:$12 sps:$4 sm:$0xff]   ;;  %v2089_v35 = vld [vmem:[%s3342_s3] ss:$0 sm:$0xff]  ;;  %v2585_v45 = vld [vmem:[#allocation7 + $0x10] sm:$0xff]   ;;  %v3169_v3 = vshrl.u32 %v443_v2, 7 }
  0x92   : > { %777 = vmatprep.subr.bf16.mxu1 %v2563_v12  ;;  %v2583_v42 = vld [vmem:[#allocation7] sm:$0xff]   ;;  %v2584_v44 = vld [vmem:[#allocation7 + $0x8] sm:$0xff]   ;;  %v2586_v46 = vld [vmem:[#allocation7 + $0x18] sm:$0xff]   ;;  %s2084_s22 = sshll.u32 %s426_s12, 4  ;;  %s2219_s15 = sshll.u32 %s2957_s17, 8 }
  0x93   : > { %v2587_v47 = vld [vmem:[#allocation7 + $0x20] sm:$0xff]   ;;  %v2588_v48 = vld [vmem:[#allocation7 + $0x28] sm:$0xff]   ;;  %v2589_v49 = vld [vmem:[#allocation7 + $0x30] sm:$0xff]   ;;  %v3173_v5 = vand.u32 15, %v3169_v3  ;;  %vm862_vm1 = vcmp.lt.s32.totalorder %v3169_v3, 7  ;;  %vm857_vm2 = vcmp.lt.s32.totalorder %v3169_v3, 1  ;;  %s3295_s24 = scalar_lea.hbm %s3349_s10, %s2219_s15 }
  0x94   : > { %2299 = vmatpush3.bf16.msra.mxu0 %v2545_v4  ;;  %v2590_v50 = vld [vmem:[#allocation7 + $0x38] sm:$0xff]   ;;  %v2591_v51 = vld [vmem:[#allocation5 + $0xc0] ss:$12 sps:$4 sm:$0xff]   ;;  %v2593_v52 = vld [vmem:[#allocation5 + $0xc4] ss:$12 sps:$4 sm:$0xff]   ;;  %v445_v4 = vadd.s32 8, %v3169_v3 }
  0x95   : > { %2300 = vmatprep.subr.bf16.mxu0 %v2875_v0  ;;  %778 = vmatpush1.bf16.msra.mxu1 %v2565_v14  ;;  %v2597_v53 = vld [vmem:[#allocation5 + $0xdc] ss:$12 sps:$4 sm:$0xff]   ;;  %v470_v54 = vld [vmem:[%s439_s11] sm:$0xff]  ;;  %v2605_v59 = vld [vmem:[#allocation5 + $0x10c] ss:$12 sps:$4 sm:$0xff]   ;;  %vm865_vm3 = vcmp.ge.s32.totalorder %v3173_v5, 1 }
  0x96   : > { %779 = vmatprep.subr.bf16.mxu1 %v2567_v15  ;;  %602 = vperm.xlu0 %2541, %v470_v54   ;;  %v2595_v55 = vld [vmem:[#allocation5 + $0xd8] ss:$12 sps:$4 sm:$0xff]   ;;  %v471_v56 = vld [vmem:[%s439_s11 + $0x8] sm:$0xff]  ;;  %v2601_v57 = vld [vmem:[#allocation5 + $0xf4] ss:$12 sps:$4 sm:$0xff]   ;;  %v3175_v6 = vand.u32 15, %v445_v4 }
  0x97   : > { %v2599_v58 = vld [vmem:[#allocation5 + $0xf0] ss:$12 sps:$4 sm:$0xff]   ;;  %v2603_v60 = vld [vmem:[#allocation5 + $0x108] ss:$12 sps:$4 sm:$0xff]   ;;  %v2607_v62 = vld [vmem:[#allocation5 + $0x120] ss:$12 sps:$4 sm:$0xff]  }
  0x98   : > { %2301 = vmatpush3.bf16.msra.mxu0 %v2546_v9  ;;  %v2609_v61 = vld [vmem:[#allocation5 + $0x124] ss:$12 sps:$4 sm:$0xff]   ;;  %v2613_v63 = vld [vmem:[#allocation5 + $0x13c] ss:$12 sps:$4 sm:$0xff]   ;;  %vm876_vm4 = vcmp.lt.s32.totalorder %v3175_v6, 15  ;;  %vm1266_vm5 = vcmp.lt.s32.totalorder %v3169_v3, 6 }
  0x99   : > { %2302 = vmatprep.subr.bf16.mxu0 %v2875_v0  ;;  %780 = vmatpush1.bf16.msra.mxu1 %v2569_v17  ;;  %v2611_v1 = vld [vmem:[#allocation5 + $0x138] ss:$12 sps:$4 sm:$0xff]   ;;  %vm1261_vm6 = vcmp.lt.s32.totalorder %v3169_v3, 2  ;;  %vm1269_vm7 = vcmp.ge.s32.totalorder %v3173_v5, 2  ;;  %vm1280_vm8 = vcmp.lt.s32.totalorder %v3175_v6, 14  ;;  %vm1668_vm9 = vcmp.lt.s32.totalorder %v3169_v3, 4 }
  0x9a   : > { %781 = vmatprep.subr.bf16.mxu1 %v2571_v19  ;;  %607 = vperm.xlu0 %2541, %v471_v56   ;;  %v2626_v2 = vld [vmem:[#allocation7 + $0x58] sm:$0xff]   ;;  %v2627_v4 = vld [vmem:[#allocation7 + $0x60] sm:$0xff]   ;;  %vm1675_vm10 = vcmp.ge.s32.totalorder %v3173_v5, 4  ;;  %vm1686_vm11 = vcmp.lt.s32.totalorder %v3175_v6, 12  ;;  %s428_s11 = scalar_lea.vmem [#allocation10], %s2084_s22  ;;  %s3298_s17 = scalar_lea.sflag [#allocation4], %s426_s12 }
  0x9b   : > { %v2194_v3 = vld [vmem:[%s3344_s5 + $0x2] ss:$0 sm:$0xff]  ;;  %s1957_s27 = sshll.u32 %s428_s11, 4  ;;  %p3377_p3 = scmp.ne.s32.totalorder %s3363_s23, 0  ;;  %s3290_s27 = int_to_ptr.vmem [resolvable:$true] %s1957_s27 }
  0x9c   : > { %2303 = vmatpush3.bf16.msra.mxu0 %v2547_v13  ;;  %s2791_s4 = scalar_lea.vmem %s3290_s27, 256  ;;  %s2878_s25 = smov [#allocation10]  }
  0x9d   : > { %2304 = vmatprep.subr.bf16.mxu0 %v2875_v0  ;;  %782 = vmatpush1.bf16.msra.mxu1 %v2573_v20  ;;  %p2792_p2 = scmp.ne.s32.totalorder %s3290_s27, %s2791_s4  ;;  %s2795_s28 = sshll.u32 %s2878_s25, 4  ;;  %s2796_s28 = int_to_ptr.vmem [resolvable:$false] %s2795_s28 }
  0x9e   : > { %783 = vmatprep.subr.bf16.mxu1 %v2575_v22  ;;  %s2797_s26 = scalar_lea.vmem %s2796_s28, 512  ;;  %p2798_p8 = scmp.lt.s32.totalorder %s3290_s27, %s2796_s28 }
  0x9f   : > { %p2793_p4 = pnand %p2792_p2, %p3377_p3  ;;  %p2799_p11 = scmp.lt.s32.totalorder %s2797_s26, %s2791_s4 }
  0xa0   : > { %2305 = vmatpush3.bf16.msra.mxu0 %v2548_v16 }
  0xa1   : > { %2306 = vmatprep.subr.bf16.mxu0 %v2875_v0  ;;  %784 = vmatpush1.bf16.msra.mxu1 %v2577_v29  ;;  %p2794_p7 = pneg %p2793_p4  ;;  %p2800_p13 = por %p2799_p11, %p2798_p8 }
  0xa2   : > { %785 = vmatprep.subr.bf16.mxu1 %v2579_v31 }
  0xa3   : > { %p2801_p0 = pnand %p2800_p13, %p2794_p7 }
  0xa4   : > { %2307 = vmatpush3.bf16.msra.mxu0 %v2549_v18 }
  0xa5   : > { %2312 = vmatprep.subr.bf16.mxu0 %v2875_v0  ;;  %786 = vmatpush1.bf16.msra.mxu1 %v2581_v32 }
  0xa6   : > { %2332 = vmatprep.subr.bf16.mxu1 %v2875_v0 }
  0xa7   : > { %2309 = vmatmul.mubr.bf16.vlgmr.msra.gmra.mrb[0].mxu0 %v2550_v21 }
  0xa8   : > { %2313 = vmatpush3.bf16.msra.mxu0 %v2554_v23  ;;  %2328 = vmatprep.mubr.msk.bf16.mxu0 %vm2876_vm0, %v2875_v0 }
  0xa9   : > { %2314 = vmatprep.subr.bf16.mxu0 %v2875_v0 }
  0xac   : > { %2315 = vmatpush3.bf16.msra.mxu0 %v2558_v24 }
  0xad   : > { %2316 = vmatprep.subr.bf16.mxu0 %v2875_v0 }
  0xb0   : > { %2317 = vmatpush3.bf16.msra.mxu0 %v2562_v25 }
  0xb1   : > { %2318 = vmatprep.subr.bf16.mxu0 %v2875_v0 }
  0xb4   : > { %2319 = vmatpush3.bf16.msra.mxu0 %v2566_v26 }
  0xb5   : > { %2320 = vmatprep.subr.bf16.mxu0 %v2875_v0 }
  0xb8   : > { %2321 = vmatpush3.bf16.msra.mxu0 %v2570_v27  ;;  %v2123_v27 = vld [vmem:[%s3344_s5] ss:$0 sm:$0xff] }
  0xb9   : > { %2322 = vmatprep.subr.bf16.mxu0 %v2875_v0 }
  0xbc   : > { %2323 = vmatpush3.bf16.msra.mxu0 %v2574_v28 }
  0xbd   : > { %2324 = vmatprep.subr.bf16.mxu0 %v2875_v0 }
  0xc0   : > { %2325 = vmatpush3.bf16.msra.mxu0 %v2578_v30 }
  0xc1   : > { %2326 = vmatprep.subr.bf16.mxu0 %v2875_v0 }
  0xc4   : > { %2327 = vmatpush3.bf16.msra.mxu0 %v2582_v33 }
  0xc5   : > { %1175 = vmatprep.subr.bf16.mxu0 %v2593_v52 }
 0x17a   : > { %v585_v36 = vpop.f32.mrb[0].mxu0 }
 0x17b   : > { %v2310_v37 = vpop.f32.mrb[1].mxu0  ;;  %v3148_v39 = vadd.f32 %v2089_v35, %v585_v36 }
 0x17c   : > { %v588_v38 = vpop.f32.mrb[2].mxu0  ;;  %v2598_v37 = vld [vmem:[#allocation5 + $0xe0] ss:$12 sps:$4 sm:$0xff]  }
 0x17d   : > { %v3150_v40 = vadd.f32 %v2089_v35, %v588_v38  ;;  %v2311_v41 = vpop.f32.mrb[3].mxu0  ;;  %v2594_v35 = vld [vmem:[#allocation5 + $0xc8] ss:$12 sps:$4 sm:$0xff]   ;;  %v2602_v38 = vld [vmem:[#allocation5 + $0xf8] ss:$12 sps:$4 sm:$0xff]  }
 0x17e   : > { %v2606_v41 = vld [vmem:[#allocation5 + $0x110] ss:$12 sps:$4 sm:$0xff]  }
 0x17f   : > { %v610_v43 = vpack.c.bf16 %v3150_v40, %v3148_v39 }
 0x181   : > { %804 = vmatmul.mubr.bf16.vlgmr.msra.gmra.mrb[0].mxu1 %v610_v43  ;;  %2329 = vmatmul.mubr.bf16.vlgmr.msra.gmra.mrb[4].mxu0 %v610_v43  ;;  %v2614_v43 = vld [vmem:[#allocation5 + $0x140] ss:$12 sps:$4 sm:$0xff]  }
 0x182   : > { %2333 = vmatpush3.bf16.msra.mxu1 %v2583_v42  ;;  %2348 = vmatprep.mubr.msk.bf16.mxu1 %vm2876_vm0, %v2875_v0  ;;  %v2610_v42 = vld [vmem:[#allocation5 + $0x128] ss:$12 sps:$4 sm:$0xff]  }
 0x183   : > { %2334 = vmatprep.subr.bf16.mxu1 %v2875_v0  ;;  %1207 = vmatprep.mubr.bf16.mxu0 %v2877_v34 }
 0x184   : > { %1176 = vmatpush1.bf16.msra.mxu0 %v2591_v51  ;;  %v3197_v51 = vpop.permute.xlu0 %602 }
 0x185   : > { %1177 = vmatprep.subr.bf16.mxu0 %v2597_v53 }
 0x186   : > { %2335 = vmatpush3.bf16.msra.mxu1 %v2584_v44  ;;  %v2617_v44 = vld [vmem:[#allocation5 + $0x154] ss:$12 sps:$4 sm:$0xff]  }
 0x187   : > { %2336 = vmatprep.subr.bf16.mxu1 %v2875_v0 }
 0x188   : > { %1178 = vmatpush1.bf16.msra.mxu0 %v2595_v55 }
 0x189   : > { %1179 = vmatprep.subr.bf16.mxu0 %v2601_v57 }
 0x18a   : > { %2337 = vmatpush3.bf16.msra.mxu1 %v2585_v45  ;;  %v2615_v45 = vld [vmem:[#allocation5 + $0x150] ss:$12 sps:$4 sm:$0xff]  }
 0x18b   : > { %2338 = vmatprep.subr.bf16.mxu1 %v2875_v0 }
 0x18c   : > { %1180 = vmatpush1.bf16.msra.mxu0 %v2599_v58 }
 0x18d   : > { %1181 = vmatprep.subr.bf16.mxu0 %v2605_v59 }
 0x18e   : > { %2339 = vmatpush3.bf16.msra.mxu1 %v2586_v46  ;;  %v2618_v46 = vld [vmem:[#allocation5 + $0x158] ss:$12 sps:$4 sm:$0xff]  }
 0x18f   : > { %2340 = vmatprep.subr.bf16.mxu1 %v2875_v0 }
 0x190   : > { %1182 = vmatpush1.bf16.msra.mxu0 %v2603_v60  ;;  %v3201_v60 = vpop.permute.xlu0 %607 }
 0x191   : > { %1183 = vmatprep.subr.bf16.mxu0 %v2609_v61 }
 0x192   : > { %2341 = vmatpush3.bf16.msra.mxu1 %v2587_v47  ;;  %v2621_v47 = vld [vmem:[#allocation5 + $0x16c] ss:$12 sps:$4 sm:$0xff]  }
 0x193   : > { %2342 = vmatprep.subr.bf16.mxu1 %v2875_v0 }
 0x194   : > { %1184 = vmatpush1.bf16.msra.mxu0 %v2607_v62 }
 0x195   : > { %1185 = vmatprep.subr.bf16.mxu0 %v2613_v63  ;;  %v2623_v63 = vld [vmem:[#allocation7 + $0x40] sm:$0xff]  }
 0x196   : > { %2343 = vmatpush3.bf16.msra.mxu1 %v2588_v48  ;;  %v2619_v48 = vld [vmem:[#allocation5 + $0x168] ss:$12 sps:$4 sm:$0xff]  }
 0x197   : > { %2344 = vmatprep.subr.bf16.mxu1 %v2875_v0 }
 0x198   : > { %1186 = vmatpush1.bf16.msra.mxu0 %v2611_v1 }
 0x199   : > { %1187 = vmatprep.subr.bf16.mxu0 %v2617_v44  ;;  %v2158_v44 = vld [vmem:[%s3344_s5 + $0x1] ss:$0 sm:$0xff] }
 0x19a   : > { %2345 = vmatpush3.bf16.msra.mxu1 %v2589_v49  ;;  %v2622_v49 = vld [vmem:[#allocation5 + $0x170] ss:$12 sps:$4 sm:$0xff]  }
 0x19b   : > { %2346 = vmatprep.subr.bf16.mxu1 %v2875_v0 }
 0x19c   : > { %1188 = vmatpush1.bf16.msra.mxu0 %v2615_v45 }
 0x19d   : > { %1189 = vmatprep.subr.bf16.mxu0 %v2621_v47 }
 0x19e   : > { %2347 = vmatpush3.bf16.msra.mxu1 %v2590_v50  ;;  %v2124_v50 = vld [vmem:[%s3346_s7] ss:$0 sm:$0xff] }
 0x19f   : > { %2352 = vmatprep.subr.bf16.mxu1 %v2875_v0 }
 0x1a0   : > { %1190 = vmatpush1.bf16.msra.mxu0 %v2619_v48 }
 0x1a1   : > { %2372 = vmatprep.subr.bf16.mxu0 %v2875_v0 }
 0x254   : > { %v805_v7 = vpop.f32.mrb[0].mxu1  ;;  %v848_v8 = vpop.f32.mrb[4].mxu0 }
 0x255   : > { %v807_v9 = vpop.f32.mrb[1].mxu1  ;;  %v2330_v10 = vpop.f32.mrb[5].mxu0  ;;  %v855_v13 = vrot.slane %v805_v7, 7  ;;  %v860_v14 = vrot.slane %v848_v8, 1  ;;  %v2628_v7 = vld [vmem:[#allocation7 + $0x68] sm:$0xff]   ;;  %v2630_v8 = vld [vmem:[#allocation7 + $0x78] sm:$0xff]  }
 0x256   : > { %v809_v11 = vpop.f32.mrb[2].mxu1  ;;  %v851_v12 = vpop.f32.mrb[6].mxu0  ;;  %v2633_v10 = vld [vmem:[#allocation5 + $0x184] ss:$12 sps:$4 sm:$0xff]  }
 0x257   : > { %v856_v15 = vrot.slane %v809_v11, 7  ;;  %v861_v16 = vrot.slane %v851_v12, 1  ;;  %v811_v17 = vpop.f32.mrb[3].mxu1  ;;  %v2331_v18 = vpop.f32.mrb[7].mxu0  ;;  %v2637_v11 = vld [vmem:[#allocation5 + $0x19c] ss:$12 sps:$4 sm:$0xff]  }
 0x258   : > { %v2635_v12 = vld [vmem:[#allocation5 + $0x198] ss:$12 sps:$4 sm:$0xff]   ;;  %v2647_v18 = vld [vmem:[#allocation5 + $0x1e0] ss:$12 sps:$4 sm:$0xff]  }
 0x259   : > { %v863_v19 = vsel %vm862_vm1, %v860_v14, %v861_v16  ;;  %v858_v20 = vsel %vm857_vm2, %v855_v13, %v856_v15  ;;  %v859_v21 = vsel %vm857_vm2, %v856_v15, %v855_v13  ;;  %v864_v22 = vsel %vm862_vm1, %v861_v16, %v860_v14  ;;  %v2641_v13 = vld [vmem:[#allocation5 + $0x1b4] ss:$12 sps:$4 sm:$0xff]   ;;  %v2639_v14 = vld [vmem:[#allocation5 + $0x1b0] ss:$12 sps:$4 sm:$0xff]   ;;  %v2645_v15 = vld [vmem:[#allocation5 + $0x1cc] ss:$12 sps:$4 sm:$0xff]  }
 0x25a   : > { %v871_v23 = vsel %vm865_vm3, %v859_v21, 0.0  ;;  %v874_v24 = vadd.f32 %v858_v20, %v811_v17  ;;  %v882_v25 = vsel %vm876_vm4, %v864_v22, 0.0  ;;  %v2643_v16 = vld [vmem:[#allocation5 + $0x1c8] ss:$12 sps:$4 sm:$0xff]   ;;  %v2649_v17 = vld [vmem:[#allocation5 + $0x1e4] ss:$12 sps:$4 sm:$0xff]  }
 0x25b   : > { %v873_v26 = vadd.f32 %v871_v23, %v807_v9  ;;  %v2631_v9 = vld [vmem:[#allocation5 + $0x180] ss:$12 sps:$4 sm:$0xff]   ;;  %v2651_v20 = vld [vmem:[#allocation5 + $0x1f8] ss:$12 sps:$4 sm:$0xff]  }
 0x25c   : > { %v884_v28 = vadd.f32 %v882_v25, %v874_v24 }
 0x25d   : > { %v883_v29 = vadd.f32 %v873_v26, %v863_v19  ;;  %v2653_v19 = vld [vmem:[#allocation5 + $0x1fc] ss:$12 sps:$4 sm:$0xff]  }
 0x25e   : > { %v893_v30 = vadd.f32 %v2123_v27, %v884_v28 }
 0x25f   : > { %v892_v31 = vadd.f32 %v2123_v27, %v883_v29 }
 0x260   : > { %v895_v32 = vmax.f32 %v893_v30, 0.0 }
 0x261   : > { %v894_v33 = vmax.f32 %v892_v31, 0.0 }
 0x263   : > { %v896_v36 = vpack.c.bf16 %v895_v32, %v894_v33 }
 0x265   : > { %2349 = vmatmul.mubr.bf16.vlgmr.msra.gmra.mrb[4].mxu1 %v896_v36 }
 0x266   : > { %2353 = vmatpush3.bf16.msra.mxu1 %v2594_v35  ;;  %2368 = vmatprep.mubr.msk.bf16.mxu1 %vm2876_vm0, %v2875_v0 }
 0x267   : > { %2354 = vmatprep.subr.bf16.mxu1 %v2875_v0 }
 0x26a   : > { %2355 = vmatpush3.bf16.msra.mxu1 %v2598_v37 }
 0x26b   : > { %2356 = vmatprep.subr.bf16.mxu1 %v2875_v0 }
 0x26e   : > { %2357 = vmatpush3.bf16.msra.mxu1 %v2602_v38 }
 0x26f   : > { %2358 = vmatprep.subr.bf16.mxu1 %v2875_v0 }
 0x272   : > { %2359 = vmatpush3.bf16.msra.mxu1 %v2606_v41 }
 0x273   : > { %2360 = vmatprep.subr.bf16.mxu1 %v2875_v0 }
 0x276   : > { %2361 = vmatpush3.bf16.msra.mxu1 %v2610_v42 }
 0x277   : > { %2362 = vmatprep.subr.bf16.mxu1 %v2875_v0 }
 0x27a   : > { %2363 = vmatpush3.bf16.msra.mxu1 %v2614_v43 }
 0x27b   : > { %2364 = vmatprep.subr.bf16.mxu1 %v2875_v0 }
 0x27e   : > { %2365 = vmatpush3.bf16.msra.mxu1 %v2618_v46 }
 0x27f   : > { %2366 = vmatprep.subr.bf16.mxu1 %v2875_v0 }
 0x282   : > { %2367 = vmatpush3.bf16.msra.mxu1 %v2622_v49 }
 0x283   : > { %1582 = vmatprep.subr.bf16.mxu1 %v2633_v10 }
 0x338   : > { %v1002_v52 = vpop.f32.mrb[4].mxu1 }
 0x339   : > { %v1003_v53 = vadd.f32 %v2124_v50, %v1002_v52  ;;  %v2350_v54 = vpop.f32.mrb[5].mxu1  ;;  %v2634_v52 = vld [vmem:[#allocation5 + $0x188] ss:$12 sps:$4 sm:$0xff]  }
 0x33a   : > { %v1005_v55 = vpop.f32.mrb[6].mxu1  ;;  %v2638_v54 = vld [vmem:[#allocation5 + $0x1a0] ss:$12 sps:$4 sm:$0xff]  }
 0x33b   : > { %v1009_v56 = vadd.f32 %v1003_v53, %v3148_v39  ;;  %v1006_v57 = vadd.f32 %v2124_v50, %v1005_v55  ;;  %v2351_v58 = vpop.f32.mrb[7].mxu1  ;;  %v2624_v39 = vld [vmem:[#allocation7 + $0x48] sm:$0xff]   ;;  %v2642_v55 = vld [vmem:[#allocation5 + $0x1b8] ss:$12 sps:$4 sm:$0xff]  }
 0x33c   : > { %v2654_v58 = vld [vmem:[#allocation5 + $0x200] ss:$12 sps:$4 sm:$0xff]  }
 0x33d   : > { %v1010_v59 = vadd.f32 %v1006_v57, %v3150_v40  ;;  %v3204_v61 = vmul.f32 %v1009_v56, %v3197_v51  ;;  %v2625_v40 = vld [vmem:[#allocation7 + $0x50] sm:$0xff]  }
 0x33e   : > { %v2646_v56 = vld [vmem:[#allocation5 + $0x1d0] ss:$12 sps:$4 sm:$0xff]   ;;  %v2650_v57 = vld [vmem:[#allocation5 + $0x1e8] ss:$12 sps:$4 sm:$0xff]  }
 0x33f   : > { %v3207_v62 = vmul.f32 %v1010_v59, %v3201_v60  ;;  %v2657_v59 = vld [vmem:[#allocation5 + $0x214] ss:$12 sps:$4 sm:$0xff]  }
 0x341   : > { %v1013_v1 = vpack.c.bf16 %v3207_v62, %v3204_v61 }
 0x343   : > { %1208 = vmatmul.mubr.bf16.vlgmr.msra.gmra.mrb[8].mxu0 %v1013_v1  ;;  %2369 = vmatmul.mubr.bf16.vlgmr.msra.gmra.mrb[8].mxu1 %v1013_v1  ;;  %v2658_v1 = vld [vmem:[#allocation5 + $0x218] ss:$12 sps:$4 sm:$0xff]  }
 0x344   : > { %2373 = vmatpush3.bf16.msra.mxu0 %v2623_v63  ;;  %2388 = vmatprep.mubr.msk.bf16.mxu0 %vm2876_vm0, %v2875_v0  ;;  %v2655_v63 = vld [vmem:[#allocation5 + $0x210] ss:$12 sps:$4 sm:$0xff]  }
 0x345   : > { %2374 = vmatprep.subr.bf16.mxu0 %v2875_v0  ;;  %1614 = vmatprep.mubr.bf16.mxu1 %v2877_v34  ;;  %v2629_v34 = vld [vmem:[#allocation7 + $0x70] sm:$0xff]  }
 0x346   : > { %1583 = vmatpush1.bf16.msra.mxu1 %v2631_v9 }
 0x347   : > { %1584 = vmatprep.subr.bf16.mxu1 %v2637_v11 }
 0x348   : > { %2375 = vmatpush3.bf16.msra.mxu0 %v2624_v39  ;;  %v2661_v39 = vld [vmem:[#allocation5 + $0x22c] ss:$12 sps:$4 sm:$0xff]  }
 0x349   : > { %2376 = vmatprep.subr.bf16.mxu0 %v2875_v0 }
 0x34a   : > { %1585 = vmatpush1.bf16.msra.mxu1 %v2635_v12 }
 0x34b   : > { %1586 = vmatprep.subr.bf16.mxu1 %v2641_v13 }
 0x34c   : > { %2377 = vmatpush3.bf16.msra.mxu0 %v2625_v40  ;;  %v2659_v40 = vld [vmem:[#allocation5 + $0x228] ss:$12 sps:$4 sm:$0xff]  }
 0x34d   : > { %2378 = vmatprep.subr.bf16.mxu0 %v2875_v0 }
 0x34e   : > { %1587 = vmatpush1.bf16.msra.mxu1 %v2639_v14 }
 0x34f   : > { %1588 = vmatprep.subr.bf16.mxu1 %v2645_v15 }
 0x350   : > { %2379 = vmatpush3.bf16.msra.mxu0 %v2626_v2  ;;  %v2662_v2 = vld [vmem:[#allocation5 + $0x230] ss:$12 sps:$4 sm:$0xff]  }
 0x351   : > { %2380 = vmatprep.subr.bf16.mxu0 %v2875_v0 }
 0x352   : > { %1589 = vmatpush1.bf16.msra.mxu1 %v2643_v16  ;;  %v2663_v16 = vld [vmem:[#allocation7 + $0x80] sm:$0xff]  }
 0x353   : > { %1590 = vmatprep.subr.bf16.mxu1 %v2649_v17 }
 0x354   : > { %2381 = vmatpush3.bf16.msra.mxu0 %v2627_v4  ;;  %v2160_v4 = vld [vmem:[%s3346_s7 + $0x1] ss:$0 sm:$0xff] }
 0x355   : > { %2382 = vmatprep.subr.bf16.mxu0 %v2875_v0 }
 0x356   : > { %1591 = vmatpush1.bf16.msra.mxu1 %v2647_v18  ;;  %v2664_v18 = vld [vmem:[#allocation7 + $0x88] sm:$0xff]  }
 0x357   : > { %1592 = vmatprep.subr.bf16.mxu1 %v2653_v19  ;;  %v2667_v19 = vld [vmem:[#allocation7 + $0xa0] sm:$0xff]  }
 0x358   : > { %2383 = vmatpush3.bf16.msra.mxu0 %v2628_v7 }
 0x359   : > { %2384 = vmatprep.subr.bf16.mxu0 %v2875_v0 }
 0x35a   : > { %1593 = vmatpush1.bf16.msra.mxu1 %v2651_v20  ;;  %v2668_v20 = vld [vmem:[#allocation7 + $0xa8] sm:$0xff]  }
 0x35b   : > { %1594 = vmatprep.subr.bf16.mxu1 %v2657_v59  ;;  %v2678_v59 = vld [vmem:[#allocation8 + $0x38] sm:$0xff]  }
 0x35c   : > { %2385 = vmatpush3.bf16.msra.mxu0 %v2629_v34 }
 0x35d   : > { %2386 = vmatprep.subr.bf16.mxu0 %v2875_v0 }
 0x35e   : > { %1595 = vmatpush1.bf16.msra.mxu1 %v2655_v63  ;;  %v2196_v63 = vld [vmem:[%s3346_s7 + $0x2] ss:$0 sm:$0xff] }
 0x35f   : > { %1596 = vmatprep.subr.bf16.mxu1 %v2661_v39 }
 0x360   : > { %2387 = vmatpush3.bf16.msra.mxu0 %v2630_v8 }
 0x361   : > { %2392 = vmatprep.subr.bf16.mxu0 %v2875_v0 }
 0x362   : > { %1597 = vmatpush1.bf16.msra.mxu1 %v2659_v40 }
 0x363   : > { %2412 = vmatprep.subr.bf16.mxu1 %v2875_v0 }
 0x416   : > { %v1209_v21 = vpop.f32.mrb[8].mxu0  ;;  %v1252_v22 = vpop.f32.mrb[8].mxu1 }
 0x417   : > { %v1211_v23 = vpop.f32.mrb[9].mxu0  ;;  %v2370_v24 = vpop.f32.mrb[9].mxu1  ;;  %v1259_v27 = vrot.slane %v1209_v21, 6  ;;  %v1264_v28 = vrot.slane %v1252_v22, 2  ;;  %v2669_v21 = vld [vmem:[#allocation7 + $0xb0] sm:$0xff]   ;;  %v2670_v22 = vld [vmem:[#allocation7 + $0xb8] sm:$0xff]  }
 0x418   : > { %v1213_v25 = vpop.f32.mrb[10].mxu0  ;;  %v1255_v26 = vpop.f32.mrb[10].mxu1  ;;  %v2672_v24 = vld [vmem:[#allocation8 + $0x8] sm:$0xff]  }
 0x419   : > { %v1260_v29 = vrot.slane %v1213_v25, 6  ;;  %v1265_v30 = vrot.slane %v1255_v26, 2  ;;  %v1215_v31 = vpop.f32.mrb[11].mxu0  ;;  %v2371_v32 = vpop.f32.mrb[11].mxu1  ;;  %v2673_v25 = vld [vmem:[#allocation8 + $0x10] sm:$0xff]   ;;  %v2674_v26 = vld [vmem:[#allocation8 + $0x18] sm:$0xff]  }
 0x41b   : > { %v1267_v33 = vsel %vm1266_vm5, %v1264_v28, %v1265_v30  ;;  %v1262_v35 = vsel %vm1261_vm6, %v1259_v27, %v1260_v29  ;;  %v1263_v36 = vsel %vm1261_vm6, %v1260_v29, %v1259_v27  ;;  %v1268_v37 = vsel %vm1266_vm5, %v1265_v30, %v1264_v28  ;;  %v2675_v27 = vld [vmem:[#allocation8 + $0x20] sm:$0xff]  }
 0x41c   : > { %v1275_v38 = vsel %vm1269_vm7, %v1263_v36, 0.0  ;;  %v1278_v41 = vadd.f32 %v1262_v35, %v1215_v31  ;;  %v1286_v42 = vsel %vm1280_vm8, %v1268_v37, 0.0 }
 0x41d   : > { %v1277_v43 = vadd.f32 %v1275_v38, %v1211_v23  ;;  %v2671_v23 = vld [vmem:[#allocation8] sm:$0xff]  }
 0x41e   : > { %v1288_v45 = vadd.f32 %v1286_v42, %v1278_v41 }
 0x41f   : > { %v1287_v46 = vadd.f32 %v1277_v43, %v1267_v33 }
 0x420   : > { %v1298_v47 = vadd.f32 %v2158_v44, %v1288_v45 }
 0x421   : > { %v1297_v48 = vadd.f32 %v2158_v44, %v1287_v46 }
 0x422   : > { %v1300_v49 = vmax.f32 %v1298_v47, 0.0 }
 0x423   : > { %v1299_v50 = vmax.f32 %v1297_v48, 0.0 }
 0x425   : > { %v1301_v53 = vpack.c.bf16 %v1300_v49, %v1299_v50 }
 0x427   : > { %2389 = vmatmul.mubr.bf16.vlgmr.msra.gmra.mrb[12].mxu0 %v1301_v53 }
 0x428   : > { %2393 = vmatpush3.bf16.msra.mxu0 %v2634_v52  ;;  %2408 = vmatprep.mubr.msk.bf16.mxu0 %vm2876_vm0, %v2875_v0 }
 0x429   : > { %2394 = vmatprep.subr.bf16.mxu0 %v2875_v0 }
 0x42c   : > { %2395 = vmatpush3.bf16.msra.mxu0 %v2638_v54 }
 0x42d   : > { %2396 = vmatprep.subr.bf16.mxu0 %v2875_v0 }
 0x430   : > { %2397 = vmatpush3.bf16.msra.mxu0 %v2642_v55 }
 0x431   : > { %2398 = vmatprep.subr.bf16.mxu0 %v2875_v0 }
 0x434   : > { %2399 = vmatpush3.bf16.msra.mxu0 %v2646_v56 }
 0x435   : > { %2400 = vmatprep.subr.bf16.mxu0 %v2875_v0 }
 0x438   : > { %2401 = vmatpush3.bf16.msra.mxu0 %v2650_v57  ;;  %v2676_v57 = vld [vmem:[#allocation8 + $0x28] sm:$0xff]  }
 0x439   : > { %2402 = vmatprep.subr.bf16.mxu0 %v2875_v0 }
 0x43c   : > { %2403 = vmatpush3.bf16.msra.mxu0 %v2654_v58  ;;  %v2677_v58 = vld [vmem:[#allocation8 + $0x30] sm:$0xff]  }
 0x43d   : > { %2404 = vmatprep.subr.bf16.mxu0 %v2875_v0 }
 0x440   : > { %2405 = vmatpush3.bf16.msra.mxu0 %v2658_v1 }
 0x441   : > { %2406 = vmatprep.subr.bf16.mxu0 %v2875_v0 }
 0x444   : > { %2407 = vmatpush3.bf16.msra.mxu0 %v2662_v2 }
 0x445   : > { %2432 = vmatprep.subr.bf16.mxu0 %v2875_v0 }
 0x4fa   : > { %v1409_v7 = vpop.f32.mrb[12].mxu0 }
 0x4fb   : > { %v1410_v34 = vadd.f32 %v2160_v4, %v1409_v7  ;;  %v2390_v8 = vpop.f32.mrb[13].mxu0 }
 0x4fc   : > { %v1412_v9 = vpop.f32.mrb[14].mxu0 }
 0x4fd   : > { %v1416_v10 = vadd.f32 %v1410_v34, %v3204_v61  ;;  %v1413_v11 = vadd.f32 %v2160_v4, %v1412_v9  ;;  %v2391_v12 = vpop.f32.mrb[15].mxu0  ;;  %v2665_v61 = vld [vmem:[#allocation7 + $0x90] sm:$0xff]  }
 0x4ff   : > { %v1417_v13 = vadd.f32 %v1413_v11, %v3207_v62  ;;  %v3246_v14 = vmul.f32 %v1416_v10, %v3197_v51  ;;  %v2666_v62 = vld [vmem:[#allocation7 + $0x98] sm:$0xff]   ;;  %v2205_v11 = vld [vmem:[%s3348_s9] ss:$0 sm:$0xff] }
 0x501   : > { %v3249_v15 = vmul.f32 %v1417_v13, %v3201_v60 }
 0x503   : > { %v1420_v17 = vpack.c.bf16 %v3249_v15, %v3246_v14 }
 0x505   : > { %1615 = vmatmul.mubr.bf16.vlgmr.msra.gmra.mrb[12].mxu1 %v1420_v17  ;;  %2409 = vmatmul.mubr.bf16.vlgmr.msra.gmra.mrb[16].mxu0 %v1420_v17 }
 0x506   : > { %2413 = vmatpush3.bf16.msra.mxu1 %v2663_v16  ;;  %2428 = vmatprep.mubr.msk.bf16.mxu1 %vm2876_vm0, %v2875_v0 }
 0x507   : > { %2414 = vmatprep.subr.bf16.mxu1 %v2875_v0  ;;  %2448 = vmatprep.mubr.msk.bf16.mxu0 %vm2876_vm0, %v2875_v0 }
 0x508   : > { %2433 = vmatpush3.bf16.msra.mxu0 %v2671_v23 }
 0x509   : > { %2434 = vmatprep.subr.bf16.mxu0 %v2875_v0 }
 0x50a   : > { %2415 = vmatpush3.bf16.msra.mxu1 %v2664_v18 }
 0x50b   : > { %2416 = vmatprep.subr.bf16.mxu1 %v2875_v0 }
 0x50c   : > { %2435 = vmatpush3.bf16.msra.mxu0 %v2672_v24 }
 0x50d   : > { %2436 = vmatprep.subr.bf16.mxu0 %v2875_v0 }
 0x50e   : > { %2417 = vmatpush3.bf16.msra.mxu1 %v2665_v61 }
 0x50f   : > { %2418 = vmatprep.subr.bf16.mxu1 %v2875_v0 }
 0x510   : > { %2437 = vmatpush3.bf16.msra.mxu0 %v2673_v25 }
 0x511   : > { %2438 = vmatprep.subr.bf16.mxu0 %v2875_v0 }
 0x512   : > { %2419 = vmatpush3.bf16.msra.mxu1 %v2666_v62 }
 0x513   : > { %2420 = vmatprep.subr.bf16.mxu1 %v2875_v0 }
 0x514   : > { %2439 = vmatpush3.bf16.msra.mxu0 %v2674_v26 }
 0x515   : > { %2440 = vmatprep.subr.bf16.mxu0 %v2875_v0 }
 0x516   : > { %2421 = vmatpush3.bf16.msra.mxu1 %v2667_v19 }
 0x517   : > { %2422 = vmatprep.subr.bf16.mxu1 %v2875_v0 }
 0x518   : > { %2441 = vmatpush3.bf16.msra.mxu0 %v2675_v27 }
 0x519   : > { %2442 = vmatprep.subr.bf16.mxu0 %v2875_v0 }
 0x51a   : > { %2423 = vmatpush3.bf16.msra.mxu1 %v2668_v20 }
 0x51b   : > { %2424 = vmatprep.subr.bf16.mxu1 %v2875_v0 }
 0x51c   : > { %2443 = vmatpush3.bf16.msra.mxu0 %v2676_v57 }
 0x51d   : > { %2444 = vmatprep.subr.bf16.mxu0 %v2875_v0 }
 0x51e   : > { %2425 = vmatpush3.bf16.msra.mxu1 %v2669_v21 }
 0x51f   : > { %2426 = vmatprep.subr.bf16.mxu1 %v2875_v0 }
 0x520   : > { %2445 = vmatpush3.bf16.msra.mxu0 %v2677_v58 }
 0x521   : > { %2446 = vmatprep.subr.bf16.mxu0 %v2875_v0 }
 0x522   : > { %2427 = vmatpush3.bf16.msra.mxu1 %v2670_v22 }
 0x524   : > { %2447 = vmatpush3.bf16.msra.mxu0 %v2678_v59 }
 0x5d8   : > { %v1616_v28 = vpop.f32.mrb[12].mxu1  ;;  %v1659_v29 = vpop.f32.mrb[16].mxu0 }
 0x5d9   : > { %v1618_v30 = vpop.f32.mrb[13].mxu1  ;;  %v2410_v31 = vpop.f32.mrb[17].mxu0  ;;  %v1666_v35 = vrot.slane %v1616_v28, 4  ;;  %v1671_v36 = vrot.slane %v1659_v29, 4 }
 0x5da   : > { %v1620_v32 = vpop.f32.mrb[14].mxu1  ;;  %v1662_v33 = vpop.f32.mrb[18].mxu0 }
 0x5db   : > { %v1667_v37 = vrot.slane %v1620_v32, 4  ;;  %v1672_v38 = vrot.slane %v1662_v33, 4  ;;  %v1622_v41 = vpop.f32.mrb[15].mxu1  ;;  %v2411_v42 = vpop.f32.mrb[19].mxu0 }
 0x5dd   : > { %v1670_v43 = vsel %vm1668_vm9, %v1667_v37, %v1666_v35  ;;  %v1673_v44 = vsel %vm1668_vm9, %v1671_v36, %v1672_v38  ;;  %v1669_v45 = vsel %vm1668_vm9, %v1666_v35, %v1667_v37  ;;  %v1674_v46 = vsel %vm1668_vm9, %v1672_v38, %v1671_v36 }
 0x5de   : > { %v1681_v47 = vsel %vm1675_vm10, %v1670_v43, 0.0  ;;  %v1684_v48 = vadd.f32 %v1669_v45, %v1622_v41  ;;  %v1692_v49 = vsel %vm1686_vm11, %v1674_v46, 0.0 }
 0x5df   : > { %v1683_v50 = vadd.f32 %v1681_v47, %v1618_v30 }
 0x5e0   : > { %v1694_v5 = vadd.f32 %v1692_v49, %v1684_v48 }
 0x5e1   : > { %v1693_v6 = vadd.f32 %v1683_v50, %v1673_v44 }
 0x5e2   : > { %v1704_v52 = vadd.f32 %v2194_v3, %v1694_v5 }
 0x5e3   : > { %v1703_v53 = vadd.f32 %v2194_v3, %v1693_v6 }
 0x5e4   : > { %v1706_v54 = vmax.f32 %v1704_v52, 0.0 }
 0x5e5   : > { %v1705_v55 = vmax.f32 %v1703_v53, 0.0 }
 0x5e7   : > { %v1707_v56 = vpack.c.bf16 %v1706_v54, %v1705_v55 }
 0x5e9   : > { %2429 = vmatmul.mubr.bf16.vlgmr.msra.gmra.mrb[16].mxu1 %v1707_v56 }
 0x6bc   : > { %v1815_v1 = vpop.f32.mrb[16].mxu1 }
 0x6bd   : > { %v1816_v39 = vadd.f32 %v2196_v63, %v1815_v1  ;;  %v2430_v40 = vpop.f32.mrb[17].mxu1 }
 0x6be   : > { %v1818_v2 = vpop.f32.mrb[18].mxu1 }
 0x6bf   : > { %v1822_v4 = vadd.f32 %v1816_v39, %v3246_v14  ;;  %v1819_v7 = vadd.f32 %v2196_v63, %v1818_v2  ;;  %v2431_v34 = vpop.f32.mrb[19].mxu1 }
 0x6c1   : > { %v1823_v8 = vadd.f32 %v1819_v7, %v3249_v15  ;;  %v1824_v0 = vmul.f32 %v1822_v4, %v3197_v51 }
 0x6c3   : > { %v1825_v9 = vmul.f32 %v1823_v8, %v3201_v60 }
 0x6c5   : > { %v1826_v10 = vpack.c.bf16 %v1825_v9, %v1824_v0 }
 0x6c7   : > { %2449 = vmatmul.mubr.bf16.vlgmr.msra.gmra.mrb[20].mxu0 %v1826_v10 }
 0x79a   : > { %v1932_v12 = vpop.f32.mrb[20].mxu0 }
 0x79b   : > { %v1933_v13 = vadd.f32 %v2205_v11, %v1932_v12  ;;  %v2450_v14 = vpop.f32.mrb[21].mxu0 }
 0x79c   : > { %v1935_v15 = vpop.f32.mrb[22].mxu0 }
 0x79d   : > { %v1939_v16 = vmul.f32 %v1933_v13, %v3197_v51  ;;  %v1936_v17 = vadd.f32 %v2205_v11, %v1935_v15  ;;  %v2451_v18 = vpop.f32.mrb[23].mxu0 }
 0x79f   : > { %1941 = vst [vmem:[%s428_s11] sm:$0xff] %v1939_v16  ;;  %v1940_v61 = vmul.f32 %v1936_v17, %v3201_v60 }
 0x7a1   : > { %1942 = vst [vmem:[%s428_s11 + $0x8] sm:$0xff] %v1940_v61 }
 0x7a2   : > { %2804 = shalt.err (!%p2801_p0)
}
 0x7a3   : > { %s2805_s19 = scalar_lea.hbm %s3295_s24, 256  ;;  %s2809_s12 = scalar_lea.hbm %s3349_s10, 512 }
 0x7a4   : > { %p2806_p5 = scmp.ne.s32.totalorder %s3295_s24, %s2805_s19  ;;  %p2810_p10 = scmp.lt.u32.totalorder %s3295_s24, %s3349_s10 }
 0x7a5   : > { %p2811_p12 = scmp.lt.u32.totalorder %s2809_s12, %s2805_s19  ;;  %p2813_p2 = scmp.lt.u32.totalorder %s2805_s19, %s3295_s24 }
 0x7a6   : > { %p2807_p6 = pnand %p2806_p5, %p3377_p3 }
 0x7a7   : > { %p2812_p1 = por %p2811_p12, %p2810_p10 }
 0x7a8   : > { %p2808_p9 = pneg %p2807_p6 }
 0x7a9   : > { %p2814_p4 = por %p2813_p2, %p2812_p1 }
 0x7ab   : > { %p2815_p7 = pnand %p2814_p4, %p2808_p9 }
 0x7ad   : > { %2818 = shalt.err (!%p2815_p7)
}
 0x7ae   : > { %s2879_s29 = smov 128   ;;  %s2880_s11 = smov 8  }
 0x7af   : > { %2468 = dma.vmem_to_hbm [thread:$0]  (%p3377_p3), %s3290_s27, 256, %s3295_s24, %s3298_s17, %s2879_s29, %s2879_s29, %s2880_s11  }
 0x7b0 PF: > { %s3378_s15 = sld [smem:[#allocation15_spill]]  ;;  %s3379_s30 = sld [smem:[#allocation19_spill]] }
 0x7b1   : > { %p2495_p8 = scmp.ge.s32.totalorder %s2865_s16, 2 }
 0x7b6   : > { %s1972_s20 = sand.u32 1, %s3378_s15   ;;  %p3380_p11 = scmp.ne.s32.totalorder %s3379_s30, 0 }
 0x7b7   : > { %s1973_s4 = scalar_lea.sflag [#allocation4], %s1972_s20 }
 0x7b8   : > { %p2484_p13 = pnand %p2495_p8, %p3380_p11 }
 0x7ba   : > { %2848 = dma.done.wait (!%p2484_p13), %s1973_s4, 256  }
 0x7bb   : > { %2850 = vsyncadd (!%p2484_p13), %s1973_s4, 4294967040  ;;  %s3381_s16 = sld [smem:[#allocation17_spill]]  ;;  %s3382_s25 = sld [smem:[#allocation16_spill]] }
 0x7bc   : > { %s3383_s15 = sld [smem:[#allocation18_spill]]  ;;  %s3384_s13 = smov %s2857_s14 }
 0x7c1   : > { %p23_p0 = scmp.ge.s32.totalorder %s3381_s16, 4   ;;  %s3385_s14 = smov %s3382_s25 }
 0x7c3   :  { %25 = sbr.rel (!%p23_p0) target bundleno = 8 (0x8), region = 123 }
 0x7ca   :  { %1978 = vsyncpa [#allocation3], 1 }
 0x7cb   :  { %1980 = vsyncpa [#allocation3 + $0x1], 1 }
 0x7cc   :  { %1981 = vsyncpa [#allocation6], 1 }
 0x7cd   :  { %1982 = vsyncpa [#allocation9], 1 }
 0x7ce   :  { %1983 = vsyncpa [#allocation4], 1 }
 0x7cf   :  { %1985 = vsyncpa [#allocation4 + $0x1], 1 }

// kernel: tpu_custom_call.1
= control target key start
LH: loop header
LB: loop body
LE: loop exit
PB: predicated region body
PF: predicated region fallthrough
CT: control target
= control target key end

     0   :  { %s3339_s0 = inlined_call_operand.vmem [shape: bf16[32,128], index: 0, kind: input, shape index: {}]   ;;  %s3340_s1 = inlined_call_operand.vmem [shape: f32[32,1], index: 1, kind: input, shape index: {}]   ;;  %s3341_s2 = inlined_call_operand.hbm [shape: bf16[128,128], index: 2, kind: input, shape index: {}]   ;;  %s3342_s3 = inlined_call_operand.vmem [shape: f32[1,128], index: 3, kind: input, shape index: {}]   ;;  %s3343_s4 = inlined_call_operand.hbm [shape: bf16[3,128,384], index: 4, kind: input, shape index: {}]   ;;  %s3344_s5 = inlined_call_operand.vmem [shape: f32[3,1,128], index: 5, kind: input, shape index: {}]   ;;  %s3345_s6 = inlined_call_operand.hbm [shape: bf16[3,128,128], index: 6, kind: input, shape index: {}]   ;;  %s3346_s7 = inlined_call_operand.vmem [shape: f32[3,1,128], index: 7, kind: input, shape index: {}]   ;;  %s3347_s8 = inlined_call_operand.hbm [shape: bf16[128,128], index: 8, kind: input, shape index: {}]   ;;  %s3348_s9 = inlined_call_operand.vmem [shape: f32[1,128], index: 9, kind: input, shape index: {}]   ;;  %s3349_s10 = inlined_call_operand.hbm [shape: f32[32,128], index: 10, kind: output, shape index: {}]  }
   0x1   :  { %3358 = sst [smem:[#allocation20_spill]] %s3343_s4 }
   0x2   :  { %15 = vsyncpa [#allocation3], 0 }
   0x3   :  { %16 = vsyncpa [#allocation6], 0 }
   0x4   :  { %17 = vsyncpa [#allocation9], 0 }
   0x5   :  { %18 = vsyncpa [#allocation4], 0 }
   0x6   :  { %20 = vsyncpa [#allocation4 + $0x1], 0  ;;  %s2936_s13 = smov 0   ;;  %s2938_s14 = smov 0  }
   0x7   :  { %s2940_s15 = smov 0   ;;  %s2942_s16 = smov 0  }
   0x8 LB: > { %3359 = sst [smem:[#allocation15_spill]] %s2853_s13  ;;  %s2957_s17 = sadd.s32 4294967295, %s2865_s16   ;;  %s2865_s16 = sphi %s2942_s16, %s3381_s16   ;;  %s2861_s15 = sphi %s2940_s15, %s3383_s15   ;;  %s2857_s14 = sphi %s2938_s14, %s3385_s14   ;;  %s2853_s13 = sphi %s2936_s13, %s3384_s13  }
   0x9   : > { %3360 = sst [smem:[#allocation16_spill]] %s2861_s15  ;;  %s2072_s18 = sadd.s32 4294967294, %s2865_s16  }
   0xa   : > { %s2961_s19 = sadd.s32 1, %s2865_s16   ;;  %s253_s20 = sadd.s32 1, %s2861_s15 }
   0xb   : > { %3361 = sst [smem:[#allocation17_spill]] %s2961_s19  ;;  %s250_s21 = ssub.s32 %s2865_s16, %s2961_s19 }
   0xc   : > { %p263_p0 = scmp.ne.s32.totalorder %s2861_s15, %s2857_s14  ;;  %p251_p1 = scmp.eq.s32.totalorder %s250_s21, 0 }
   0xd   : > { %p264_p2 = scmp.eq.s32.totalorder %s2957_s17, 1  ;;  %p269_p3 = scmp.ne.s32.totalorder %s2857_s14, %s2853_s13 }
   0xe   : > { %p270_p4 = scmp.eq.s32.totalorder %s2072_s18, 1  ;;  %p2073_p7 = scmp.ge.s32.totalorder %s2865_s16, 1 }
   0xf   : > { %s2972_s22 = scalar_select %p251_p1, %s2861_s15, %s253_s20  }
  0x10   : > { %p2974_p5 = por %p264_p2, %p263_p0  ;;  %p2978_p6 = por %p270_p4, %p269_p3 }
  0x11   : > { %3362 = sst [smem:[#allocation18_spill]] %s2972_s22  ;;  %p277_p8 = scmp.lt.s32.totalorder %s2865_s16, 3 }
  0x12   : > { %s3363_s23 = scalar_select %p2974_p5, 1, 0 }
  0x13   : > { %s3364_s24 = scalar_select %p2978_p6, 1, 0 }
  0x14   : > { %p3350_p9 = scmp.eq.s32.totalorder %s2957_s17, 0  ;;  %p2985_p10 = pnand %p2073_p7, %p277_p8 }
  0x15   : > { %3365 = sst [smem:[#allocation19_spill]] %s3364_s24  ;;  %s2867_s26 = smov [#allocation5]  }
  0x16   : > { %s3366_s25 = scalar_select %p2985_p10, 1, 0 }
  0x17   : > { %s305_s27 = sshll.u32 %s2867_s26, 4  ;;  %p2470_p11 = pneg %p2985_p10  ;;  %s306_s27 = int_to_ptr.vmem [resolvable:$true] %s305_s27 }
  0x18   : > { %s2868_s29 = smov [#allocation2]   ;;  %s3368_s4 = sld [smem:[#allocation20_spill]] }
  0x19   : > { %p2993_p12 = pnand %p3350_p9, %p2470_p11  ;;  %s289_s30 = sshll.u32 %s2868_s29, 4  ;;  %s2997_s30 = int_to_ptr.vmem [resolvable:$true] %s289_s30 }
  0x1b   : > { %p3007_p0 = pneg %p2993_p12 }
  0x1e   : > { %s2679_s18 = scalar_lea.hbm %s3368_s4, 9216 }
  0x1f   : > { %p2680_p13 = scmp.ne.s32.totalorder %s3368_s4, %s2679_s18  ;;  %p2686_p3 = scmp.lt.u32.totalorder %s2679_s18, %s3368_s4 }
  0x21   : > { %p2682_p1 = pnand %p3007_p0, %p2680_p13 }
  0x23   : > { %p2683_p2 = pneg %p2682_p1 }
  0x25   : > { %p2688_p4 = pnand %p2686_p3, %p2683_p2 }
  0x27   : > { %2691 = shalt.err (!%p2688_p4)
}
  0x28   : > { %s2692_s11 = scalar_lea.vmem %s306_s27, 9216  ;;  %p2700_p9 = scmp.lt.s32.totalorder %s306_s27, %s306_s27 }
  0x29   : > { %p2693_p7 = scmp.ne.s32.totalorder %s306_s27, %s2692_s11  ;;  %p2701_p6 = scmp.lt.s32.totalorder %s2692_s11, %s2692_s11 }
  0x2b   : > { %p2695_p8 = pnand %p2693_p7, %p3007_p0  ;;  %p2702_p5 = por %p2701_p6, %p2700_p9 }
  0x2d   : > { %p2696_p11 = pneg %p2695_p8 }
  0x2f   : > { %p2703_p10 = pnand %p2702_p5, %p2696_p11 }
  0x31   : > { %2706 = shalt.err (!%p2703_p10)
}
  0x32   : > { %s2869_s12 = smov 192   ;;  %s2870_s20 = smov 12  }
  0x33   : > { %2476 = dma.hbm_to_vmem [thread:$0]  (!%p2993_p12), %s3368_s4, 9216, %s306_s27, [#allocation6], %s2869_s12, %s2869_s12, %s2870_s20  }
  0x34   : > { %s2707_s15 = scalar_lea.hbm %s3341_s2, 1024 }
  0x35   : > { %p2708_p13 = scmp.ne.s32.totalorder %s3341_s2, %s2707_s15  ;;  %p2714_p9 = scmp.lt.u32.totalorder %s2707_s15, %s3341_s2 }
  0x37   : > { %p2710_p5 = pnand %p2708_p13, %p3007_p0 }
  0x39   : > { %p2711_p6 = pneg %p2710_p5 }
  0x3b   : > { %p2716_p10 = pnand %p2714_p9, %p2711_p6 }
  0x3d   : > { %2719 = shalt.err (!%p2716_p10)
}
  0x3e   : > { %s2720_s27 = scalar_lea.vmem %s2997_s30, 1024  ;;  %p2728_p4 = scmp.lt.s32.totalorder %s2997_s30, %s2997_s30 }
  0x3f   : > { %p2721_p1 = scmp.ne.s32.totalorder %s2997_s30, %s2720_s27  ;;  %p2729_p7 = scmp.lt.s32.totalorder %s2720_s27, %s2720_s27 }
  0x41   : > { %p2723_p2 = pnand %p2721_p1, %p3007_p0  ;;  %p2730_p8 = por %p2729_p7, %p2728_p4 }
  0x43   : > { %p2724_p3 = pneg %p2723_p2 }
  0x45   : > { %p2731_p11 = pnand %p2730_p8, %p2724_p3 }
  0x47   : > { %2734 = shalt.err (!%p2731_p11)
}
  0x48   : > { %s2871_s19 = smov 64   ;;  %s2872_s13 = smov 4  }
  0x49   : > { %2473 = dma.hbm_to_vmem [thread:$0]  (!%p2993_p12), %s3341_s2, 1024, %s2997_s30, [#allocation3], %s2871_s19, %s2871_s19, %s2872_s13  }
  0x4a   : > { %s2873_s12 = smov [#allocation7]   ;;  %s2874_s22 = smov [#allocation8]  }
  0x4b   : > { %s321_s20 = sshll.u32 %s2873_s12, 4  ;;  %s337_s18 = sshll.u32 %s2874_s22, 4  ;;  %s322_s20 = int_to_ptr.vmem [resolvable:$true] %s321_s20  ;;  %s3049_s18 = int_to_ptr.vmem [resolvable:$true] %s337_s18 }
  0x4c   : > { %s2735_s11 = scalar_lea.hbm %s3345_s6, 3072 }
  0x4d   : > { %p2736_p13 = scmp.ne.s32.totalorder %s3345_s6, %s2735_s11  ;;  %p2742_p9 = scmp.lt.u32.totalorder %s2735_s11, %s3345_s6 }
  0x4f   : > { %p2738_p5 = pnand %p2736_p13, %p3007_p0 }
  0x51   : > { %p2739_p6 = pneg %p2738_p5 }
  0x53   : > { %p2744_p10 = pnand %p2742_p9, %p2739_p6 }
  0x55   : > { %2747 = shalt.err (!%p2744_p10)
}
  0x56   : > { %s2748_s24 = scalar_lea.vmem %s322_s20, 3072  ;;  %p2756_p4 = scmp.lt.s32.totalorder %s322_s20, %s322_s20 }
  0x57   : > { %p2749_p1 = scmp.ne.s32.totalorder %s322_s20, %s2748_s24  ;;  %p2757_p7 = scmp.lt.s32.totalorder %s2748_s24, %s2748_s24 }
  0x59   : > { %p2751_p2 = pnand %p2749_p1, %p3007_p0  ;;  %p2758_p8 = por %p2757_p7, %p2756_p4 }
  0x5b   : > { %p2752_p3 = pneg %p2751_p2 }
  0x5d   : > { %p2759_p11 = pnand %p2758_p8, %p2752_p3 }
  0x5f   : > { %2762 = shalt.err (!%p2759_p11)
}
  0x60   : > { %2479 = dma.hbm_to_vmem [thread:$0]  (!%p2993_p12), %s3345_s6, 3072, %s322_s20, [#allocation6], %s2871_s19, %s2871_s19, %s2872_s13  }
  0x61   : > { %s2763_s29 = scalar_lea.hbm %s3347_s8, 1024 }
  0x62   : > { %p2764_p13 = scmp.ne.s32.totalorder %s3347_s8, %s2763_s29  ;;  %p2770_p9 = scmp.lt.u32.totalorder %s2763_s29, %s3347_s8 }
  0x64   : > { %p2766_p5 = pnand %p2764_p13, %p3007_p0 }
  0x66   : > { %p2767_p6 = pneg %p2766_p5 }
  0x68   : > { %p2772_p10 = pnand %p2770_p9, %p2767_p6 }
  0x6a   : > { %2775 = shalt.err (!%p2772_p10)
}
  0x6b   : > { %s2776_s20 = scalar_lea.vmem %s3049_s18, 1024  ;;  %p2784_p4 = scmp.lt.s32.totalorder %s3049_s18, %s3049_s18 }
  0x6c   : > { %p2777_p1 = scmp.ne.s32.totalorder %s3049_s18, %s2776_s20  ;;  %p2785_p7 = scmp.lt.s32.totalorder %s2776_s20, %s2776_s20 }
  0x6e   : > { %p2779_p2 = pnand %p2777_p1, %p3007_p0  ;;  %p2786_p8 = por %p2785_p7, %p2784_p4 }
  0x70   : > { %p2780_p3 = pneg %p2779_p2 }
  0x72   : > { %p2787_p11 = pnand %p2786_p8, %p2780_p3 }
  0x74   : > { %2790 = shalt.err (!%p2787_p11)
}
  0x75   : > { %2482 = dma.hbm_to_vmem [thread:$0]  (!%p2993_p12), %s3347_s8, 1024, %s3049_s18, [#allocation9], %s2871_s19, %s2871_s19, %s2872_s13  }
  0x76   : > { %p3370_p13 = scmp.ne.s32.totalorder %s3366_s25, 0 }
  0x77   : > { %p3371_p0 = scmp.eq.s32.totalorder (!%p3370_p13), %s2957_s17, 0 }
  0x78   : > { %374 = sbr.rel (%p3370_p13) target bundleno = 1968 (0x7b0), region = 60 }
  0x7f   : > { %2836 = dma.done.wait (%p3371_p0), [#allocation3], 1024   ;;  %p3372_p5 = pmov %p3371_p0 }
  0x80   : > { %p3373_p6 = pmov %p3371_p0 }
  0x81   : > { %2838 = vsyncadd (%p3372_p5), [#allocation3], 4294966272 }
  0x82   : > { %2840 = dma.done.wait (%p3373_p6), [#allocation6], 12288   ;;  %p3374_p9 = pmov %p3371_p0 }
  0x83   : > { %p3375_p10 = pmov %p3371_p0 }
  0x84   : > { %2842 = vsyncadd (%p3374_p9), [#allocation6], 4294955008 }
  0x85   : > { %2844 = dma.done.wait (%p3375_p10), [#allocation9], 1024   ;;  %p3376_p12 = pmov %p3371_p0 }
  0x86   : > { %s2085_s25 = sshll.u32 %s2957_s17, 1  ;;  %v2875_v0 = vmov 0.0   ;;  %vm2876_vm0 = vmmov 0   ;;  %v2542_v1 = vld [vmem:[#allocation2] sm:$0xff]   ;;  %v2543_v2 = vld [vmem:[#allocation2 + $0x8] sm:$0xff]   ;;  %v2544_v3 = vld [vmem:[#allocation2 + $0x10] sm:$0xff]  }
  0x87   : > { %2846 = vsyncadd (%p3376_p12), [#allocation9], 4294966272  ;;  %2292 = vmatprep.subr.bf16.mxu0 %v2875_v0  ;;  %2308 = vmatprep.mubr.msk.bf16.mxu0 %vm2876_vm0, %v2875_v0  ;;  %p430_p1 = scmp.lt.s32.totalorder %s2085_s25, 3  ;;  %v2545_v4 = vld [vmem:[#allocation2 + $0x18] sm:$0xff]   ;;  %v2551_v5 = vld [vmem:[#allocation5 + $0x4] ss:$12 sps:$4 sm:$0xff]  }
  0x88   : > { %2293 = vmatpush3.bf16.msra.mxu0 %v2542_v1  ;;  %v2553_v6 = vld [vmem:[#allocation5] ss:$12 sps:$4 sm:$0xff]   ;;  %771 = vmatprep.subr.bf16.mxu1 %v2551_v5  ;;  %v2555_v7 = vld [vmem:[#allocation5 + $0x1c] ss:$12 sps:$4 sm:$0xff]   ;;  %v2557_v8 = vld [vmem:[#allocation5 + $0x18] ss:$12 sps:$4 sm:$0xff]  }
  0x89   : > { %s3387_s25 = smov (!%p430_p1, %s2085_s25), 3  ;;  %2294 = vmatprep.subr.bf16.mxu0 %v2875_v0  ;;  %772 = vmatpush1.bf16.msra.mxu1 %v2553_v6  ;;  %v2546_v9 = vld [vmem:[#allocation2 + $0x20] sm:$0xff]   ;;  %v2561_v11 = vld [vmem:[#allocation5 + $0x30] ss:$12 sps:$4 sm:$0xff]   ;;  %v2563_v12 = vld [vmem:[#allocation5 + $0x4c] ss:$12 sps:$4 sm:$0xff]  }
  0x8a   : > { %s2086_s28 = sshll.u32 %s3387_s25, 2  ;;  %773 = vmatprep.subr.bf16.mxu1 %v2555_v7  ;;  %v2559_v10 = vld [vmem:[#allocation5 + $0x34] ss:$12 sps:$4 sm:$0xff]   ;;  %v2547_v13 = vld [vmem:[#allocation2 + $0x28] sm:$0xff]   ;;  %v2567_v15 = vld [vmem:[#allocation5 + $0x64] ss:$12 sps:$4 sm:$0xff]  }
  0x8b   : > { %s3124_s13 = scalar_lea.vmem %s3339_s0, %s2086_s28  ;;  %v2565_v14 = vld [vmem:[#allocation5 + $0x48] ss:$12 sps:$4 sm:$0xff]   ;;  %v2569_v17 = vld [vmem:[#allocation5 + $0x60] ss:$12 sps:$4 sm:$0xff]   ;;  %v2549_v18 = vld [vmem:[#allocation2 + $0x38] sm:$0xff]   ;;  %v2877_v34 = vmov 0  }
  0x8c   : > { %2295 = vmatpush3.bf16.msra.mxu0 %v2543_v2  ;;  %v2548_v16 = vld [vmem:[#allocation2 + $0x30] sm:$0xff]   ;;  %v2571_v19 = vld [vmem:[#allocation5 + $0x7c] ss:$12 sps:$4 sm:$0xff]   ;;  %v2573_v20 = vld [vmem:[#allocation5 + $0x78] ss:$12 sps:$4 sm:$0xff]   ;;  %803 = vmatprep.mubr.bf16.mxu1 %v2877_v34  ;;  %s2088_s22 = sshll.u32 %s3387_s25, 3  ;;  %v443_v2 = vlaneseq }
  0x8d   : > { %2296 = vmatprep.subr.bf16.mxu0 %v2875_v0  ;;  %774 = vmatpush1.bf16.msra.mxu1 %v2557_v8  ;;  %v2550_v21 = vld [vmem:[%s3124_s13] sm:$0xff]   ;;  %v2554_v23 = vld [vmem:[#allocation5 + $0x8] ss:$12 sps:$4 sm:$0xff]   ;;  %v2566_v26 = vld [vmem:[#allocation5 + $0x50] ss:$12 sps:$4 sm:$0xff]   ;;  %s439_s11 = scalar_lea.vmem %s3340_s1, %s2088_s22  ;;  %s426_s12 = sand.u32 1, %s2857_s14  }
  0x8e   : > { %775 = vmatprep.subr.bf16.mxu1 %v2559_v10  ;;  %v2575_v22 = vld [vmem:[#allocation5 + $0x94] ss:$12 sps:$4 sm:$0xff]   ;;  %v2562_v25 = vld [vmem:[#allocation5 + $0x38] ss:$12 sps:$4 sm:$0xff]   ;;  %v2577_v29 = vld [vmem:[#allocation5 + $0x90] ss:$12 sps:$4 sm:$0xff]   ;;  %2541 = vset.pattern.permute.xlu0 %v2877_v34 }
  0x8f   : > { %v2558_v24 = vld [vmem:[#allocation5 + $0x20] ss:$12 sps:$4 sm:$0xff]   ;;  %v2570_v27 = vld [vmem:[#allocation5 + $0x68] ss:$12 sps:$4 sm:$0xff]   ;;  %v2578_v30 = vld [vmem:[#allocation5 + $0x98] ss:$12 sps:$4 sm:$0xff]  }
  0x90   : > { %2297 = vmatpush3.bf16.msra.mxu0 %v2544_v3  ;;  %v2574_v28 = vld [vmem:[#allocation5 + $0x80] ss:$12 sps:$4 sm:$0xff]   ;;  %v2581_v32 = vld [vmem:[#allocation5 + $0xa8] ss:$12 sps:$4 sm:$0xff]   ;;  %v2582_v33 = vld [vmem:[#allocation5 + $0xb0] ss:$12 sps:$4 sm:$0xff]  }
  0x91   : > { %2298 = vmatprep.subr.bf16.mxu0 %v2875_v0  ;;  %776 = vmatpush1.bf16.msra.mxu1 %v2561_v11  ;;  %v2579_v31 = vld [vmem:[#allocation5 + $0xac] ss:$12 sps:$4 sm:$0xff]   ;;  %v2089_v35 = vld [vmem:[%s3342_s3] ss:$0 sm:$0xff]  ;;  %v2585_v45 = vld [vmem:[#allocation7 + $0x10] sm:$0xff]   ;;  %v3169_v3 = vshrl.u32 %v443_v2, 7 }
  0x92   : > { %777 = vmatprep.subr.bf16.mxu1 %v2563_v12  ;;  %v2583_v42 = vld [vmem:[#allocation7] sm:$0xff]   ;;  %v2584_v44 = vld [vmem:[#allocation7 + $0x8] sm:$0xff]   ;;  %v2586_v46 = vld [vmem:[#allocation7 + $0x18] sm:$0xff]   ;;  %s2084_s22 = sshll.u32 %s426_s12, 4  ;;  %s2219_s15 = sshll.u32 %s2957_s17, 8 }
  0x93   : > { %v2587_v47 = vld [vmem:[#allocation7 + $0x20] sm:$0xff]   ;;  %v2588_v48 = vld [vmem:[#allocation7 + $0x28] sm:$0xff]   ;;  %v2589_v49 = vld [vmem:[#allocation7 + $0x30] sm:$0xff]   ;;  %v3173_v5 = vand.u32 15, %v3169_v3  ;;  %vm862_vm1 = vcmp.lt.s32.totalorder %v3169_v3, 7  ;;  %vm857_vm2 = vcmp.lt.s32.totalorder %v3169_v3, 1  ;;  %s3295_s24 = scalar_lea.hbm %s3349_s10, %s2219_s15 }
  0x94   : > { %2299 = vmatpush3.bf16.msra.mxu0 %v2545_v4  ;;  %v2590_v50 = vld [vmem:[#allocation7 + $0x38] sm:$0xff]   ;;  %v2591_v51 = vld [vmem:[#allocation5 + $0xc0] ss:$12 sps:$4 sm:$0xff]   ;;  %v2593_v52 = vld [vmem:[#allocation5 + $0xc4] ss:$12 sps:$4 sm:$0xff]   ;;  %v445_v4 = vadd.s32 8, %v3169_v3 }
  0x95   : > { %2300 = vmatprep.subr.bf16.mxu0 %v2875_v0  ;;  %778 = vmatpush1.bf16.msra.mxu1 %v2565_v14  ;;  %v2597_v53 = vld [vmem:[#allocation5 + $0xdc] ss:$12 sps:$4 sm:$0xff]   ;;  %v470_v54 = vld [vmem:[%s439_s11] sm:$0xff]  ;;  %v2605_v59 = vld [vmem:[#allocation5 + $0x10c] ss:$12 sps:$4 sm:$0xff]   ;;  %vm865_vm3 = vcmp.ge.s32.totalorder %v3173_v5, 1 }
  0x96   : > { %779 = vmatprep.subr.bf16.mxu1 %v2567_v15  ;;  %602 = vperm.xlu0 %2541, %v470_v54   ;;  %v2595_v55 = vld [vmem:[#allocation5 + $0xd8] ss:$12 sps:$4 sm:$0xff]   ;;  %v471_v56 = vld [vmem:[%s439_s11 + $0x8] sm:$0xff]  ;;  %v2601_v57 = vld [vmem:[#allocation5 + $0xf4] ss:$12 sps:$4 sm:$0xff]   ;;  %v3175_v6 = vand.u32 15, %v445_v4 }
  0x97   : > { %v2599_v58 = vld [vmem:[#allocation5 + $0xf0] ss:$12 sps:$4 sm:$0xff]   ;;  %v2603_v60 = vld [vmem:[#allocation5 + $0x108] ss:$12 sps:$4 sm:$0xff]   ;;  %v2607_v62 = vld [vmem:[#allocation5 + $0x120] ss:$12 sps:$4 sm:$0xff]  }
  0x98   : > { %2301 = vmatpush3.bf16.msra.mxu0 %v2546_v9  ;;  %v2609_v61 = vld [vmem:[#allocation5 + $0x124] ss:$12 sps:$4 sm:$0xff]   ;;  %v2613_v63 = vld [vmem:[#allocation5 + $0x13c] ss:$12 sps:$4 sm:$0xff]   ;;  %vm876_vm4 = vcmp.lt.s32.totalorder %v3175_v6, 15  ;;  %vm1266_vm5 = vcmp.lt.s32.totalorder %v3169_v3, 6 }
  0x99   : > { %2302 = vmatprep.subr.bf16.mxu0 %v2875_v0  ;;  %780 = vmatpush1.bf16.msra.mxu1 %v2569_v17  ;;  %v2611_v1 = vld [vmem:[#allocation5 + $0x138] ss:$12 sps:$4 sm:$0xff]   ;;  %vm1261_vm6 = vcmp.lt.s32.totalorder %v3169_v3, 2  ;;  %vm1269_vm7 = vcmp.ge.s32.totalorder %v3173_v5, 2  ;;  %vm1280_vm8 = vcmp.lt.s32.totalorder %v3175_v6, 14  ;;  %vm1668_vm9 = vcmp.lt.s32.totalorder %v3169_v3, 4 }
  0x9a   : > { %781 = vmatprep.subr.bf16.mxu1 %v2571_v19  ;;  %607 = vperm.xlu0 %2541, %v471_v56   ;;  %v2626_v2 = vld [vmem:[#allocation7 + $0x58] sm:$0xff]   ;;  %v2627_v4 = vld [vmem:[#allocation7 + $0x60] sm:$0xff]   ;;  %vm1675_vm10 = vcmp.ge.s32.totalorder %v3173_v5, 4  ;;  %vm1686_vm11 = vcmp.lt.s32.totalorder %v3175_v6, 12  ;;  %s428_s11 = scalar_lea.vmem [#allocation10], %s2084_s22  ;;  %s3298_s17 = scalar_lea.sflag [#allocation4], %s426_s12 }
  0x9b   : > { %v2194_v3 = vld [vmem:[%s3344_s5 + $0x2] ss:$0 sm:$0xff]  ;;  %s1957_s27 = sshll.u32 %s428_s11, 4  ;;  %p3377_p3 = scmp.ne.s32.totalorder %s3363_s23, 0  ;;  %s3290_s27 = int_to_ptr.vmem [resolvable:$true] %s1957_s27 }
  0x9c   : > { %2303 = vmatpush3.bf16.msra.mxu0 %v2547_v13  ;;  %s2791_s4 = scalar_lea.vmem %s3290_s27, 256  ;;  %s2878_s25 = smov [#allocation10]  }
  0x9d   : > { %2304 = vmatprep.subr.bf16.mxu0 %v2875_v0  ;;  %782 = vmatpush1.bf16.msra.mxu1 %v2573_v20  ;;  %p2792_p2 = scmp.ne.s32.totalorder %s3290_s27, %s2791_s4  ;;  %s2795_s28 = sshll.u32 %s2878_s25, 4  ;;  %s2796_s28 = int_to_ptr.vmem [resolvable:$false] %s2795_s28 }
  0x9e   : > { %783 = vmatprep.subr.bf16.mxu1 %v2575_v22  ;;  %s2797_s26 = scalar_lea.vmem %s2796_s28, 512  ;;  %p2798_p8 = scmp.lt.s32.totalorder %s3290_s27, %s2796_s28 }
  0x9f   : > { %p2793_p4 = pnand %p2792_p2, %p3377_p3  ;;  %p2799_p11 = scmp.lt.s32.totalorder %s2797_s26, %s2791_s4 }
  0xa0   : > { %2305 = vmatpush3.bf16.msra.mxu0 %v2548_v16 }
  0xa1   : > { %2306 = vmatprep.subr.bf16.mxu0 %v2875_v0  ;;  %784 = vmatpush1.bf16.msra.mxu1 %v2577_v29  ;;  %p2794_p7 = pneg %p2793_p4  ;;  %p2800_p13 = por %p2799_p11, %p2798_p8 }
  0xa2   : > { %785 = vmatprep.subr.bf16.mxu1 %v2579_v31 }
  0xa3   : > { %p2801_p0 = pnand %p2800_p13, %p2794_p7 }
  0xa4   : > { %2307 = vmatpush3.bf16.msra.mxu0 %v2549_v18 }
  0xa5   : > { %2312 = vmatprep.subr.bf16.mxu0 %v2875_v0  ;;  %786 = vmatpush1.bf16.msra.mxu1 %v2581_v32 }
  0xa6   : > { %2332 = vmatprep.subr.bf16.mxu1 %v2875_v0 }
  0xa7   : > { %2309 = vmatmul.mubr.bf16.vlgmr.msra.gmra.mrb[0].mxu0 %v2550_v21 }
  0xa8   : > { %2313 = vmatpush3.bf16.msra.mxu0 %v2554_v23  ;;  %2328 = vmatprep.mubr.msk.bf16.mxu0 %vm2876_vm0, %v2875_v0 }
  0xa9   : > { %2314 = vmatprep.subr.bf16.mxu0 %v2875_v0 }
  0xac   : > { %2315 = vmatpush3.bf16.msra.mxu0 %v2558_v24 }
  0xad   : > { %2316 = vmatprep.subr.bf16.mxu0 %v2875_v0 }
  0xb0   : > { %2317 = vmatpush3.bf16.msra.mxu0 %v2562_v25 }
  0xb1   : > { %2318 = vmatprep.subr.bf16.mxu0 %v2875_v0 }
  0xb4   : > { %2319 = vmatpush3.bf16.msra.mxu0 %v2566_v26 }
  0xb5   : > { %2320 = vmatprep.subr.bf16.mxu0 %v2875_v0 }
  0xb8   : > { %2321 = vmatpush3.bf16.msra.mxu0 %v2570_v27  ;;  %v2123_v27 = vld [vmem:[%s3344_s5] ss:$0 sm:$0xff] }
  0xb9   : > { %2322 = vmatprep.subr.bf16.mxu0 %v2875_v0 }
  0xbc   : > { %2323 = vmatpush3.bf16.msra.mxu0 %v2574_v28 }
  0xbd   : > { %2324 = vmatprep.subr.bf16.mxu0 %v2875_v0 }
  0xc0   : > { %2325 = vmatpush3.bf16.msra.mxu0 %v2578_v30 }
  0xc1   : > { %2326 = vmatprep.subr.bf16.mxu0 %v2875_v0 }
  0xc4   : > { %2327 = vmatpush3.bf16.msra.mxu0 %v2582_v33 }
  0xc5   : > { %1175 = vmatprep.subr.bf16.mxu0 %v2593_v52 }
 0x17a   : > { %v585_v36 = vpop.f32.mrb[0].mxu0 }
 0x17b   : > { %v2310_v37 = vpop.f32.mrb[1].mxu0  ;;  %v3148_v39 = vadd.f32 %v2089_v35, %v585_v36 }
 0x17c   : > { %v588_v38 = vpop.f32.mrb[2].mxu0  ;;  %v2598_v37 = vld [vmem:[#allocation5 + $0xe0] ss:$12 sps:$4 sm:$0xff]  }
 0x17d   : > { %v3150_v40 = vadd.f32 %v2089_v35, %v588_v38  ;;  %v2311_v41 = vpop.f32.mrb[3].mxu0  ;;  %v2594_v35 = vld [vmem:[#allocation5 + $0xc8] ss:$12 sps:$4 sm:$0xff]   ;;  %v2602_v38 = vld [vmem:[#allocation5 + $0xf8] ss:$12 sps:$4 sm:$0xff]  }
 0x17e   : > { %v2606_v41 = vld [vmem:[#allocation5 + $0x110] ss:$12 sps:$4 sm:$0xff]  }
 0x17f   : > { %v610_v43 = vpack.c.bf16 %v3150_v40, %v3148_v39 }
 0x181   : > { %804 = vmatmul.mubr.bf16.vlgmr.msra.gmra.mrb[0].mxu1 %v610_v43  ;;  %2329 = vmatmul.mubr.bf16.vlgmr.msra.gmra.mrb[4].mxu0 %v610_v43  ;;  %v2614_v43 = vld [vmem:[#allocation5 + $0x140] ss:$12 sps:$4 sm:$0xff]  }
 0x182   : > { %2333 = vmatpush3.bf16.msra.mxu1 %v2583_v42  ;;  %2348 = vmatprep.mubr.msk.bf16.mxu1 %vm2876_vm0, %v2875_v0  ;;  %v2610_v42 = vld [vmem:[#allocation5 + $0x128] ss:$12 sps:$4 sm:$0xff]  }
 0x183   : > { %2334 = vmatprep.subr.bf16.mxu1 %v2875_v0  ;;  %1207 = vmatprep.mubr.bf16.mxu0 %v2877_v34 }
 0x184   : > { %1176 = vmatpush1.bf16.msra.mxu0 %v2591_v51  ;;  %v3197_v51 = vpop.permute.xlu0 %602 }
 0x185   : > { %1177 = vmatprep.subr.bf16.mxu0 %v2597_v53 }
 0x186   : > { %2335 = vmatpush3.bf16.msra.mxu1 %v2584_v44  ;;  %v2617_v44 = vld [vmem:[#allocation5 + $0x154] ss:$12 sps:$4 sm:$0xff]  }
 0x187   : > { %2336 = vmatprep.subr.bf16.mxu1 %v2875_v0 }
 0x188   : > { %1178 = vmatpush1.bf16.msra.mxu0 %v2595_v55 }
 0x189   : > { %1179 = vmatprep.subr.bf16.mxu0 %v2601_v57 }
 0x18a   : > { %2337 = vmatpush3.bf16.msra.mxu1 %v2585_v45  ;;  %v2615_v45 = vld [vmem:[#allocation5 + $0x150] ss:$12 sps:$4 sm:$0xff]  }
 0x18b   : > { %2338 = vmatprep.subr.bf16.mxu1 %v2875_v0 }
 0x18c   : > { %1180 = vmatpush1.bf16.msra.mxu0 %v2599_v58 }
 0x18d   : > { %1181 = vmatprep.subr.bf16.mxu0 %v2605_v59 }
 0x18e   : > { %2339 = vmatpush3.bf16.msra.mxu1 %v2586_v46  ;;  %v2618_v46 = vld [vmem:[#allocation5 + $0x158] ss:$12 sps:$4 sm:$0xff]  }
 0x18f   : > { %2340 = vmatprep.subr.bf16.mxu1 %v2875_v0 }
 0x190   : > { %1182 = vmatpush1.bf16.msra.mxu0 %v2603_v60  ;;  %v3201_v60 = vpop.permute.xlu0 %607 }
 0x191   : > { %1183 = vmatprep.subr.bf16.mxu0 %v2609_v61 }
 0x192   : > { %2341 = vmatpush3.bf16.msra.mxu1 %v2587_v47  ;;  %v2621_v47 = vld [vmem:[#allocation5 + $0x16c] ss:$12 sps:$4 sm:$0xff]  }
 0x193   : > { %2342 = vmatprep.subr.bf16.mxu1 %v2875_v0 }
 0x194   : > { %1184 = vmatpush1.bf16.msra.mxu0 %v2607_v62 }
 0x195   : > { %1185 = vmatprep.subr.bf16.mxu0 %v2613_v63  ;;  %v2623_v63 = vld [vmem:[#allocation7 + $0x40] sm:$0xff]  }
 0x196   : > { %2343 = vmatpush3.bf16.msra.mxu1 %v2588_v48  ;;  %v2619_v48 = vld [vmem:[#allocation5 + $0x168] ss:$12 sps:$4 sm:$0xff]  }
 0x197   : > { %2344 = vmatprep.subr.bf16.mxu1 %v2875_v0 }
 0x198   : > { %1186 = vmatpush1.bf16.msra.mxu0 %v2611_v1 }
 0x199   : > { %1187 = vmatprep.subr.bf16.mxu0 %v2617_v44  ;;  %v2158_v44 = vld [vmem:[%s3344_s5 + $0x1] ss:$0 sm:$0xff] }
 0x19a   : > { %2345 = vmatpush3.bf16.msra.mxu1 %v2589_v49  ;;  %v2622_v49 = vld [vmem:[#allocation5 + $0x170] ss:$12 sps:$4 sm:$0xff]  }
 0x19b   : > { %2346 = vmatprep.subr.bf16.mxu1 %v2875_v0 }
 0x19c   : > { %1188 = vmatpush1.bf16.msra.mxu0 %v2615_v45 }
 0x19d   : > { %1189 = vmatprep.subr.bf16.mxu0 %v2621_v47 }
 0x19e   : > { %2347 = vmatpush3.bf16.msra.mxu1 %v2590_v50  ;;  %v2124_v50 = vld [vmem:[%s3346_s7] ss:$0 sm:$0xff] }
 0x19f   : > { %2352 = vmatprep.subr.bf16.mxu1 %v2875_v0 }
 0x1a0   : > { %1190 = vmatpush1.bf16.msra.mxu0 %v2619_v48 }
 0x1a1   : > { %2372 = vmatprep.subr.bf16.mxu0 %v2875_v0 }
 0x254   : > { %v805_v7 = vpop.f32.mrb[0].mxu1  ;;  %v848_v8 = vpop.f32.mrb[4].mxu0 }
 0x255   : > { %v807_v9 = vpop.f32.mrb[1].mxu1  ;;  %v2330_v10 = vpop.f32.mrb[5].mxu0  ;;  %v855_v13 = vrot.slane %v805_v7, 7  ;;  %v860_v14 = vrot.slane %v848_v8, 1  ;;  %v2628_v7 = vld [vmem:[#allocation7 + $0x68] sm:$0xff]   ;;  %v2630_v8 = vld [vmem:[#allocation7 + $0x78] sm:$0xff]  }
 0x256   : > { %v809_v11 = vpop.f32.mrb[2].mxu1  ;;  %v851_v12 = vpop.f32.mrb[6].mxu0  ;;  %v2633_v10 = vld [vmem:[#allocation5 + $0x184] ss:$12 sps:$4 sm:$0xff]  }
 0x257   : > { %v856_v15 = vrot.slane %v809_v11, 7  ;;  %v861_v16 = vrot.slane %v851_v12, 1  ;;  %v811_v17 = vpop.f32.mrb[3].mxu1  ;;  %v2331_v18 = vpop.f32.mrb[7].mxu0  ;;  %v2637_v11 = vld [vmem:[#allocation5 + $0x19c] ss:$12 sps:$4 sm:$0xff]  }
 0x258   : > { %v2635_v12 = vld [vmem:[#allocation5 + $0x198] ss:$12 sps:$4 sm:$0xff]   ;;  %v2647_v18 = vld [vmem:[#allocation5 + $0x1e0] ss:$12 sps:$4 sm:$0xff]  }
 0x259   : > { %v863_v19 = vsel %vm862_vm1, %v860_v14, %v861_v16  ;;  %v858_v20 = vsel %vm857_vm2, %v855_v13, %v856_v15  ;;  %v859_v21 = vsel %vm857_vm2, %v856_v15, %v855_v13  ;;  %v864_v22 = vsel %vm862_vm1, %v861_v16, %v860_v14  ;;  %v2641_v13 = vld [vmem:[#allocation5 + $0x1b4] ss:$12 sps:$4 sm:$0xff]   ;;  %v2639_v14 = vld [vmem:[#allocation5 + $0x1b0] ss:$12 sps:$4 sm:$0xff]   ;;  %v2645_v15 = vld [vmem:[#allocation5 + $0x1cc] ss:$12 sps:$4 sm:$0xff]  }
 0x25a   : > { %v871_v23 = vsel %vm865_vm3, %v859_v21, 0.0  ;;  %v874_v24 = vadd.f32 %v858_v20, %v811_v17  ;;  %v882_v25 = vsel %vm876_vm4, %v864_v22, 0.0  ;;  %v2643_v16 = vld [vmem:[#allocation5 + $0x1c8] ss:$12 sps:$4 sm:$0xff]   ;;  %v2649_v17 = vld [vmem:[#allocation5 + $0x1e4] ss:$12 sps:$4 sm:$0xff]  }
 0x25b   : > { %v873_v26 = vadd.f32 %v871_v23, %v807_v9  ;;  %v2631_v9 = vld [vmem:[#allocation5 + $0x180] ss:$12 sps:$4 sm:$0xff]   ;;  %v2651_v20 = vld [vmem:[#allocation5 + $0x1f8] ss:$12 sps:$4 sm:$0xff]  }
 0x25c   : > { %v884_v28 = vadd.f32 %v882_v25, %v874_v24 }
 0x25d   : > { %v883_v29 = vadd.f32 %v873_v26, %v863_v19  ;;  %v2653_v19 = vld [vmem:[#allocation5 + $0x1fc] ss:$12 sps:$4 sm:$0xff]  }
 0x25e   : > { %v893_v30 = vadd.f32 %v2123_v27, %v884_v28 }
 0x25f   : > { %v892_v31 = vadd.f32 %v2123_v27, %v883_v29 }
 0x260   : > { %v895_v32 = vmax.f32 %v893_v30, 0.0 }
 0x261   : > { %v894_v33 = vmax.f32 %v892_v31, 0.0 }
 0x263   : > { %v896_v36 = vpack.c.bf16 %v895_v32, %v894_v33 }
 0x265   : > { %2349 = vmatmul.mubr.bf16.vlgmr.msra.gmra.mrb[4].mxu1 %v896_v36 }
 0x266   : > { %2353 = vmatpush3.bf16.msra.mxu1 %v2594_v35  ;;  %2368 = vmatprep.mubr.msk.bf16.mxu1 %vm2876_vm0, %v2875_v0 }
 0x267   : > { %2354 = vmatprep.subr.bf16.mxu1 %v2875_v0 }
 0x26a   : > { %2355 = vmatpush3.bf16.msra.mxu1 %v2598_v37 }
 0x26b   : > { %2356 = vmatprep.subr.bf16.mxu1 %v2875_v0 }
 0x26e   : > { %2357 = vmatpush3.bf16.msra.mxu1 %v2602_v38 }
 0x26f   : > { %2358 = vmatprep.subr.bf16.mxu1 %v2875_v0 }
 0x272   : > { %2359 = vmatpush3.bf16.msra.mxu1 %v2606_v41 }
 0x273   : > { %2360 = vmatprep.subr.bf16.mxu1 %v2875_v0 }
 0x276   : > { %2361 = vmatpush3.bf16.msra.mxu1 %v2610_v42 }
 0x277   : > { %2362 = vmatprep.subr.bf16.mxu1 %v2875_v0 }
 0x27a   : > { %2363 = vmatpush3.bf16.msra.mxu1 %v2614_v43 }
 0x27b   : > { %2364 = vmatprep.subr.bf16.mxu1 %v2875_v0 }
 0x27e   : > { %2365 = vmatpush3.bf16.msra.mxu1 %v2618_v46 }
 0x27f   : > { %2366 = vmatprep.subr.bf16.mxu1 %v2875_v0 }
 0x282   : > { %2367 = vmatpush3.bf16.msra.mxu1 %v2622_v49 }
 0x283   : > { %1582 = vmatprep.subr.bf16.mxu1 %v2633_v10 }
 0x338   : > { %v1002_v52 = vpop.f32.mrb[4].mxu1 }
 0x339   : > { %v1003_v53 = vadd.f32 %v2124_v50, %v1002_v52  ;;  %v2350_v54 = vpop.f32.mrb[5].mxu1  ;;  %v2634_v52 = vld [vmem:[#allocation5 + $0x188] ss:$12 sps:$4 sm:$0xff]  }
 0x33a   : > { %v1005_v55 = vpop.f32.mrb[6].mxu1  ;;  %v2638_v54 = vld [vmem:[#allocation5 + $0x1a0] ss:$12 sps:$4 sm:$0xff]  }
 0x33b   : > { %v1009_v56 = vadd.f32 %v1003_v53, %v3148_v39  ;;  %v1006_v57 = vadd.f32 %v2124_v50, %v1005_v55  ;;  %v2351_v58 = vpop.f32.mrb[7].mxu1  ;;  %v2624_v39 = vld [vmem:[#allocation7 + $0x48] sm:$0xff]   ;;  %v2642_v55 = vld [vmem:[#allocation5 + $0x1b8] ss:$12 sps:$4 sm:$0xff]  }
 0x33c   : > { %v2654_v58 = vld [vmem:[#allocation5 + $0x200] ss:$12 sps:$4 sm:$0xff]  }
 0x33d   : > { %v1010_v59 = vadd.f32 %v1006_v57, %v3150_v40  ;;  %v3204_v61 = vmul.f32 %v1009_v56, %v3197_v51  ;;  %v2625_v40 = vld [vmem:[#allocation7 + $0x50] sm:$0xff]  }
 0x33e   : > { %v2646_v56 = vld [vmem:[#allocation5 + $0x1d0] ss:$12 sps:$4 sm:$0xff]   ;;  %v2650_v57 = vld [vmem:[#allocation5 + $0x1e8] ss:$12 sps:$4 sm:$0xff]  }
 0x33f   : > { %v3207_v62 = vmul.f32 %v1010_v59, %v3201_v60  ;;  %v2657_v59 = vld [vmem:[#allocation5 + $0x214] ss:$12 sps:$4 sm:$0xff]  }
 0x341   : > { %v1013_v1 = vpack.c.bf16 %v3207_v62, %v3204_v61 }
 0x343   : > { %1208 = vmatmul.mubr.bf16.vlgmr.msra.gmra.mrb[8].mxu0 %v1013_v1  ;;  %2369 = vmatmul.mubr.bf16.vlgmr.msra.gmra.mrb[8].mxu1 %v1013_v1  ;;  %v2658_v1 = vld [vmem:[#allocation5 + $0x218] ss:$12 sps:$4 sm:$0xff]  }
 0x344   : > { %2373 = vmatpush3.bf16.msra.mxu0 %v2623_v63  ;;  %2388 = vmatprep.mubr.msk.bf16.mxu0 %vm2876_vm0, %v2875_v0  ;;  %v2655_v63 = vld [vmem:[#allocation5 + $0x210] ss:$12 sps:$4 sm:$0xff]  }
 0x345   : > { %2374 = vmatprep.subr.bf16.mxu0 %v2875_v0  ;;  %1614 = vmatprep.mubr.bf16.mxu1 %v2877_v34  ;;  %v2629_v34 = vld [vmem:[#allocation7 + $0x70] sm:$0xff]  }
 0x346   : > { %1583 = vmatpush1.bf16.msra.mxu1 %v2631_v9 }
 0x347   : > { %1584 = vmatprep.subr.bf16.mxu1 %v2637_v11 }
 0x348   : > { %2375 = vmatpush3.bf16.msra.mxu0 %v2624_v39  ;;  %v2661_v39 = vld [vmem:[#allocation5 + $0x22c] ss:$12 sps:$4 sm:$0xff]  }
 0x349   : > { %2376 = vmatprep.subr.bf16.mxu0 %v2875_v0 }
 0x34a   : > { %1585 = vmatpush1.bf16.msra.mxu1 %v2635_v12 }
 0x34b   : > { %1586 = vmatprep.subr.bf16.mxu1 %v2641_v13 }
 0x34c   : > { %2377 = vmatpush3.bf16.msra.mxu0 %v2625_v40  ;;  %v2659_v40 = vld [vmem:[#allocation5 + $0x228] ss:$12 sps:$4 sm:$0xff]  }
 0x34d   : > { %2378 = vmatprep.subr.bf16.mxu0 %v2875_v0 }
 0x34e   : > { %1587 = vmatpush1.bf16.msra.mxu1 %v2639_v14 }
 0x34f   : > { %1588 = vmatprep.subr.bf16.mxu1 %v2645_v15 }
 0x350   : > { %2379 = vmatpush3.bf16.msra.mxu0 %v2626_v2  ;;  %v2662_v2 = vld [vmem:[#allocation5 + $0x230] ss:$12 sps:$4 sm:$0xff]  }
 0x351   : > { %2380 = vmatprep.subr.bf16.mxu0 %v2875_v0 }
 0x352   : > { %1589 = vmatpush1.bf16.msra.mxu1 %v2643_v16  ;;  %v2663_v16 = vld [vmem:[#allocation7 + $0x80] sm:$0xff]  }
 0x353   : > { %1590 = vmatprep.subr.bf16.mxu1 %v2649_v17 }
 0x354   : > { %2381 = vmatpush3.bf16.msra.mxu0 %v2627_v4  ;;  %v2160_v4 = vld [vmem:[%s3346_s7 + $0x1] ss:$0 sm:$0xff] }
 0x355   : > { %2382 = vmatprep.subr.bf16.mxu0 %v2875_v0 }
 0x356   : > { %1591 = vmatpush1.bf16.msra.mxu1 %v2647_v18  ;;  %v2664_v18 = vld [vmem:[#allocation7 + $0x88] sm:$0xff]  }
 0x357   : > { %1592 = vmatprep.subr.bf16.mxu1 %v2653_v19  ;;  %v2667_v19 = vld [vmem:[#allocation7 + $0xa0] sm:$0xff]  }
 0x358   : > { %2383 = vmatpush3.bf16.msra.mxu0 %v2628_v7 }
 0x359   : > { %2384 = vmatprep.subr.bf16.mxu0 %v2875_v0 }
 0x35a   : > { %1593 = vmatpush1.bf16.msra.mxu1 %v2651_v20  ;;  %v2668_v20 = vld [vmem:[#allocation7 + $0xa8] sm:$0xff]  }
 0x35b   : > { %1594 = vmatprep.subr.bf16.mxu1 %v2657_v59  ;;  %v2678_v59 = vld [vmem:[#allocation8 + $0x38] sm:$0xff]  }
 0x35c   : > { %2385 = vmatpush3.bf16.msra.mxu0 %v2629_v34 }
 0x35d   : > { %2386 = vmatprep.subr.bf16.mxu0 %v2875_v0 }
 0x35e   : > { %1595 = vmatpush1.bf16.msra.mxu1 %v2655_v63  ;;  %v2196_v63 = vld [vmem:[%s3346_s7 + $0x2] ss:$0 sm:$0xff] }
 0x35f   : > { %1596 = vmatprep.subr.bf16.mxu1 %v2661_v39 }
 0x360   : > { %2387 = vmatpush3.bf16.msra.mxu0 %v2630_v8 }
 0x361   : > { %2392 = vmatprep.subr.bf16.mxu0 %v2875_v0 }
 0x362   : > { %1597 = vmatpush1.bf16.msra.mxu1 %v2659_v40 }
 0x363   : > { %2412 = vmatprep.subr.bf16.mxu1 %v2875_v0 }
 0x416   : > { %v1209_v21 = vpop.f32.mrb[8].mxu0  ;;  %v1252_v22 = vpop.f32.mrb[8].mxu1 }
 0x417   : > { %v1211_v23 = vpop.f32.mrb[9].mxu0  ;;  %v2370_v24 = vpop.f32.mrb[9].mxu1  ;;  %v1259_v27 = vrot.slane %v1209_v21, 6  ;;  %v1264_v28 = vrot.slane %v1252_v22, 2  ;;  %v2669_v21 = vld [vmem:[#allocation7 + $0xb0] sm:$0xff]   ;;  %v2670_v22 = vld [vmem:[#allocation7 + $0xb8] sm:$0xff]  }
 0x418   : > { %v1213_v25 = vpop.f32.mrb[10].mxu0  ;;  %v1255_v26 = vpop.f32.mrb[10].mxu1  ;;  %v2672_v24 = vld [vmem:[#allocation8 + $0x8] sm:$0xff]  }
 0x419   : > { %v1260_v29 = vrot.slane %v1213_v25, 6  ;;  %v1265_v30 = vrot.slane %v1255_v26, 2  ;;  %v1215_v31 = vpop.f32.mrb[11].mxu0  ;;  %v2371_v32 = vpop.f32.mrb[11].mxu1  ;;  %v2673_v25 = vld [vmem:[#allocation8 + $0x10] sm:$0xff]   ;;  %v2674_v26 = vld [vmem:[#allocation8 + $0x18] sm:$0xff]  }
 0x41b   : > { %v1267_v33 = vsel %vm1266_vm5, %v1264_v28, %v1265_v30  ;;  %v1262_v35 = vsel %vm1261_vm6, %v1259_v27, %v1260_v29  ;;  %v1263_v36 = vsel %vm1261_vm6, %v1260_v29, %v1259_v27  ;;  %v1268_v37 = vsel %vm1266_vm5, %v1265_v30, %v1264_v28  ;;  %v2675_v27 = vld [vmem:[#allocation8 + $0x20] sm:$0xff]  }
 0x41c   : > { %v1275_v38 = vsel %vm1269_vm7, %v1263_v36, 0.0  ;;  %v1278_v41 = vadd.f32 %v1262_v35, %v1215_v31  ;;  %v1286_v42 = vsel %vm1280_vm8, %v1268_v37, 0.0 }
 0x41d   : > { %v1277_v43 = vadd.f32 %v1275_v38, %v1211_v23  ;;  %v2671_v23 = vld [vmem:[#allocation8] sm:$0xff]  }
 0x41e   : > { %v1288_v45 = vadd.f32 %v1286_v42, %v1278_v41 }
 0x41f   : > { %v1287_v46 = vadd.f32 %v1277_v43, %v1267_v33 }
 0x420   : > { %v1298_v47 = vadd.f32 %v2158_v44, %v1288_v45 }
 0x421   : > { %v1297_v48 = vadd.f32 %v2158_v44, %v1287_v46 }
 0x422   : > { %v1300_v49 = vmax.f32 %v1298_v47, 0.0 }
 0x423   : > { %v1299_v50 = vmax.f32 %v1297_v48, 0.0 }
 0x425   : > { %v1301_v53 = vpack.c.bf16 %v1300_v49, %v1299_v50 }
 0x427   : > { %2389 = vmatmul.mubr.bf16.vlgmr.msra.gmra.mrb[12].mxu0 %v1301_v53 }
 0x428   : > { %2393 = vmatpush3.bf16.msra.mxu0 %v2634_v52  ;;  %2408 = vmatprep.mubr.msk.bf16.mxu0 %vm2876_vm0, %v2875_v0 }
 0x429   : > { %2394 = vmatprep.subr.bf16.mxu0 %v2875_v0 }
 0x42c   : > { %2395 = vmatpush3.bf16.msra.mxu0 %v2638_v54 }
 0x42d   : > { %2396 = vmatprep.subr.bf16.mxu0 %v2875_v0 }
 0x430   : > { %2397 = vmatpush3.bf16.msra.mxu0 %v2642_v55 }
 0x431   : > { %2398 = vmatprep.subr.bf16.mxu0 %v2875_v0 }
 0x434   : > { %2399 = vmatpush3.bf16.msra.mxu0 %v2646_v56 }
 0x435   : > { %2400 = vmatprep.subr.bf16.mxu0 %v2875_v0 }
 0x438   : > { %2401 = vmatpush3.bf16.msra.mxu0 %v2650_v57  ;;  %v2676_v57 = vld [vmem:[#allocation8 + $0x28] sm:$0xff]  }
 0x439   : > { %2402 = vmatprep.subr.bf16.mxu0 %v2875_v0 }
 0x43c   : > { %2403 = vmatpush3.bf16.msra.mxu0 %v2654_v58  ;;  %v2677_v58 = vld [vmem:[#allocation8 + $0x30] sm:$0xff]  }
 0x43d   : > { %2404 = vmatprep.subr.bf16.mxu0 %v2875_v0 }
 0x440   : > { %2405 = vmatpush3.bf16.msra.mxu0 %v2658_v1 }
 0x441   : > { %2406 = vmatprep.subr.bf16.mxu0 %v2875_v0 }
 0x444   : > { %2407 = vmatpush3.bf16.msra.mxu0 %v2662_v2 }
 0x445   : > { %2432 = vmatprep.subr.bf16.mxu0 %v2875_v0 }
 0x4fa   : > { %v1409_v7 = vpop.f32.mrb[12].mxu0 }
 0x4fb   : > { %v1410_v34 = vadd.f32 %v2160_v4, %v1409_v7  ;;  %v2390_v8 = vpop.f32.mrb[13].mxu0 }
 0x4fc   : > { %v1412_v9 = vpop.f32.mrb[14].mxu0 }
 0x4fd   : > { %v1416_v10 = vadd.f32 %v1410_v34, %v3204_v61  ;;  %v1413_v11 = vadd.f32 %v2160_v4, %v1412_v9  ;;  %v2391_v12 = vpop.f32.mrb[15].mxu0  ;;  %v2665_v61 = vld [vmem:[#allocation7 + $0x90] sm:$0xff]  }
 0x4ff   : > { %v1417_v13 = vadd.f32 %v1413_v11, %v3207_v62  ;;  %v3246_v14 = vmul.f32 %v1416_v10, %v3197_v51  ;;  %v2666_v62 = vld [vmem:[#allocation7 + $0x98] sm:$0xff]   ;;  %v2205_v11 = vld [vmem:[%s3348_s9] ss:$0 sm:$0xff] }
 0x501   : > { %v3249_v15 = vmul.f32 %v1417_v13, %v3201_v60 }
 0x503   : > { %v1420_v17 = vpack.c.bf16 %v3249_v15, %v3246_v14 }
 0x505   : > { %1615 = vmatmul.mubr.bf16.vlgmr.msra.gmra.mrb[12].mxu1 %v1420_v17  ;;  %2409 = vmatmul.mubr.bf16.vlgmr.msra.gmra.mrb[16].mxu0 %v1420_v17 }
 0x506   : > { %2413 = vmatpush3.bf16.msra.mxu1 %v2663_v16  ;;  %2428 = vmatprep.mubr.msk.bf16.mxu1 %vm2876_vm0, %v2875_v0 }
 0x507   : > { %2414 = vmatprep.subr.bf16.mxu1 %v2875_v0  ;;  %2448 = vmatprep.mubr.msk.bf16.mxu0 %vm2876_vm0, %v2875_v0 }
 0x508   : > { %2433 = vmatpush3.bf16.msra.mxu0 %v2671_v23 }
 0x509   : > { %2434 = vmatprep.subr.bf16.mxu0 %v2875_v0 }
 0x50a   : > { %2415 = vmatpush3.bf16.msra.mxu1 %v2664_v18 }
 0x50b   : > { %2416 = vmatprep.subr.bf16.mxu1 %v2875_v0 }
 0x50c   : > { %2435 = vmatpush3.bf16.msra.mxu0 %v2672_v24 }
 0x50d   : > { %2436 = vmatprep.subr.bf16.mxu0 %v2875_v0 }
 0x50e   : > { %2417 = vmatpush3.bf16.msra.mxu1 %v2665_v61 }
 0x50f   : > { %2418 = vmatprep.subr.bf16.mxu1 %v2875_v0 }
 0x510   : > { %2437 = vmatpush3.bf16.msra.mxu0 %v2673_v25 }
 0x511   : > { %2438 = vmatprep.subr.bf16.mxu0 %v2875_v0 }
 0x512   : > { %2419 = vmatpush3.bf16.msra.mxu1 %v2666_v62 }
 0x513   : > { %2420 = vmatprep.subr.bf16.mxu1 %v2875_v0 }
 0x514   : > { %2439 = vmatpush3.bf16.msra.mxu0 %v2674_v26 }
 0x515   : > { %2440 = vmatprep.subr.bf16.mxu0 %v2875_v0 }
 0x516   : > { %2421 = vmatpush3.bf16.msra.mxu1 %v2667_v19 }
 0x517   : > { %2422 = vmatprep.subr.bf16.mxu1 %v2875_v0 }
 0x518   : > { %2441 = vmatpush3.bf16.msra.mxu0 %v2675_v27 }
 0x519   : > { %2442 = vmatprep.subr.bf16.mxu0 %v2875_v0 }
 0x51a   : > { %2423 = vmatpush3.bf16.msra.mxu1 %v2668_v20 }
 0x51b   : > { %2424 = vmatprep.subr.bf16.mxu1 %v2875_v0 }
 0x51c   : > { %2443 = vmatpush3.bf16.msra.mxu0 %v2676_v57 }
 0x51d   : > { %2444 = vmatprep.subr.bf16.mxu0 %v2875_v0 }
 0x51e   : > { %2425 = vmatpush3.bf16.msra.mxu1 %v2669_v21 }
 0x51f   : > { %2426 = vmatprep.subr.bf16.mxu1 %v2875_v0 }
 0x520   : > { %2445 = vmatpush3.bf16.msra.mxu0 %v2677_v58 }
 0x521   : > { %2446 = vmatprep.subr.bf16.mxu0 %v2875_v0 }
 0x522   : > { %2427 = vmatpush3.bf16.msra.mxu1 %v2670_v22 }
 0x524   : > { %2447 = vmatpush3.bf16.msra.mxu0 %v2678_v59 }
 0x5d8   : > { %v1616_v28 = vpop.f32.mrb[12].mxu1  ;;  %v1659_v29 = vpop.f32.mrb[16].mxu0 }
 0x5d9   : > { %v1618_v30 = vpop.f32.mrb[13].mxu1  ;;  %v2410_v31 = vpop.f32.mrb[17].mxu0  ;;  %v1666_v35 = vrot.slane %v1616_v28, 4  ;;  %v1671_v36 = vrot.slane %v1659_v29, 4 }
 0x5da   : > { %v1620_v32 = vpop.f32.mrb[14].mxu1  ;;  %v1662_v33 = vpop.f32.mrb[18].mxu0 }
 0x5db   : > { %v1667_v37 = vrot.slane %v1620_v32, 4  ;;  %v1672_v38 = vrot.slane %v1662_v33, 4  ;;  %v1622_v41 = vpop.f32.mrb[15].mxu1  ;;  %v2411_v42 = vpop.f32.mrb[19].mxu0 }
 0x5dd   : > { %v1670_v43 = vsel %vm1668_vm9, %v1667_v37, %v1666_v35  ;;  %v1673_v44 = vsel %vm1668_vm9, %v1671_v36, %v1672_v38  ;;  %v1669_v45 = vsel %vm1668_vm9, %v1666_v35, %v1667_v37  ;;  %v1674_v46 = vsel %vm1668_vm9, %v1672_v38, %v1671_v36 }
 0x5de   : > { %v1681_v47 = vsel %vm1675_vm10, %v1670_v43, 0.0  ;;  %v1684_v48 = vadd.f32 %v1669_v45, %v1622_v41  ;;  %v1692_v49 = vsel %vm1686_vm11, %v1674_v46, 0.0 }
 0x5df   : > { %v1683_v50 = vadd.f32 %v1681_v47, %v1618_v30 }
 0x5e0   : > { %v1694_v5 = vadd.f32 %v1692_v49, %v1684_v48 }
 0x5e1   : > { %v1693_v6 = vadd.f32 %v1683_v50, %v1673_v44 }
 0x5e2   : > { %v1704_v52 = vadd.f32 %v2194_v3, %v1694_v5 }
 0x5e3   : > { %v1703_v53 = vadd.f32 %v2194_v3, %v1693_v6 }
 0x5e4   : > { %v1706_v54 = vmax.f32 %v1704_v52, 0.0 }
 0x5e5   : > { %v1705_v55 = vmax.f32 %v1703_v53, 0.0 }
 0x5e7   : > { %v1707_v56 = vpack.c.bf16 %v1706_v54, %v1705_v55 }
 0x5e9   : > { %2429 = vmatmul.mubr.bf16.vlgmr.msra.gmra.mrb[16].mxu1 %v1707_v56 }
 0x6bc   : > { %v1815_v1 = vpop.f32.mrb[16].mxu1 }
 0x6bd   : > { %v1816_v39 = vadd.f32 %v2196_v63, %v1815_v1  ;;  %v2430_v40 = vpop.f32.mrb[17].mxu1 }
 0x6be   : > { %v1818_v2 = vpop.f32.mrb[18].mxu1 }
 0x6bf   : > { %v1822_v4 = vadd.f32 %v1816_v39, %v3246_v14  ;;  %v1819_v7 = vadd.f32 %v2196_v63, %v1818_v2  ;;  %v2431_v34 = vpop.f32.mrb[19].mxu1 }
 0x6c1   : > { %v1823_v8 = vadd.f32 %v1819_v7, %v3249_v15  ;;  %v1824_v0 = vmul.f32 %v1822_v4, %v3197_v51 }
 0x6c3   : > { %v1825_v9 = vmul.f32 %v1823_v8, %v3201_v60 }
 0x6c5   : > { %v1826_v10 = vpack.c.bf16 %v1825_v9, %v1824_v0 }
 0x6c7   : > { %2449 = vmatmul.mubr.bf16.vlgmr.msra.gmra.mrb[20].mxu0 %v1826_v10 }
 0x79a   : > { %v1932_v12 = vpop.f32.mrb[20].mxu0 }
 0x79b   : > { %v1933_v13 = vadd.f32 %v2205_v11, %v1932_v12  ;;  %v2450_v14 = vpop.f32.mrb[21].mxu0 }
 0x79c   : > { %v1935_v15 = vpop.f32.mrb[22].mxu0 }
 0x79d   : > { %v1939_v16 = vmul.f32 %v1933_v13, %v3197_v51  ;;  %v1936_v17 = vadd.f32 %v2205_v11, %v1935_v15  ;;  %v2451_v18 = vpop.f32.mrb[23].mxu0 }
 0x79f   : > { %1941 = vst [vmem:[%s428_s11] sm:$0xff] %v1939_v16  ;;  %v1940_v61 = vmul.f32 %v1936_v17, %v3201_v60 }
 0x7a1   : > { %1942 = vst [vmem:[%s428_s11 + $0x8] sm:$0xff] %v1940_v61 }
 0x7a2   : > { %2804 = shalt.err (!%p2801_p0)
}
 0x7a3   : > { %s2805_s19 = scalar_lea.hbm %s3295_s24, 256  ;;  %s2809_s12 = scalar_lea.hbm %s3349_s10, 512 }
 0x7a4   : > { %p2806_p5 = scmp.ne.s32.totalorder %s3295_s24, %s2805_s19  ;;  %p2810_p10 = scmp.lt.u32.totalorder %s3295_s24, %s3349_s10 }
 0x7a5   : > { %p2811_p12 = scmp.lt.u32.totalorder %s2809_s12, %s2805_s19  ;;  %p2813_p2 = scmp.lt.u32.totalorder %s2805_s19, %s3295_s24 }
 0x7a6   : > { %p2807_p6 = pnand %p2806_p5, %p3377_p3 }
 0x7a7   : > { %p2812_p1 = por %p2811_p12, %p2810_p10 }
 0x7a8   : > { %p2808_p9 = pneg %p2807_p6 }
 0x7a9   : > { %p2814_p4 = por %p2813_p2, %p2812_p1 }
 0x7ab   : > { %p2815_p7 = pnand %p2814_p4, %p2808_p9 }
 0x7ad   : > { %2818 = shalt.err (!%p2815_p7)
}
 0x7ae   : > { %s2879_s29 = smov 128   ;;  %s2880_s11 = smov 8  }
 0x7af   : > { %2468 = dma.vmem_to_hbm [thread:$0]  (%p3377_p3), %s3290_s27, 256, %s3295_s24, %s3298_s17, %s2879_s29, %s2879_s29, %s2880_s11  }
 0x7b0 PF: > { %s3378_s15 = sld [smem:[#allocation15_spill]]  ;;  %s3379_s30 = sld [smem:[#allocation19_spill]] }
 0x7b1   : > { %p2495_p8 = scmp.ge.s32.totalorder %s2865_s16, 2 }
 0x7b6   : > { %s1972_s20 = sand.u32 1, %s3378_s15   ;;  %p3380_p11 = scmp.ne.s32.totalorder %s3379_s30, 0 }
 0x7b7   : > { %s1973_s4 = scalar_lea.sflag [#allocation4], %s1972_s20 }
 0x7b8   : > { %p2484_p13 = pnand %p2495_p8, %p3380_p11 }
 0x7ba   : > { %2848 = dma.done.wait (!%p2484_p13), %s1973_s4, 256  }
 0x7bb   : > { %2850 = vsyncadd (!%p2484_p13), %s1973_s4, 4294967040  ;;  %s3381_s16 = sld [smem:[#allocation17_spill]]  ;;  %s3382_s25 = sld [smem:[#allocation16_spill]] }
 0x7bc   : > { %s3383_s15 = sld [smem:[#allocation18_spill]]  ;;  %s3384_s13 = smov %s2857_s14 }
 0x7c1   : > { %p23_p0 = scmp.ge.s32.totalorder %s3381_s16, 4   ;;  %s3385_s14 = smov %s3382_s25 }
 0x7c3   :  { %25 = sbr.rel (!%p23_p0) target bundleno = 8 (0x8), region = 123 }
 0x7ca   :  { %1978 = vsyncpa [#allocation3], 1 }
 0x7cb   :  { %1980 = vsyncpa [#allocation3 + $0x1], 1 }
 0x7cc   :  { %1981 = vsyncpa [#allocation6], 1 }
 0x7cd   :  { %1982 = vsyncpa [#allocation9], 1 }
 0x7ce   :  { %1983 = vsyncpa [#allocation4], 1 }
 0x7cf   :  { %1985 = vsyncpa [#allocation4 + $0x1], 1 }

</bundles_post_ra>
